<compile_context>
chip_gen: v7x
topology: tpu7x:2x2x1
jax: 0.10.0
libtpu: 0.0.40
codegen_flags: <defaults>
</compile_context>

<pallas_src>
import math
from functools import partial

import jax
import jax.numpy as jnp
from jax import lax
from jax.experimental import pallas as pl
from jax.experimental.pallas import tpu as pltpu


# ------------------------------------------------------------------
# small in-kernel helpers (only ops with guaranteed Mosaic lowering)
# ------------------------------------------------------------------

def _round_up(x, m):
    return (x + m - 1) // m * m


def _silu(x):
    # x * sigmoid(x); approx reciprocal runs on the otherwise-idle EUP slot.
    return x * pl.reciprocal(1.0 + jnp.exp(-x), approx=True)


def _softplus(x):
    # numerically stable softplus built from exp/log/abs/max only
    return jnp.maximum(x, 0.0) + jnp.log(1.0 + jnp.exp(-jnp.abs(x)))


def _layernorm(x, w, b, eps=1e-5):
    mu = jnp.mean(x, axis=-1, keepdims=True)
    var = jnp.mean((x - mu) ** 2, axis=-1, keepdims=True)
    return (x - mu) * lax.rsqrt(var + eps) * w + b


# ------------------------------------------------------------------
# Stem kernel: im2col-conv3d (+ folded BN) -> ReLU -> embedding Linear
# ------------------------------------------------------------------

def _stem_kernel(p_ref, w1_ref, b1_ref, w2_ref, b2_ref, o_ref):
    h = jnp.dot(p_ref[...].astype(jnp.bfloat16),
                w1_ref[...].astype(jnp.bfloat16),
                preferred_element_type=jnp.float32) + b1_ref[...]
    h = jnp.maximum(h, 0.0)
    o_ref[...] = (jnp.dot(h.astype(jnp.bfloat16),
                          w2_ref[...].astype(jnp.bfloat16),
                          preferred_element_type=jnp.float32) + b2_ref[...])


def stem_pallas(patches, w1, b1, w2, b2, *, block_m=1024):
    """patches: (M, P) -> (M, E), fusing conv-as-matmul + BN + ReLU + embed."""
    M, P = patches.shape
    C3 = w1.shape[1]
    E = w2.shape[1]
    bm = min(block_m, _round_up(M, 8))
    Mp = _round_up(M, bm)
    if Mp != M:
        patches = jnp.pad(patches, ((0, Mp - M), (0, 0)))
    out = pl.pallas_call(
        _stem_kernel,
        grid=(Mp // bm,),
        in_specs=[
            pl.BlockSpec((bm, P), lambda i: (i, 0)),
            pl.BlockSpec((P, C3), lambda i: (0, 0)),
            pl.BlockSpec((1, C3), lambda i: (0, 0)),
            pl.BlockSpec((C3, E), lambda i: (0, 0)),
            pl.BlockSpec((1, E), lambda i: (0, 0)),
        ],
        out_specs=pl.BlockSpec((bm, E), lambda i: (i, 0)),
        out_shape=jax.ShapeDtypeStruct((Mp, E), jnp.float32),
        compiler_params=pltpu.CompilerParams(
            dimension_semantics=("parallel",)),
    )(patches.astype(jnp.float32), w1, b1, w2, b2)
    return out[:M]


# ------------------------------------------------------------------
# Fused mamba Block kernel (one grid step = one batch element)
# ------------------------------------------------------------------

def _mamba_block_kernel(x_ref, xr_ref, nw_ref, nb_ref, inw_ref, dww_ref,
                        dwb_ref, sw_ref, dtb_ref, a_ref, dsum_ref, onw_ref,
                        onb_ref, ow_ref, o_ref,
                        dA_s, xin_s, cb_s, ys0_s, ys1_s, *, unroll):
    L, _ = x_ref.shape
    Din = dww_ref.shape[1]
    N = a_ref.shape[0]
    D2 = 2 * Din

    x = x_ref[...]                                            # (L, E) f32

    # pre-block LayerNorm (VisionMamba.norm), fused into the block
    xn = _layernorm(x, nw_ref[...], nb_ref[...])

    # in_proj -> split x / z, SiLU gate          (MXU bf16 operands, f32 acc)
    inw = inw_ref[...].astype(jnp.bfloat16)
    xz = jnp.dot(xn.astype(jnp.bfloat16), inw,
                 preferred_element_type=jnp.float32)          # (L, 2*Din)
    z = _silu(xz[:, Din:])
    # depthwise 1x1x1 Conv3d (per-channel scale + bias) + SiLU
    u = _silu(xz[:, :Din] * dww_ref[...] + dwb_ref[...])      # (L, Din) token order

    # Direction-1 inputs: identical per-token math applied to the pre-flipped
    # residual, so ur[l] == u[L-1-l] exactly.  This keeps BOTH lane-stacked
    # directions scanning forward over the step index (no in-kernel flips).
    xnr = _layernorm(xr_ref[...], nw_ref[...], nb_ref[...])
    xzr = jnp.dot(xnr.astype(jnp.bfloat16), inw,
                  preferred_element_type=jnp.float32)
    ur = _silu(xzr[:, :Din] * dww_ref[...] + dwb_ref[...])    # (L, Din) step order

    # Per-direction folded x_proj + dt_proj (dt | B | C per direction).
    sp0 = jnp.dot(u.astype(jnp.bfloat16), sw_ref[0].astype(jnp.bfloat16),
                  preferred_element_type=jnp.float32)         # (L, Din+2N)
    sp1 = jnp.dot(ur.astype(jnp.bfloat16), sw_ref[1].astype(jnp.bfloat16),
                  preferred_element_type=jnp.float32)
    dt = _softplus(jnp.concatenate([sp0[:, :Din], sp1[:, :Din]], axis=1)
                   + dtb_ref[...])                            # (L, 2*Din) stacked dirs
    b0 = sp0[:, Din:Din + N]
    c0 = sp0[:, Din + N:]
    b1 = sp1[:, Din:Din + N]
    c1 = sp1[:, Din + N:]
    du = dt * jnp.concatenate([u, ur], axis=1)                # (L, 2*Din)

    # Hoisted scan precompute: all exp / broadcasts vectorized over L, with the
    # two scan directions STACKED along the lane axis so the serial recurrence
    # below runs on (N, 2*Din) = (8, 64) tiles.
    dA_s[...] = jnp.exp(dt[:, None, :] * a_ref[...][None])    # (L, N, 2*Din)
    b_stk = jnp.concatenate(
        [jnp.broadcast_to(b0[:, :, None], (L, N, Din)),
         jnp.broadcast_to(b1[:, :, None], (L, N, Din))], axis=2)
    xin_s[...] = du[:, None, :] * b_stk
    cb_s[...] = jnp.concatenate(
        [jnp.broadcast_to(c0[:, :, None], (L, N, Din)),
         jnp.broadcast_to(c1[:, :, None], (L, N, Din))], axis=2)

    # Serial selective scan: `unroll` steps per fori iteration; the unrolled
    # output rows are assembled in vregs and written with two full
    # (unroll, Din) tile stores per chunk (no per-row masked stores).
    # Direction-1 rows (step l == token L-1-l) land at their token positions.
    # TODO(synk): for production L, chunk precompute+scan over an 'arbitrary'
    # L grid axis with h carried in persistent VMEM (v7x 64 MiB budget), store
    # cb_s in bf16, and lane-stack batch on single-TC chips (v5e/v6e).
    def chunk(i, h):
        base = pl.multiple_of(i * unroll, unroll)
        rows = []
        for j in range(unroll):
            h = dA_s[base + j] * h + xin_s[base + j]
            rows.append(jnp.sum(h * cb_s[base + j], axis=0, keepdims=True))
        tile = jnp.concatenate(rows, axis=0)                  # (unroll, 2*Din)
        ys0_s[pl.ds(base, unroll), :] = tile[:, :Din]
        rev = jnp.concatenate(rows[::-1], axis=0)[:, Din:]    # trace-time reverse
        rbase = pl.multiple_of(L - unroll - base, unroll)
        ys1_s[pl.ds(rbase, unroll), :] = rev
        return h

    lax.fori_loop(0, L // unroll, chunk, jnp.zeros((N, D2), jnp.float32))

    # combine directions + skip (D) term, out_norm, gate, out_proj, residual
    y = ys0_s[...] + ys1_s[...] + u * dsum_ref[...]           # (L, Din)
    yn = _layernorm(y, onw_ref[...], onb_ref[...])
    out = jnp.dot((yn * z).astype(jnp.bfloat16),
                  ow_ref[...].astype(jnp.bfloat16),
                  preferred_element_type=jnp.float32)         # (L, E)
    o_ref[...] = x + out                                      # residual in f32


def mamba_block_pallas(x, bp):
    """x: (B, L, E) residual stream (L in (h,w,t) scan order).
    Returns x + Block(LayerNorm(x)), whole block fused in one pallas_call."""
    B, L, E = x.shape
    Din = bp["dw_w"].shape[1]
    N = bp["A_stk"].shape[0]
    P1 = Din + 2 * N
    unroll = max(u for u in (8, 4, 2, 1) if L % u == 0)

    x = x.astype(jnp.float32)
    x_rev = jnp.flip(x, axis=1)          # feeds the reverse-direction path

    # TODO(synk): on v7x, mark the batch axis CORE_PARALLEL (or split the two
    # directions across the two TensorCores when B == 1).
    return pl.pallas_call(
        partial(_mamba_block_kernel, unroll=unroll),
        grid=(B,),
        in_specs=[
            pl.BlockSpec((None, L, E), lambda b: (b, 0, 0)),   # x
            pl.BlockSpec((None, L, E), lambda b: (b, 0, 0)),   # flip(x) along L
            pl.BlockSpec((1, E), lambda b: (0, 0)),            # norm_w
            pl.BlockSpec((1, E), lambda b: (0, 0)),            # norm_b
            pl.BlockSpec((E, 2 * Din), lambda b: (0, 0)),      # in_proj^T
            pl.BlockSpec((1, Din), lambda b: (0, 0)),          # dw scale
            pl.BlockSpec((1, Din), lambda b: (0, 0)),          # dw bias
            pl.BlockSpec((2, Din, P1), lambda b: (0, 0, 0)),   # folded scan proj
            pl.BlockSpec((1, 2 * Din), lambda b: (0, 0)),      # dt bias (stacked)
            pl.BlockSpec((N, 2 * Din), lambda b: (0, 0)),      # A (dirs lane-stacked)
            pl.BlockSpec((1, Din), lambda b: (0, 0)),          # D0 + D1
            pl.BlockSpec((1, Din), lambda b: (0, 0)),          # out_norm_w
            pl.BlockSpec((1, Din), lambda b: (0, 0)),          # out_norm_b
            pl.BlockSpec((Din, E), lambda b: (0, 0)),          # out_proj^T
        ],
        out_specs=pl.BlockSpec((None, L, E), lambda b: (b, 0, 0)),
        out_shape=jax.ShapeDtypeStruct((B, L, E), jnp.float32),
        scratch_shapes=[
            pltpu.VMEM((L, N, 2 * Din), jnp.float32),   # dA   (dirs stacked)
            pltpu.VMEM((L, N, 2 * Din), jnp.float32),   # dt*u*B
            pltpu.VMEM((L, N, 2 * Din), jnp.float32),   # C broadcast
            pltpu.VMEM((L, Din), jnp.float32),          # y dir 0 (token order)
            pltpu.VMEM((L, Din), jnp.float32),          # y dir 1 (token order)
        ],
        compiler_params=pltpu.CompilerParams(
            dimension_semantics=("parallel",)),
    )(x, x_rev, bp["norm_w"], bp["norm_b"], bp["in_wT"], bp["dw_w"],
      bp["dw_b"], bp["scan_wT"], bp["dt_bias"], bp["A_stk"], bp["D_sum"],
      bp["out_norm_w"], bp["out_norm_b"], bp["out_wT"])


# ------------------------------------------------------------------
# One-time parameter preparation (hoisted out of the forward pass)
# ------------------------------------------------------------------

def prepare_block_params(lp, norm_w, norm_b):
    """Fold per-direction x_proj / dt_proj into per-direction matmul weights
    and arrange A / D / biases in the lane-stacked layouts used by the kernel
    (k_group == 2)."""
    K, Cproj, Din = lp["x_proj_w"].shape
    R = lp["dt_w"].shape[-1]
    N = (Cproj - R) // 2
    assert K == 2
    ws = []
    for k in range(K):
        xp = lp["x_proj_w"][k].astype(jnp.float32)            # (R + 2N, Din)
        w_dt = xp[:R].T @ lp["dt_w"][k].T.astype(jnp.float32)  # (Din, Din)
        ws.append(jnp.concatenate([w_dt, xp[R:R + N].T, xp[R + N:].T], axis=1))
    scan_wT = jnp.stack(ws, axis=0)                           # (2, Din, Din+2N)
    A = -jnp.exp(lp["A_log"].astype(jnp.float32))             # (K, Din, N)
    A_stk = jnp.concatenate([A[0].T, A[1].T], axis=1)         # (N, 2*Din)
    return {
        "norm_w": norm_w.reshape(1, -1).astype(jnp.float32),
        "norm_b": norm_b.reshape(1, -1).astype(jnp.float32),
        "in_wT": lp["in_proj_w"].T.astype(jnp.float32),       # (E, 2*Din)
        "dw_w": lp["dw_w"].reshape(1, Din).astype(jnp.float32),
        "dw_b": lp["dw_b"].reshape(1, Din).astype(jnp.float32),
        "scan_wT": scan_wT.astype(jnp.float32),
        "dt_bias": jnp.concatenate([lp["dt_b"][0], lp["dt_b"][1]]
                                   ).reshape(1, 2 * Din).astype(jnp.float32),
        "A_stk": A_stk.astype(jnp.float32),
        "D_sum": (lp["D"][0] + lp["D"][1]).reshape(1, Din).astype(jnp.float32),
        "out_norm_w": lp["out_norm_w"].reshape(1, Din).astype(jnp.float32),
        "out_norm_b": lp["out_norm_b"].reshape(1, Din).astype(jnp.float32),
        "out_wT": lp["out_proj_w"].T.astype(jnp.float32),     # (Din, E)
    }


def prepare_params(p):
    """Fold eval-mode BN into the conv, transpose/fold all weights once."""
    C3 = p["conv3d_w"].shape[0]
    scale = p["bn_g"] / jnp.sqrt(p["bn_rv"] + 1e-5)
    w1 = p["conv3d_w"].reshape(C3, -1).T * scale[None, :]     # (k^3, C3)
    b1 = (p["conv3d_b"] - p["bn_rm"]) * scale + p["bn_b"]
    E = p["emb_w"].shape[0]
    return {
        "stem_w1": w1.astype(jnp.float32),
        "stem_b1": b1.reshape(1, C3).astype(jnp.float32),
        "emb_wT": p["emb_w"].T.astype(jnp.float32),           # (C3, E)
        "emb_b": p["emb_b"].reshape(1, E).astype(jnp.float32),
        "layers": [prepare_block_params(lp, p["norm_w"], p["norm_b"])
                   for lp in p["layers"]],
        "head_wT": p["head_w"].T.astype(jnp.float32),
        "head_b": p["head_b"].astype(jnp.float32),
    }


# ------------------------------------------------------------------
# Full forward pass
# ------------------------------------------------------------------

def vision_mamba_forward(x, pp):
    """x: (B, 1, T_in, H_in, W_in) -> (logits (B, num_classes), feature (B, E))."""
    P, _ = pp["stem_w1"].shape
    k3 = round(P ** (1.0 / 3.0))
    assert k3 ** 3 == P
    Bb = x.shape[0]
    Tin, Hin, Win = x.shape[2], x.shape[3], x.shape[4]
    T, H, W = Tin - k3 + 1, Hin - k3 + 1, Win - k3 + 1
    L = H * W * T
    E = pp["emb_wT"].shape[1]

    # im2col directly in Spectral-priority (h, w, t) token order so the
    # embedded sequence is already in scan order for every block.
    # TODO(synk): at production video sizes replace the 27x im2col expansion
    # with a direct Pallas conv stem (load each input tile once, accumulate
    # the 27 shifted dots in VMEM).
    xt = jnp.transpose(x[:, 0].astype(jnp.float32), (0, 2, 3, 1))  # (B,Hin,Win,Tin)
    cols = []
    for dt_ in range(k3):
        for dh in range(k3):
            for dw in range(k3):
                cols.append(xt[:, dh:dh + H, dw:dw + W, dt_:dt_ + T])
    patches = jnp.stack(cols, axis=-1).reshape(Bb * L, P)

    # conv3d + BN + ReLU + embedding Linear, one fused Pallas kernel.
    h = stem_pallas(patches, pp["stem_w1"], pp["stem_b1"],
                    pp["emb_wT"], pp["emb_b"])
    h = h.reshape(Bb, L, E)

    # residual mamba blocks: x = x + Block(LayerNorm(x)), each fully fused.
    for bp in pp["layers"]:
        h = mamba_block_pallas(h, bp)

    # AdaptiveAvgPool2d(1) over (H, W) then mean over T == mean over all tokens.
    feature = jnp.mean(h, axis=1)                             # (B, E)
    # classification head: micro-matmul, left to XLA.
    logits = feature @ pp["head_wT"] + pp["head_b"]
    return logits, feature


# ------------------------------------------------------------------
# Deterministic parameter initialization (shapes follow the module __init__)
# ------------------------------------------------------------------

def init_params(key, *, embed_dim=16, depth=2, d_inner=32, d_state=8,
                dt_rank=4, k_group=2, num_classes=5,
                conv3D_channel=8, conv3D_kernel=3):
    keys = iter(jax.random.split(key, 128))

    def nrm(shape, scale=0.02):
        return scale * jax.random.normal(next(keys), shape, jnp.float32)

    p = {}
    k3 = conv3D_kernel
    p["conv3d_w"] = nrm((conv3D_channel, 1, k3, k3, k3), 0.1)
    p["conv3d_b"] = nrm((conv3D_channel,), 0.1)
    p["bn_g"] = jnp.ones((conv3D_channel,), jnp.float32)
    p["bn_b"] = jnp.zeros((conv3D_channel,), jnp.float32)
    p["bn_rm"] = jnp.zeros((conv3D_channel,), jnp.float32)
    p["bn_rv"] = jnp.ones((conv3D_channel,), jnp.float32)
    p["emb_w"] = nrm((embed_dim, conv3D_channel))
    p["emb_b"] = nrm((embed_dim,))
    p["norm_w"] = jnp.ones((embed_dim,), jnp.float32)
    p["norm_b"] = jnp.zeros((embed_dim,), jnp.float32)

    dt_min, dt_max, dt_floor = 0.001, 0.1, 1e-4
    dt_init_std = dt_rank ** (-0.5)
    layers = []
    for _ in range(depth):
        lp = {}
        lp["in_proj_w"] = nrm((2 * d_inner, embed_dim))
        lp["dw_w"] = 1.0 + nrm((d_inner,), 0.1)              # depthwise 1x1x1 conv
        lp["dw_b"] = nrm((d_inner,), 0.1)
        lp["x_proj_w"] = nrm((k_group, dt_rank + 2 * d_state, d_inner))
        lp["dt_w"] = jax.random.uniform(
            next(keys), (k_group, d_inner, dt_rank), jnp.float32,
            minval=-dt_init_std, maxval=dt_init_std)
        dt = jnp.exp(jax.random.uniform(next(keys), (k_group, d_inner))
                     * (math.log(dt_max) - math.log(dt_min)) + math.log(dt_min))
        dt = jnp.maximum(dt, dt_floor)
        lp["dt_b"] = dt + jnp.log(-jnp.expm1(-dt))           # inverse softplus
        A = jnp.arange(1, d_state + 1, dtype=jnp.float32)
        lp["A_log"] = jnp.log(jnp.broadcast_to(A, (k_group, d_inner, d_state)))
        lp["D"] = jnp.ones((k_group, d_inner), jnp.float32)
        lp["out_norm_w"] = jnp.ones((d_inner,), jnp.float32)
        lp["out_norm_b"] = jnp.zeros((d_inner,), jnp.float32)
        lp["out_proj_w"] = nrm((embed_dim, d_inner))
        layers.append(lp)
    p["layers"] = layers
    p["head_w"] = nrm((num_classes, embed_dim))
    p["head_b"] = nrm((num_classes,))
    return p


# ------------------------------------------------------------------

if __name__ == "__main__":
    key = jax.random.PRNGKey(0)
    pkey, xkey = jax.random.split(key)
    params = init_params(pkey)
    pparams = prepare_params(params)   # weight folding hoisted out of forward

    # small input: B=2, 1 channel, T_in=5, H_in=W_in=6  ->  T=3, H=W=4, L=48
    x = jax.random.normal(xkey, (2, 1, 5, 6, 6), jnp.float32)

    logits, feature = jax.jit(vision_mamba_forward)(x, pparams)
    jax.block_until_ready((logits, feature))

    assert logits.shape == (2, 5), logits.shape
    assert feature.shape == (2, 16), feature.shape
    assert bool(jnp.all(jnp.isfinite(logits))) and bool(jnp.all(jnp.isfinite(feature)))
    print("KERNEL_OK")
</pallas_src>

<mosaic_0001>
module attributes {stable_mosaic.version = 11 : i64} {
  func.func @_stem_kernel(%arg0: i32, %arg1: memref<96x27xf32, #tpu.memory_space<vmem>>, %arg2: memref<27x8xf32, #tpu.memory_space<vmem>>, %arg3: memref<1x8xf32, #tpu.memory_space<vmem>>, %arg4: memref<8x16xf32, #tpu.memory_space<vmem>>, %arg5: memref<1x16xf32, #tpu.memory_space<vmem>>, %arg6: memref<96x16xf32, #tpu.memory_space<vmem>>) attributes {dimension_semantics = [#tpu.dimension_semantics<parallel>], iteration_bounds = array<i64: 1>, scalar_prefetch = 0 : i64, scratch_operands = 0 : i64, tpu.core_type = #tpu.core_type<tc>, window_params = [{transform_indices = @transform_0, window_bounds = array<i64: 96, 27>}, {pipeline_mode = #tpu.pipeline_mode<synchronous>, transform_indices = @transform_1, window_bounds = array<i64: 27, 8>}, {pipeline_mode = #tpu.pipeline_mode<synchronous>, transform_indices = @transform_2, window_bounds = array<i64: 1, 8>}, {pipeline_mode = #tpu.pipeline_mode<synchronous>, transform_indices = @transform_3, window_bounds = array<i64: 8, 16>}, {pipeline_mode = #tpu.pipeline_mode<synchronous>, transform_indices = @transform_4, window_bounds = array<i64: 1, 16>}, {transform_indices = @transform_5, window_bounds = array<i64: 96, 16>}]} {
    %c0 = arith.constant 0 : index
    %c0_0 = arith.constant 0 : index
    %0 = vector.load %arg1[%c0, %c0_0] : memref<96x27xf32, #tpu.memory_space<vmem>>, vector<96x27xf32>
    %1 = arith.truncf %0 : vector<96x27xf32> to vector<96x27xbf16>
    %c0_1 = arith.constant 0 : index
    %c0_2 = arith.constant 0 : index
    %2 = vector.load %arg2[%c0_1, %c0_2] : memref<27x8xf32, #tpu.memory_space<vmem>>, vector<27x8xf32>
    %3 = arith.truncf %2 : vector<27x8xf32> to vector<27x8xbf16>
    %cst = arith.constant dense<0.000000e+00> : vector<96x8xf32>
    %4 = tpu.matmul %1, %3, %cst {dimension_numbers = #tpu.dot_dimension_numbers<[1], [0], [0], [1], [0, 0, 1, 1], [], []>} : vector<96x27xbf16>, vector<27x8xbf16>, vector<96x8xf32> -> vector<96x8xf32>
    %c0_3 = arith.constant 0 : index
    %c0_4 = arith.constant 0 : index
    %5 = vector.load %arg3[%c0_3, %c0_4] : memref<1x8xf32, #tpu.memory_space<vmem>>, vector<1x8xf32>
    %6 = vector.broadcast %5 : vector<1x8xf32> to vector<96x8xf32>
    %7 = arith.addf %4, %6 : vector<96x8xf32>
    %cst_5 = arith.constant 0.000000e+00 : f32
    %8 = vector.broadcast %cst_5 : f32 to vector<96x8xf32>
    %9 = arith.maximumf %7, %8 : vector<96x8xf32>
    %10 = arith.truncf %9 : vector<96x8xf32> to vector<96x8xbf16>
    %c0_6 = arith.constant 0 : index
    %c0_7 = arith.constant 0 : index
    %11 = vector.load %arg4[%c0_6, %c0_7] : memref<8x16xf32, #tpu.memory_space<vmem>>, vector<8x16xf32>
    %12 = arith.truncf %11 : vector<8x16xf32> to vector<8x16xbf16>
    %cst_8 = arith.constant dense<0.000000e+00> : vector<96x16xf32>
    %13 = tpu.matmul %10, %12, %cst_8 {dimension_numbers = #tpu.dot_dimension_numbers<[1], [0], [0], [1], [0, 0, 1, 1], [], []>} : vector<96x8xbf16>, vector<8x16xbf16>, vector<96x16xf32> -> vector<96x16xf32>
    %c0_9 = arith.constant 0 : index
    %c0_10 = arith.constant 0 : index
    %14 = vector.load %arg5[%c0_9, %c0_10] : memref<1x16xf32, #tpu.memory_space<vmem>>, vector<1x16xf32>
    %15 = vector.broadcast %14 : vector<1x16xf32> to vector<96x16xf32>
    %16 = arith.addf %13, %15 : vector<96x16xf32>
    %c0_11 = arith.constant 0 : index
    %c0_12 = arith.constant 0 : index
    %17 = vector.load %arg6[%c0_11, %c0_12] : memref<96x16xf32, #tpu.memory_space<vmem>>, vector<96x16xf32>
    tpu.vector_store %arg6[%c0_11, %c0_12], %16 {strides = array<i32>} : memref<96x16xf32, #tpu.memory_space<vmem>>, vector<96x16xf32>,
    return
  }
  func.func @transform_0(%arg0: i32) -> (i32, i32) {
    %c0_i32 = arith.constant 0 : i32
    %c0_i32_0 = arith.constant 0 : i32
    return %arg0, %c0_i32 : i32, i32
  }
  func.func @transform_1(%arg0: i32) -> (i32, i32) {
    %c0_i32 = arith.constant 0 : i32
    %c0_i32_0 = arith.constant 0 : i32
    %c0_i32_1 = arith.constant 0 : i32
    return %c0_i32, %c0_i32_0 : i32, i32
  }
  func.func @transform_2(%arg0: i32) -> (i32, i32) {
    %c0_i32 = arith.constant 0 : i32
    %c0_i32_0 = arith.constant 0 : i32
    %c0_i32_1 = arith.constant 0 : i32
    return %c0_i32, %c0_i32_0 : i32, i32
  }
  func.func @transform_3(%arg0: i32) -> (i32, i32) {
    %c0_i32 = arith.constant 0 : i32
    %c0_i32_0 = arith.constant 0 : i32
    %c0_i32_1 = arith.constant 0 : i32
    return %c0_i32, %c0_i32_0 : i32, i32
  }
  func.func @transform_4(%arg0: i32) -> (i32, i32) {
    %c0_i32 = arith.constant 0 : i32
    %c0_i32_0 = arith.constant 0 : i32
    %c0_i32_1 = arith.constant 0 : i32
    return %c0_i32, %c0_i32_0 : i32, i32
  }
  func.func @transform_5(%arg0: i32) -> (i32, i32) {
    %c0_i32 = arith.constant 0 : i32
    %c0_i32_0 = arith.constant 0 : i32
    return %arg0, %c0_i32 : i32, i32
  }
}

module attributes {stable_mosaic.version = 11 : i64} {
  func.func @_mamba_block_kernel(%arg0: i32, %arg1: memref<1x48x16xf32, #tpu.memory_space<vmem>>, %arg2: memref<1x48x16xf32, #tpu.memory_space<vmem>>, %arg3: memref<1x16xf32, #tpu.memory_space<vmem>>, %arg4: memref<1x16xf32, #tpu.memory_space<vmem>>, %arg5: memref<16x64xf32, #tpu.memory_space<vmem>>, %arg6: memref<1x32xf32, #tpu.memory_space<vmem>>, %arg7: memref<1x32xf32, #tpu.memory_space<vmem>>, %arg8: memref<2x32x48xf32, #tpu.memory_space<vmem>>, %arg9: memref<1x64xf32, #tpu.memory_space<vmem>>, %arg10: memref<8x64xf32, #tpu.memory_space<vmem>>, %arg11: memref<1x32xf32, #tpu.memory_space<vmem>>, %arg12: memref<1x32xf32, #tpu.memory_space<vmem>>, %arg13: memref<1x32xf32, #tpu.memory_space<vmem>>, %arg14: memref<32x16xf32, #tpu.memory_space<vmem>>, %arg15: memref<1x48x16xf32, #tpu.memory_space<vmem>>, %arg16: memref<48x8x64xf32, #tpu.memory_space<vmem>>, %arg17: memref<48x8x64xf32, #tpu.memory_space<vmem>>, %arg18: memref<48x8x64xf32, #tpu.memory_space<vmem>>, %arg19: memref<48x32xf32, #tpu.memory_space<vmem>>, %arg20: memref<48x32xf32, #tpu.memory_space<vmem>>) attributes {dimension_semantics = [#tpu.dimension_semantics<parallel>], iteration_bounds = array<i64: 2>, scalar_prefetch = 0 : i64, scratch_operands = 5 : i64, tpu.core_type = #tpu.core_type<tc>, window_params = [{transform_indices = @transform_0, window_bounds = array<i64: 1, 48, 16>}, {transform_indices = @transform_1, window_bounds = array<i64: 1, 48, 16>}, {pipeline_mode = #tpu.pipeline_mode<synchronous>, transform_indices = @transform_2, window_bounds = array<i64: 1, 16>}, {pipeline_mode = #tpu.pipeline_mode<synchronous>, transform_indices = @transform_3, window_bounds = array<i64: 1, 16>}, {pipeline_mode = #tpu.pipeline_mode<synchronous>, transform_indices = @transform_4, window_bounds = array<i64: 16, 64>}, {pipeline_mode = #tpu.pipeline_mode<synchronous>, transform_indices = @transform_5, window_bounds = array<i64: 1, 32>}, {pipeline_mode = #tpu.pipeline_mode<synchronous>, transform_indices = @transform_6, window_bounds = array<i64: 1, 32>}, {pipeline_mode = #tpu.pipeline_mode<synchronous>, transform_indices = @transform_7, window_bounds = array<i64: 2, 32, 48>}, {pipeline_mode = #tpu.pipeline_mode<synchronous>, transform_indices = @transform_8, window_bounds = array<i64: 1, 64>}, {pipeline_mode = #tpu.pipeline_mode<synchronous>, transform_indices = @transform_9, window_bounds = array<i64: 8, 64>}, {pipeline_mode = #tpu.pipeline_mode<synchronous>, transform_indices = @transform_10, window_bounds = array<i64: 1, 32>}, {pipeline_mode = #tpu.pipeline_mode<synchronous>, transform_indices = @transform_11, window_bounds = array<i64: 1, 32>}, {pipeline_mode = #tpu.pipeline_mode<synchronous>, transform_indices = @transform_12, window_bounds = array<i64: 1, 32>}, {pipeline_mode = #tpu.pipeline_mode<synchronous>, transform_indices = @transform_13, window_bounds = array<i64: 32, 16>}, {transform_indices = @transform_14, window_bounds = array<i64: 1, 48, 16>}]} {
    %c0 = arith.constant 0 : index
    %c0_0 = arith.constant 0 : index
    %c0_1 = arith.constant 0 : index
    %0 = vector.load %arg1[%c0, %c0_0, %c0_1] : memref<1x48x16xf32, #tpu.memory_space<vmem>>, vector<1x48x16xf32>
    %1 = vector.shape_cast %0 : vector<1x48x16xf32> to vector<48x16xf32>
    %c0_2 = arith.constant 0 : index
    %c0_3 = arith.constant 0 : index
    %2 = vector.load %arg3[%c0_2, %c0_3] : memref<1x16xf32, #tpu.memory_space<vmem>>, vector<1x16xf32>
    %c0_4 = arith.constant 0 : index
    %c0_5 = arith.constant 0 : index
    %3 = vector.load %arg4[%c0_4, %c0_5] : memref<1x16xf32, #tpu.memory_space<vmem>>, vector<1x16xf32>
    %cst = arith.constant dense<0.000000e+00> : vector<48xf32>
    %4 = vector.multi_reduction <add>, %1, %cst [1] : vector<48x16xf32> to vector<48xf32>
    %5 = vector.shape_cast %4 : vector<48xf32> to vector<48x1xf32>
    %cst_6 = arith.constant 1.600000e+01 : f32
    %6 = vector.broadcast %cst_6 : f32 to vector<48x1xf32>
    %7 = arith.divf %5, %6 : vector<48x1xf32>
    %8 = vector.broadcast %7 : vector<48x1xf32> to vector<48x16xf32>
    %9 = arith.subf %1, %8 : vector<48x16xf32>
    %10 = arith.mulf %9, %9 : vector<48x16xf32>
    %cst_7 = arith.constant dense<0.000000e+00> : vector<48xf32>
    %11 = vector.multi_reduction <add>, %10, %cst_7 [1] : vector<48x16xf32> to vector<48xf32>
    %12 = vector.shape_cast %11 : vector<48xf32> to vector<48x1xf32>
    %cst_8 = arith.constant 1.600000e+01 : f32
    %13 = vector.broadcast %cst_8 : f32 to vector<48x1xf32>
    %14 = arith.divf %12, %13 : vector<48x1xf32>
    %15 = vector.broadcast %7 : vector<48x1xf32> to vector<48x16xf32>
    %16 = arith.subf %1, %15 : vector<48x16xf32>
    %cst_9 = arith.constant 9.99999974E-6 : f32
    %17 = vector.broadcast %cst_9 : f32 to vector<48x1xf32>
    %18 = arith.addf %14, %17 : vector<48x1xf32>
    %19 = math.rsqrt %18 : vector<48x1xf32>
    %20 = vector.broadcast %19 : vector<48x1xf32> to vector<48x16xf32>
    %21 = arith.mulf %16, %20 : vector<48x16xf32>
    %22 = vector.broadcast %2 : vector<1x16xf32> to vector<48x16xf32>
    %23 = arith.mulf %21, %22 : vector<48x16xf32>
    %24 = vector.broadcast %3 : vector<1x16xf32> to vector<48x16xf32>
    %25 = arith.addf %23, %24 : vector<48x16xf32>
    %c0_10 = arith.constant 0 : index
    %c0_11 = arith.constant 0 : index
    %26 = vector.load %arg5[%c0_10, %c0_11] : memref<16x64xf32, #tpu.memory_space<vmem>>, vector<16x64xf32>
    %27 = arith.truncf %26 : vector<16x64xf32> to vector<16x64xbf16>
    %28 = arith.truncf %25 : vector<48x16xf32> to vector<48x16xbf16>
    %cst_12 = arith.constant dense<0.000000e+00> : vector<48x64xf32>
    %29 = tpu.matmul %28, %27, %cst_12 {dimension_numbers = #tpu.dot_dimension_numbers<[1], [0], [0], [1], [0, 0, 1, 1], [], []>} : vector<48x16xbf16>, vector<16x64xbf16>, vector<48x64xf32> -> vector<48x64xf32>
    %30 = vector.extract_strided_slice %29 {offsets = [0, 32], sizes = [48, 32], strides = [1, 1]} : vector<48x64xf32> to vector<48x32xf32>
    %cst_13 = arith.constant 0.000000e+00 : f32
    %31 = vector.broadcast %cst_13 : f32 to vector<48x32xf32>
    %32 = arith.subf %31, %30 : vector<48x32xf32>
    %33 = math.exp %32 : vector<48x32xf32>
    %cst_14 = arith.constant 1.000000e+00 : f32
    %34 = vector.broadcast %cst_14 : f32 to vector<48x32xf32>
    %35 = arith.addf %34, %33 : vector<48x32xf32>
    %36 = tpu.reciprocal %35 {approx = true} : vector<48x32xf32> -> vector<48x32xf32>
    %37 = arith.mulf %30, %36 : vector<48x32xf32>
    %38 = vector.extract_strided_slice %29 {offsets = [0, 0], sizes = [48, 32], strides = [1, 1]} : vector<48x64xf32> to vector<48x32xf32>
    %c0_15 = arith.constant 0 : index
    %c0_16 = arith.constant 0 : index
    %39 = vector.load %arg6[%c0_15, %c0_16] : memref<1x32xf32, #tpu.memory_space<vmem>>, vector<1x32xf32>
    %40 = vector.broadcast %39 : vector<1x32xf32> to vector<48x32xf32>
    %41 = arith.mulf %38, %40 : vector<48x32xf32>
    %c0_17 = arith.constant 0 : index
    %c0_18 = arith.constant 0 : index
    %42 = vector.load %arg7[%c0_17, %c0_18] : memref<1x32xf32, #tpu.memory_space<vmem>>, vector<1x32xf32>
    %43 = vector.broadcast %42 : vector<1x32xf32> to vector<48x32xf32>
    %44 = arith.addf %41, %43 : vector<48x32xf32>
    %cst_19 = arith.constant 0.000000e+00 : f32
    %45 = vector.broadcast %cst_19 : f32 to vector<48x32xf32>
    %46 = arith.subf %45, %44 : vector<48x32xf32>
    %47 = math.exp %46 : vector<48x32xf32>
    %cst_20 = arith.constant 1.000000e+00 : f32
    %48 = vector.broadcast %cst_20 : f32 to vector<48x32xf32>
    %49 = arith.addf %48, %47 : vector<48x32xf32>
    %50 = tpu.reciprocal %49 {approx = true} : vector<48x32xf32> -> vector<48x32xf32>
    %51 = arith.mulf %44, %50 : vector<48x32xf32>
    %c0_21 = arith.constant 0 : index
    %c0_22 = arith.constant 0 : index
    %c0_23 = arith.constant 0 : index
    %52 = vector.load %arg2[%c0_21, %c0_22, %c0_23] : memref<1x48x16xf32, #tpu.memory_space<vmem>>, vector<1x48x16xf32>
    %53 = vector.shape_cast %52 : vector<1x48x16xf32> to vector<48x16xf32>
    %c0_24 = arith.constant 0 : index
    %c0_25 = arith.constant 0 : index
    %54 = vector.load %arg3[%c0_24, %c0_25] : memref<1x16xf32, #tpu.memory_space<vmem>>, vector<1x16xf32>
    %c0_26 = arith.constant 0 : index
    %c0_27 = arith.constant 0 : index
    %55 = vector.load %arg4[%c0_26, %c0_27] : memref<1x16xf32, #tpu.memory_space<vmem>>, vector<1x16xf32>
    %cst_28 = arith.constant dense<0.000000e+00> : vector<48xf32>
    %56 = vector.multi_reduction <add>, %53, %cst_28 [1] : vector<48x16xf32> to vector<48xf32>
    %57 = vector.shape_cast %56 : vector<48xf32> to vector<48x1xf32>
    %cst_29 = arith.constant 1.600000e+01 : f32
    %58 = vector.broadcast %cst_29 : f32 to vector<48x1xf32>
    %59 = arith.divf %57, %58 : vector<48x1xf32>
    %60 = vector.broadcast %59 : vector<48x1xf32> to vector<48x16xf32>
    %61 = arith.subf %53, %60 : vector<48x16xf32>
    %62 = arith.mulf %61, %61 : vector<48x16xf32>
    %cst_30 = arith.constant dense<0.000000e+00> : vector<48xf32>
    %63 = vector.multi_reduction <add>, %62, %cst_30 [1] : vector<48x16xf32> to vector<48xf32>
    %64 = vector.shape_cast %63 : vector<48xf32> to vector<48x1xf32>
    %cst_31 = arith.constant 1.600000e+01 : f32
    %65 = vector.broadcast %cst_31 : f32 to vector<48x1xf32>
    %66 = arith.divf %64, %65 : vector<48x1xf32>
    %67 = vector.broadcast %59 : vector<48x1xf32> to vector<48x16xf32>
    %68 = arith.subf %53, %67 : vector<48x16xf32>
    %cst_32 = arith.constant 9.99999974E-6 : f32
    %69 = vector.broadcast %cst_32 : f32 to vector<48x1xf32>
    %70 = arith.addf %66, %69 : vector<48x1xf32>
    %71 = math.rsqrt %70 : vector<48x1xf32>
    %72 = vector.broadcast %71 : vector<48x1xf32> to vector<48x16xf32>
    %73 = arith.mulf %68, %72 : vector<48x16xf32>
    %74 = vector.broadcast %54 : vector<1x16xf32> to vector<48x16xf32>
    %75 = arith.mulf %73, %74 : vector<48x16xf32>
    %76 = vector.broadcast %55 : vector<1x16xf32> to vector<48x16xf32>
    %77 = arith.addf %75, %76 : vector<48x16xf32>
    %78 = arith.truncf %77 : vector<48x16xf32> to vector<48x16xbf16>
    %cst_33 = arith.constant dense<0.000000e+00> : vector<48x64xf32>
    %79 = tpu.matmul %78, %27, %cst_33 {dimension_numbers = #tpu.dot_dimension_numbers<[1], [0], [0], [1], [0, 0, 1, 1], [], []>} : vector<48x16xbf16>, vector<16x64xbf16>, vector<48x64xf32> -> vector<48x64xf32>
    %80 = vector.extract_strided_slice %79 {offsets = [0, 0], sizes = [48, 32], strides = [1, 1]} : vector<48x64xf32> to vector<48x32xf32>
    %c0_34 = arith.constant 0 : index
    %c0_35 = arith.constant 0 : index
    %81 = vector.load %arg6[%c0_34, %c0_35] : memref<1x32xf32, #tpu.memory_space<vmem>>, vector<1x32xf32>
    %82 = vector.broadcast %81 : vector<1x32xf32> to vector<48x32xf32>
    %83 = arith.mulf %80, %82 : vector<48x32xf32>
    %c0_36 = arith.constant 0 : index
    %c0_37 = arith.constant 0 : index
    %84 = vector.load %arg7[%c0_36, %c0_37] : memref<1x32xf32, #tpu.memory_space<vmem>>, vector<1x32xf32>
    %85 = vector.broadcast %84 : vector<1x32xf32> to vector<48x32xf32>
    %86 = arith.addf %83, %85 : vector<48x32xf32>
    %cst_38 = arith.constant 0.000000e+00 : f32
    %87 = vector.broadcast %cst_38 : f32 to vector<48x32xf32>
    %88 = arith.subf %87, %86 : vector<48x32xf32>
    %89 = math.exp %88 : vector<48x32xf32>
    %cst_39 = arith.constant 1.000000e+00 : f32
    %90 = vector.broadcast %cst_39 : f32 to vector<48x32xf32>
    %91 = arith.addf %90, %89 : vector<48x32xf32>
    %92 = tpu.reciprocal %91 {approx = true} : vector<48x32xf32> -> vector<48x32xf32>
    %93 = arith.mulf %86, %92 : vector<48x32xf32>
    %94 = arith.truncf %51 : vector<48x32xf32> to vector<48x32xbf16>
    %c0_40 = arith.constant 0 : index
    %c0_41 = arith.constant 0 : index
    %c0_42 = arith.constant 0 : index
    %95 = vector.load %arg8[%c0_40, %c0_41, %c0_42] : memref<2x32x48xf32, #tpu.memory_space<vmem>>, vector<1x32x48xf32>
    %96 = vector.shape_cast %95 : vector<1x32x48xf32> to vector<32x48xf32>
    %97 = arith.truncf %96 : vector<32x48xf32> to vector<32x48xbf16>
    %cst_43 = arith.constant dense<0.000000e+00> : vector<48x48xf32>
    %98 = tpu.matmul %94, %97, %cst_43 {dimension_numbers = #tpu.dot_dimension_numbers<[1], [0], [0], [1], [0, 0, 1, 1], [], []>} : vector<48x32xbf16>, vector<32x48xbf16>, vector<48x48xf32> -> vector<48x48xf32>
    %99 = arith.truncf %93 : vector<48x32xf32> to vector<48x32xbf16>
    %c1 = arith.constant 1 : index
    %c0_44 = arith.constant 0 : index
    %c0_45 = arith.constant 0 : index
    %100 = vector.load %arg8[%c1, %c0_44, %c0_45] : memref<2x32x48xf32, #tpu.memory_space<vmem>>, vector<1x32x48xf32>
    %101 = vector.shape_cast %100 : vector<1x32x48xf32> to vector<32x48xf32>
    %102 = arith.truncf %101 : vector<32x48xf32> to vector<32x48xbf16>
    %cst_46 = arith.constant dense<0.000000e+00> : vector<48x48xf32>
    %103 = tpu.matmul %99, %102, %cst_46 {dimension_numbers = #tpu.dot_dimension_numbers<[1], [0], [0], [1], [0, 0, 1, 1], [], []>} : vector<48x32xbf16>, vector<32x48xbf16>, vector<48x48xf32> -> vector<48x48xf32>
    %104 = vector.extract_strided_slice %98 {offsets = [0, 0], sizes = [48, 32], strides = [1, 1]} : vector<48x48xf32> to vector<48x32xf32>
    %105 = vector.extract_strided_slice %103 {offsets = [0, 0], sizes = [48, 32], strides = [1, 1]} : vector<48x48xf32> to vector<48x32xf32>
    %106 = tpu.concatenate %104, %105 in 1 : vector<48x32xf32>, vector<48x32xf32> -> vector<48x64xf32>
    %c0_47 = arith.constant 0 : index
    %c0_48 = arith.constant 0 : index
    %107 = vector.load %arg9[%c0_47, %c0_48] : memref<1x64xf32, #tpu.memory_space<vmem>>, vector<1x64xf32>
    %108 = vector.broadcast %107 : vector<1x64xf32> to vector<48x64xf32>
    %109 = arith.addf %106, %108 : vector<48x64xf32>
    %cst_49 = arith.constant 0.000000e+00 : f32
    %110 = vector.broadcast %cst_49 : f32 to vector<48x64xf32>
    %111 = arith.maximumf %109, %110 : vector<48x64xf32>
    %112 = math.absf %109 : vector<48x64xf32>
    %cst_50 = arith.constant 0.000000e+00 : f32
    %113 = vector.broadcast %cst_50 : f32 to vector<48x64xf32>
    %114 = arith.subf %113, %112 : vector<48x64xf32>
    %115 = math.exp %114 : vector<48x64xf32>
    %cst_51 = arith.constant 1.000000e+00 : f32
    %116 = vector.broadcast %cst_51 : f32 to vector<48x64xf32>
    %117 = arith.addf %116, %115 : vector<48x64xf32>
    %118 = math.log %117 : vector<48x64xf32>
    %119 = arith.addf %111, %118 : vector<48x64xf32>
    %120 = vector.extract_strided_slice %98 {offsets = [0, 32], sizes = [48, 8], strides = [1, 1]} : vector<48x48xf32> to vector<48x8xf32>
    %121 = vector.extract_strided_slice %98 {offsets = [0, 40], sizes = [48, 8], strides = [1, 1]} : vector<48x48xf32> to vector<48x8xf32>
    %122 = vector.extract_strided_slice %103 {offsets = [0, 32], sizes = [48, 8], strides = [1, 1]} : vector<48x48xf32> to vector<48x8xf32>
    %123 = vector.extract_strided_slice %103 {offsets = [0, 40], sizes = [48, 8], strides = [1, 1]} : vector<48x48xf32> to vector<48x8xf32>
    %124 = tpu.concatenate %51, %93 in 1 : vector<48x32xf32>, vector<48x32xf32> -> vector<48x64xf32>
    %125 = arith.mulf %119, %124 : vector<48x64xf32>
    %126 = vector.shape_cast %119 : vector<48x64xf32> to vector<48x1x64xf32>
    %c0_52 = arith.constant 0 : index
    %c0_53 = arith.constant 0 : index
    %127 = vector.load %arg10[%c0_52, %c0_53] : memref<8x64xf32, #tpu.memory_space<vmem>>, vector<8x64xf32>
    %128 = vector.shape_cast %127 : vector<8x64xf32> to vector<1x8x64xf32>
    %129 = vector.broadcast %126 : vector<48x1x64xf32> to vector<48x8x64xf32>
    %130 = vector.broadcast %128 : vector<1x8x64xf32> to vector<48x8x64xf32>
    %131 = arith.mulf %129, %130 : vector<48x8x64xf32>
    %132 = math.exp %131 : vector<48x8x64xf32>
    %c0_54 = arith.constant 0 : index
    %c0_55 = arith.constant 0 : index
    %c0_56 = arith.constant 0 : index
    %133 = vector.load %arg16[%c0_54, %c0_55, %c0_56] : memref<48x8x64xf32, #tpu.memory_space<vmem>>, vector<48x8x64xf32>
    tpu.vector_store %arg16[%c0_54, %c0_55, %c0_56], %132 {strides = array<i32>} : memref<48x8x64xf32, #tpu.memory_space<vmem>>, vector<48x8x64xf32>,
    %134 = vector.shape_cast %120 : vector<48x8xf32> to vector<48x8x1xf32>
    %135 = vector.shape_cast %134 : vector<48x8x1xf32> to vector<48x8x1xf32>
    %136 = vector.broadcast %135 : vector<48x8x1xf32> to vector<48x8x32xf32>
    %137 = vector.shape_cast %122 : vector<48x8xf32> to vector<48x8x1xf32>
    %138 = vector.shape_cast %137 : vector<48x8x1xf32> to vector<48x8x1xf32>
    %139 = vector.broadcast %138 : vector<48x8x1xf32> to vector<48x8x32xf32>
    %140 = tpu.concatenate %136, %139 in 2 : vector<48x8x32xf32>, vector<48x8x32xf32> -> vector<48x8x64xf32>
    %141 = vector.shape_cast %125 : vector<48x64xf32> to vector<48x1x64xf32>
    %142 = vector.broadcast %141 : vector<48x1x64xf32> to vector<48x8x64xf32>
    %143 = arith.mulf %142, %140 : vector<48x8x64xf32>
    %c0_57 = arith.constant 0 : index
    %c0_58 = arith.constant 0 : index
    %c0_59 = arith.constant 0 : index
    %144 = vector.load %arg17[%c0_57, %c0_58, %c0_59] : memref<48x8x64xf32, #tpu.memory_space<vmem>>, vector<48x8x64xf32>
    tpu.vector_store %arg17[%c0_57, %c0_58, %c0_59], %143 {strides = array<i32>} : memref<48x8x64xf32, #tpu.memory_space<vmem>>, vector<48x8x64xf32>,
    %145 = vector.shape_cast %121 : vector<48x8xf32> to vector<48x8x1xf32>
    %146 = vector.shape_cast %145 : vector<48x8x1xf32> to vector<48x8x1xf32>
    %147 = vector.broadcast %146 : vector<48x8x1xf32> to vector<48x8x32xf32>
    %148 = vector.shape_cast %123 : vector<48x8xf32> to vector<48x8x1xf32>
    %149 = vector.shape_cast %148 : vector<48x8x1xf32> to vector<48x8x1xf32>
    %150 = vector.broadcast %149 : vector<48x8x1xf32> to vector<48x8x32xf32>
    %151 = tpu.concatenate %147, %150 in 2 : vector<48x8x32xf32>, vector<48x8x32xf32> -> vector<48x8x64xf32>
    %c0_60 = arith.constant 0 : index
    %c0_61 = arith.constant 0 : index
    %c0_62 = arith.constant 0 : index
    %152 = vector.load %arg18[%c0_60, %c0_61, %c0_62] : memref<48x8x64xf32, #tpu.memory_space<vmem>>, vector<48x8x64xf32>
    tpu.vector_store %arg18[%c0_60, %c0_61, %c0_62], %151 {strides = array<i32>} : memref<48x8x64xf32, #tpu.memory_space<vmem>>, vector<48x8x64xf32>,
    %cst_63 = arith.constant 0.000000e+00 : f32
    %153 = vector.broadcast %cst_63 : f32 to vector<8x64xf32>
    %c0_i32 = arith.constant 0 : i32
    %c6_i32 = arith.constant 6 : i32
    %154 = arith.addi %c0_i32, %c6_i32 : i32
    %c1_i32 = arith.constant 1 : i32
    %155 = scf.for %arg21 = %c0_i32 to %154 step %c1_i32 iter_args(%arg22 = %153) -> (vector<8x64xf32>)  : i32 {
      %c8_i32 = arith.constant 8 : i32
      %196 = arith.muli %arg21, %c8_i32 : i32
      %197 = tpu.assume_multiple %196, 8 : i32
      %c0_i32_86 = arith.constant 0 : i32
      %198 = arith.addi %197, %c0_i32_86 : i32
      %199 = arith.index_cast %198 : i32 to index
      %c0_87 = arith.constant 0 : index
      %c0_88 = arith.constant 0 : index
      %200 = vector.load %arg16[%199, %c0_87, %c0_88] : memref<48x8x64xf32, #tpu.memory_space<vmem>>, vector<1x8x64xf32>
      %201 = vector.shape_cast %200 : vector<1x8x64xf32> to vector<8x64xf32>
      %202 = arith.mulf %201, %arg22 : vector<8x64xf32>
      %c0_i32_89 = arith.constant 0 : i32
      %203 = arith.addi %197, %c0_i32_89 : i32
      %204 = arith.index_cast %203 : i32 to index
      %c0_90 = arith.constant 0 : index
      %c0_91 = arith.constant 0 : index
      %205 = vector.load %arg17[%204, %c0_90, %c0_91] : memref<48x8x64xf32, #tpu.memory_space<vmem>>, vector<1x8x64xf32>
      %206 = vector.shape_cast %205 : vector<1x8x64xf32> to vector<8x64xf32>
      %207 = arith.addf %202, %206 : vector<8x64xf32>
      %c0_i32_92 = arith.constant 0 : i32
      %208 = arith.addi %197, %c0_i32_92 : i32
      %209 = arith.index_cast %208 : i32 to index
      %c0_93 = arith.constant 0 : index
      %c0_94 = arith.constant 0 : index
      %210 = vector.load %arg18[%209, %c0_93, %c0_94] : memref<48x8x64xf32, #tpu.memory_space<vmem>>, vector<1x8x64xf32>
      %211 = vector.shape_cast %210 : vector<1x8x64xf32> to vector<8x64xf32>
      %212 = arith.mulf %207, %211 : vector<8x64xf32>
      %cst_95 = arith.constant dense<0.000000e+00> : vector<64xf32>
      %213 = vector.multi_reduction <add>, %212, %cst_95 [0] : vector<8x64xf32> to vector<64xf32>
      %214 = vector.shape_cast %213 : vector<64xf32> to vector<1x64xf32>
      %c1_i32_96 = arith.constant 1 : i32
      %215 = arith.addi %197, %c1_i32_96 : i32
      %216 = arith.index_cast %215 : i32 to index
      %c0_97 = arith.constant 0 : index
      %c0_98 = arith.constant 0 : index
      %217 = vector.load %arg16[%216, %c0_97, %c0_98] : memref<48x8x64xf32, #tpu.memory_space<vmem>>, vector<1x8x64xf32>
      %218 = vector.shape_cast %217 : vector<1x8x64xf32> to vector<8x64xf32>
      %219 = arith.mulf %218, %207 : vector<8x64xf32>
      %c1_i32_99 = arith.constant 1 : i32
      %220 = arith.addi %197, %c1_i32_99 : i32
      %221 = arith.index_cast %220 : i32 to index
      %c0_100 = arith.constant 0 : index
      %c0_101 = arith.constant 0 : index
      %222 = vector.load %arg17[%221, %c0_100, %c0_101] : memref<48x8x64xf32, #tpu.memory_space<vmem>>, vector<1x8x64xf32>
      %223 = vector.shape_cast %222 : vector<1x8x64xf32> to vector<8x64xf32>
      %224 = arith.addf %219, %223 : vector<8x64xf32>
      %c1_i32_102 = arith.constant 1 : i32
      %225 = arith.addi %197, %c1_i32_102 : i32
      %226 = arith.index_cast %225 : i32 to index
      %c0_103 = arith.constant 0 : index
      %c0_104 = arith.constant 0 : index
      %227 = vector.load %arg18[%226, %c0_103, %c0_104] : memref<48x8x64xf32, #tpu.memory_space<vmem>>, vector<1x8x64xf32>
      %228 = vector.shape_cast %227 : vector<1x8x64xf32> to vector<8x64xf32>
      %229 = arith.mulf %224, %228 : vector<8x64xf32>
      %cst_105 = arith.constant dense<0.000000e+00> : vector<64xf32>
      %230 = vector.multi_reduction <add>, %229, %cst_105 [0] : vector<8x64xf32> to vector<64xf32>
      %231 = vector.shape_cast %230 : vector<64xf32> to vector<1x64xf32>
      %c2_i32 = arith.constant 2 : i32
      %232 = arith.addi %197, %c2_i32 : i32
      %233 = arith.index_cast %232 : i32 to index
      %c0_106 = arith.constant 0 : index
      %c0_107 = arith.constant 0 : index
      %234 = vector.load %arg16[%233, %c0_106, %c0_107] : memref<48x8x64xf32, #tpu.memory_space<vmem>>, vector<1x8x64xf32>
      %235 = vector.shape_cast %234 : vector<1x8x64xf32> to vector<8x64xf32>
      %236 = arith.mulf %235, %224 : vector<8x64xf32>
      %c2_i32_108 = arith.constant 2 : i32
      %237 = arith.addi %197, %c2_i32_108 : i32
      %238 = arith.index_cast %237 : i32 to index
      %c0_109 = arith.constant 0 : index
      %c0_110 = arith.constant 0 : index
      %239 = vector.load %arg17[%238, %c0_109, %c0_110] : memref<48x8x64xf32, #tpu.memory_space<vmem>>, vector<1x8x64xf32>
      %240 = vector.shape_cast %239 : vector<1x8x64xf32> to vector<8x64xf32>
      %241 = arith.addf %236, %240 : vector<8x64xf32>
      %c2_i32_111 = arith.constant 2 : i32
      %242 = arith.addi %197, %c2_i32_111 : i32
      %243 = arith.index_cast %242 : i32 to index
      %c0_112 = arith.constant 0 : index
      %c0_113 = arith.constant 0 : index
      %244 = vector.load %arg18[%243, %c0_112, %c0_113] : memref<48x8x64xf32, #tpu.memory_space<vmem>>, vector<1x8x64xf32>
      %245 = vector.shape_cast %244 : vector<1x8x64xf32> to vector<8x64xf32>
      %246 = arith.mulf %241, %245 : vector<8x64xf32>
      %cst_114 = arith.constant dense<0.000000e+00> : vector<64xf32>
      %247 = vector.multi_reduction <add>, %246, %cst_114 [0] : vector<8x64xf32> to vector<64xf32>
      %248 = vector.shape_cast %247 : vector<64xf32> to vector<1x64xf32>
      %c3_i32 = arith.constant 3 : i32
      %249 = arith.addi %197, %c3_i32 : i32
      %250 = arith.index_cast %249 : i32 to index
      %c0_115 = arith.constant 0 : index
      %c0_116 = arith.constant 0 : index
      %251 = vector.load %arg16[%250, %c0_115, %c0_116] : memref<48x8x64xf32, #tpu.memory_space<vmem>>, vector<1x8x64xf32>
      %252 = vector.shape_cast %251 : vector<1x8x64xf32> to vector<8x64xf32>
      %253 = arith.mulf %252, %241 : vector<8x64xf32>
      %c3_i32_117 = arith.constant 3 : i32
      %254 = arith.addi %197, %c3_i32_117 : i32
      %255 = arith.index_cast %254 : i32 to index
      %c0_118 = arith.constant 0 : index
      %c0_119 = arith.constant 0 : index
      %256 = vector.load %arg17[%255, %c0_118, %c0_119] : memref<48x8x64xf32, #tpu.memory_space<vmem>>, vector<1x8x64xf32>
      %257 = vector.shape_cast %256 : vector<1x8x64xf32> to vector<8x64xf32>
      %258 = arith.addf %253, %257 : vector<8x64xf32>
      %c3_i32_120 = arith.constant 3 : i32
      %259 = arith.addi %197, %c3_i32_120 : i32
      %260 = arith.index_cast %259 : i32 to index
      %c0_121 = arith.constant 0 : index
      %c0_122 = arith.constant 0 : index
      %261 = vector.load %arg18[%260, %c0_121, %c0_122] : memref<48x8x64xf32, #tpu.memory_space<vmem>>, vector<1x8x64xf32>
      %262 = vector.shape_cast %261 : vector<1x8x64xf32> to vector<8x64xf32>
      %263 = arith.mulf %258, %262 : vector<8x64xf32>
      %cst_123 = arith.constant dense<0.000000e+00> : vector<64xf32>
      %264 = vector.multi_reduction <add>, %263, %cst_123 [0] : vector<8x64xf32> to vector<64xf32>
      %265 = vector.shape_cast %264 : vector<64xf32> to vector<1x64xf32>
      %c4_i32 = arith.constant 4 : i32
      %266 = arith.addi %197, %c4_i32 : i32
      %267 = arith.index_cast %266 : i32 to index
      %c0_124 = arith.constant 0 : index
      %c0_125 = arith.constant 0 : index
      %268 = vector.load %arg16[%267, %c0_124, %c0_125] : memref<48x8x64xf32, #tpu.memory_space<vmem>>, vector<1x8x64xf32>
      %269 = vector.shape_cast %268 : vector<1x8x64xf32> to vector<8x64xf32>
      %270 = arith.mulf %269, %258 : vector<8x64xf32>
      %c4_i32_126 = arith.constant 4 : i32
      %271 = arith.addi %197, %c4_i32_126 : i32
      %272 = arith.index_cast %271 : i32 to index
      %c0_127 = arith.constant 0 : index
      %c0_128 = arith.constant 0 : index
      %273 = vector.load %arg17[%272, %c0_127, %c0_128] : memref<48x8x64xf32, #tpu.memory_space<vmem>>, vector<1x8x64xf32>
      %274 = vector.shape_cast %273 : vector<1x8x64xf32> to vector<8x64xf32>
      %275 = arith.addf %270, %274 : vector<8x64xf32>
      %c4_i32_129 = arith.constant 4 : i32
      %276 = arith.addi %197, %c4_i32_129 : i32
      %277 = arith.index_cast %276 : i32 to index
      %c0_130 = arith.constant 0 : index
      %c0_131 = arith.constant 0 : index
      %278 = vector.load %arg18[%277, %c0_130, %c0_131] : memref<48x8x64xf32, #tpu.memory_space<vmem>>, vector<1x8x64xf32>
      %279 = vector.shape_cast %278 : vector<1x8x64xf32> to vector<8x64xf32>
      %280 = arith.mulf %275, %279 : vector<8x64xf32>
      %cst_132 = arith.constant dense<0.000000e+00> : vector<64xf32>
      %281 = vector.multi_reduction <add>, %280, %cst_132 [0] : vector<8x64xf32> to vector<64xf32>
      %282 = vector.shape_cast %281 : vector<64xf32> to vector<1x64xf32>
      %c5_i32 = arith.constant 5 : i32
      %283 = arith.addi %197, %c5_i32 : i32
      %284 = arith.index_cast %283 : i32 to index
      %c0_133 = arith.constant 0 : index
      %c0_134 = arith.constant 0 : index
      %285 = vector.load %arg16[%284, %c0_133, %c0_134] : memref<48x8x64xf32, #tpu.memory_space<vmem>>, vector<1x8x64xf32>
      %286 = vector.shape_cast %285 : vector<1x8x64xf32> to vector<8x64xf32>
      %287 = arith.mulf %286, %275 : vector<8x64xf32>
      %c5_i32_135 = arith.constant 5 : i32
      %288 = arith.addi %197, %c5_i32_135 : i32
      %289 = arith.index_cast %288 : i32 to index
      %c0_136 = arith.constant 0 : index
      %c0_137 = arith.constant 0 : index
      %290 = vector.load %arg17[%289, %c0_136, %c0_137] : memref<48x8x64xf32, #tpu.memory_space<vmem>>, vector<1x8x64xf32>
      %291 = vector.shape_cast %290 : vector<1x8x64xf32> to vector<8x64xf32>
      %292 = arith.addf %287, %291 : vector<8x64xf32>
      %c5_i32_138 = arith.constant 5 : i32
      %293 = arith.addi %197, %c5_i32_138 : i32
      %294 = arith.index_cast %293 : i32 to index
      %c0_139 = arith.constant 0 : index
      %c0_140 = arith.constant 0 : index
      %295 = vector.load %arg18[%294, %c0_139, %c0_140] : memref<48x8x64xf32, #tpu.memory_space<vmem>>, vector<1x8x64xf32>
      %296 = vector.shape_cast %295 : vector<1x8x64xf32> to vector<8x64xf32>
      %297 = arith.mulf %292, %296 : vector<8x64xf32>
      %cst_141 = arith.constant dense<0.000000e+00> : vector<64xf32>
      %298 = vector.multi_reduction <add>, %297, %cst_141 [0] : vector<8x64xf32> to vector<64xf32>
      %299 = vector.shape_cast %298 : vector<64xf32> to vector<1x64xf32>
      %c6_i32_142 = arith.constant 6 : i32
      %300 = arith.addi %197, %c6_i32_142 : i32
      %301 = arith.index_cast %300 : i32 to index
      %c0_143 = arith.constant 0 : index
      %c0_144 = arith.constant 0 : index
      %302 = vector.load %arg16[%301, %c0_143, %c0_144] : memref<48x8x64xf32, #tpu.memory_space<vmem>>, vector<1x8x64xf32>
      %303 = vector.shape_cast %302 : vector<1x8x64xf32> to vector<8x64xf32>
      %304 = arith.mulf %303, %292 : vector<8x64xf32>
      %c6_i32_145 = arith.constant 6 : i32
      %305 = arith.addi %197, %c6_i32_145 : i32
      %306 = arith.index_cast %305 : i32 to index
      %c0_146 = arith.constant 0 : index
      %c0_147 = arith.constant 0 : index
      %307 = vector.load %arg17[%306, %c0_146, %c0_147] : memref<48x8x64xf32, #tpu.memory_space<vmem>>, vector<1x8x64xf32>
      %308 = vector.shape_cast %307 : vector<1x8x64xf32> to vector<8x64xf32>
      %309 = arith.addf %304, %308 : vector<8x64xf32>
      %c6_i32_148 = arith.constant 6 : i32
      %310 = arith.addi %197, %c6_i32_148 : i32
      %311 = arith.index_cast %310 : i32 to index
      %c0_149 = arith.constant 0 : index
      %c0_150 = arith.constant 0 : index
      %312 = vector.load %arg18[%311, %c0_149, %c0_150] : memref<48x8x64xf32, #tpu.memory_space<vmem>>, vector<1x8x64xf32>
      %313 = vector.shape_cast %312 : vector<1x8x64xf32> to vector<8x64xf32>
      %314 = arith.mulf %309, %313 : vector<8x64xf32>
      %cst_151 = arith.constant dense<0.000000e+00> : vector<64xf32>
      %315 = vector.multi_reduction <add>, %314, %cst_151 [0] : vector<8x64xf32> to vector<64xf32>
      %316 = vector.shape_cast %315 : vector<64xf32> to vector<1x64xf32>
      %c7_i32 = arith.constant 7 : i32
      %317 = arith.addi %197, %c7_i32 : i32
      %318 = arith.index_cast %317 : i32 to index
      %c0_152 = arith.constant 0 : index
      %c0_153 = arith.constant 0 : index
      %319 = vector.load %arg16[%318, %c0_152, %c0_153] : memref<48x8x64xf32, #tpu.memory_space<vmem>>, vector<1x8x64xf32>
      %320 = vector.shape_cast %319 : vector<1x8x64xf32> to vector<8x64xf32>
      %321 = arith.mulf %320, %309 : vector<8x64xf32>
      %c7_i32_154 = arith.constant 7 : i32
      %322 = arith.addi %197, %c7_i32_154 : i32
      %323 = arith.index_cast %322 : i32 to index
      %c0_155 = arith.constant 0 : index
      %c0_156 = arith.constant 0 : index
      %324 = vector.load %arg17[%323, %c0_155, %c0_156] : memref<48x8x64xf32, #tpu.memory_space<vmem>>, vector<1x8x64xf32>
      %325 = vector.shape_cast %324 : vector<1x8x64xf32> to vector<8x64xf32>
      %326 = arith.addf %321, %325 : vector<8x64xf32>
      %c7_i32_157 = arith.constant 7 : i32
      %327 = arith.addi %197, %c7_i32_157 : i32
      %328 = arith.index_cast %327 : i32 to index
      %c0_158 = arith.constant 0 : index
      %c0_159 = arith.constant 0 : index
      %329 = vector.load %arg18[%328, %c0_158, %c0_159] : memref<48x8x64xf32, #tpu.memory_space<vmem>>, vector<1x8x64xf32>
      %330 = vector.shape_cast %329 : vector<1x8x64xf32> to vector<8x64xf32>
      %331 = arith.mulf %326, %330 : vector<8x64xf32>
      %cst_160 = arith.constant dense<0.000000e+00> : vector<64xf32>
      %332 = vector.multi_reduction <add>, %331, %cst_160 [0] : vector<8x64xf32> to vector<64xf32>
      %333 = vector.shape_cast %332 : vector<64xf32> to vector<1x64xf32>
      %334 = tpu.concatenate %214, %231, %248, %265, %282, %299, %316, %333 in 0 : vector<1x64xf32>, vector<1x64xf32>, vector<1x64xf32>, vector<1x64xf32>, vector<1x64xf32>, vector<1x64xf32>, vector<1x64xf32>, vector<1x64xf32> -> vector<8x64xf32>
      %335 = vector.extract_strided_slice %334 {offsets = [0, 0], sizes = [8, 32], strides = [1, 1]} : vector<8x64xf32> to vector<8x32xf32>
      %336 = arith.index_cast %197 : i32 to index
      %c0_161 = arith.constant 0 : index
      %337 = vector.load %arg19[%336, %c0_161] : memref<48x32xf32, #tpu.memory_space<vmem>>, vector<8x32xf32>
      tpu.vector_store %arg19[%336, %c0_161], %335 {strides = array<i32>} : memref<48x32xf32, #tpu.memory_space<vmem>>, vector<8x32xf32>,
      %338 = tpu.concatenate %333, %316, %299, %282, %265, %248, %231, %214 in 0 : vector<1x64xf32>, vector<1x64xf32>, vector<1x64xf32>, vector<1x64xf32>, vector<1x64xf32>, vector<1x64xf32>, vector<1x64xf32>, vector<1x64xf32> -> vector<8x64xf32>
      %339 = vector.extract_strided_slice %338 {offsets = [0, 32], sizes = [8, 32], strides = [1, 1]} : vector<8x64xf32> to vector<8x32xf32>
      %c40_i32 = arith.constant 40 : i32
      %340 = arith.subi %c40_i32, %197 : i32
      %341 = tpu.assume_multiple %340, 8 : i32
      %342 = arith.index_cast %341 : i32 to index
      %c0_162 = arith.constant 0 : index
      %343 = vector.load %arg20[%342, %c0_162] : memref<48x32xf32, #tpu.memory_space<vmem>>, vector<8x32xf32>
      tpu.vector_store %arg20[%342, %c0_162], %339 {strides = array<i32>} : memref<48x32xf32, #tpu.memory_space<vmem>>, vector<8x32xf32>,
      scf.yield %326 : vector<8x64xf32>
    }
    %c6_i32_64 = arith.constant 6 : i32
    %c0_65 = arith.constant 0 : index
    %c0_66 = arith.constant 0 : index
    %156 = vector.load %arg19[%c0_65, %c0_66] : memref<48x32xf32, #tpu.memory_space<vmem>>, vector<48x32xf32>
    %c0_67 = arith.constant 0 : index
    %c0_68 = arith.constant 0 : index
    %157 = vector.load %arg20[%c0_67, %c0_68] : memref<48x32xf32, #tpu.memory_space<vmem>>, vector<48x32xf32>
    %158 = arith.addf %156, %157 : vector<48x32xf32>
    %c0_69 = arith.constant 0 : index
    %c0_70 = arith.constant 0 : index
    %159 = vector.load %arg11[%c0_69, %c0_70] : memref<1x32xf32, #tpu.memory_space<vmem>>, vector<1x32xf32>
    %160 = vector.broadcast %159 : vector<1x32xf32> to vector<48x32xf32>
    %161 = arith.mulf %51, %160 : vector<48x32xf32>
    %162 = arith.addf %158, %161 : vector<48x32xf32>
    %c0_71 = arith.constant 0 : index
    %c0_72 = arith.constant 0 : index
    %163 = vector.load %arg12[%c0_71, %c0_72] : memref<1x32xf32, #tpu.memory_space<vmem>>, vector<1x32xf32>
    %c0_73 = arith.constant 0 : index
    %c0_74 = arith.constant 0 : index
    %164 = vector.load %arg13[%c0_73, %c0_74] : memref<1x32xf32, #tpu.memory_space<vmem>>, vector<1x32xf32>
    %cst_75 = arith.constant dense<0.000000e+00> : vector<48xf32>
    %165 = vector.multi_reduction <add>, %162, %cst_75 [1] : vector<48x32xf32> to vector<48xf32>
    %166 = vector.shape_cast %165 : vector<48xf32> to vector<48x1xf32>
    %cst_76 = arith.constant 3.200000e+01 : f32
    %167 = vector.broadcast %cst_76 : f32 to vector<48x1xf32>
    %168 = arith.divf %166, %167 : vector<48x1xf32>
    %169 = vector.broadcast %168 : vector<48x1xf32> to vector<48x32xf32>
    %170 = arith.subf %162, %169 : vector<48x32xf32>
    %171 = arith.mulf %170, %170 : vector<48x32xf32>
    %cst_77 = arith.constant dense<0.000000e+00> : vector<48xf32>
    %172 = vector.multi_reduction <add>, %171, %cst_77 [1] : vector<48x32xf32> to vector<48xf32>
    %173 = vector.shape_cast %172 : vector<48xf32> to vector<48x1xf32>
    %cst_78 = arith.constant 3.200000e+01 : f32
    %174 = vector.broadcast %cst_78 : f32 to vector<48x1xf32>
    %175 = arith.divf %173, %174 : vector<48x1xf32>
    %176 = vector.broadcast %168 : vector<48x1xf32> to vector<48x32xf32>
    %177 = arith.subf %162, %176 : vector<48x32xf32>
    %cst_79 = arith.constant 9.99999974E-6 : f32
    %178 = vector.broadcast %cst_79 : f32 to vector<48x1xf32>
    %179 = arith.addf %175, %178 : vector<48x1xf32>
    %180 = math.rsqrt %179 : vector<48x1xf32>
    %181 = vector.broadcast %180 : vector<48x1xf32> to vector<48x32xf32>
    %182 = arith.mulf %177, %181 : vector<48x32xf32>
    %183 = vector.broadcast %163 : vector<1x32xf32> to vector<48x32xf32>
    %184 = arith.mulf %182, %183 : vector<48x32xf32>
    %185 = vector.broadcast %164 : vector<1x32xf32> to vector<48x32xf32>
    %186 = arith.addf %184, %185 : vector<48x32xf32>
    %187 = arith.mulf %186, %37 : vector<48x32xf32>
    %188 = arith.truncf %187 : vector<48x32xf32> to vector<48x32xbf16>
    %c0_80 = arith.constant 0 : index
    %c0_81 = arith.constant 0 : index
    %189 = vector.load %arg14[%c0_80, %c0_81] : memref<32x16xf32, #tpu.memory_space<vmem>>, vector<32x16xf32>
    %190 = arith.truncf %189 : vector<32x16xf32> to vector<32x16xbf16>
    %cst_82 = arith.constant dense<0.000000e+00> : vector<48x16xf32>
    %191 = tpu.matmul %188, %190, %cst_82 {dimension_numbers = #tpu.dot_dimension_numbers<[1], [0], [0], [1], [0, 0, 1, 1], [], []>} : vector<48x32xbf16>, vector<32x16xbf16>, vector<48x16xf32> -> vector<48x16xf32>
    %192 = arith.addf %1, %191 : vector<48x16xf32>
    %c0_83 = arith.constant 0 : index
    %c0_84 = arith.constant 0 : index
    %c0_85 = arith.constant 0 : index
    %193 = vector.load %arg15[%c0_83, %c0_84, %c0_85] : memref<1x48x16xf32, #tpu.memory_space<vmem>>, vector<1x48x16xf32>
    %194 = vector.shape_cast %193 : vector<1x48x16xf32> to vector<48x16xf32>
    %195 = vector.shape_cast %192 : vector<48x16xf32> to vector<1x48x16xf32>
    tpu.vector_store %arg15[%c0_83, %c0_84, %c0_85], %195 {strides = array<i32>} : memref<1x48x16xf32, #tpu.memory_space<vmem>>, vector<1x48x16xf32>,
    return
  }
  func.func @transform_0(%arg0: i32) -> (i32, i32, i32) {
    %c0_i32 = arith.constant 0 : i32
    %c0_i32_0 = arith.constant 0 : i32
    %c0_i32_1 = arith.constant 0 : i32
    return %arg0, %c0_i32, %c0_i32_0 : i32, i32, i32
  }
  func.func @transform_1(%arg0: i32) -> (i32, i32, i32) {
    %c0_i32 = arith.constant 0 : i32
    %c0_i32_0 = arith.constant 0 : i32
    %c0_i32_1 = arith.constant 0 : i32
    return %arg0, %c0_i32, %c0_i32_0 : i32, i32, i32
  }
  func.func @transform_2(%arg0: i32) -> (i32, i32) {
    %c0_i32 = arith.constant 0 : i32
    %c0_i32_0 = arith.constant 0 : i32
    %c0_i32_1 = arith.constant 0 : i32
    return %c0_i32, %c0_i32_0 : i32, i32
  }
  func.func @transform_3(%arg0: i32) -> (i32, i32) {
    %c0_i32 = arith.constant 0 : i32
    %c0_i32_0 = arith.constant 0 : i32
    %c0_i32_1 = arith.constant 0 : i32
    return %c0_i32, %c0_i32_0 : i32, i32
  }
  func.func @transform_4(%arg0: i32) -> (i32, i32) {
    %c0_i32 = arith.constant 0 : i32
    %c0_i32_0 = arith.constant 0 : i32
    %c0_i32_1 = arith.constant 0 : i32
    return %c0_i32, %c0_i32_0 : i32, i32
  }
  func.func @transform_5(%arg0: i32) -> (i32, i32) {
    %c0_i32 = arith.constant 0 : i32
    %c0_i32_0 = arith.constant 0 : i32
    %c0_i32_1 = arith.constant 0 : i32
    return %c0_i32, %c0_i32_0 : i32, i32
  }
  func.func @transform_6(%arg0: i32) -> (i32, i32) {
    %c0_i32 = arith.constant 0 : i32
    %c0_i32_0 = arith.constant 0 : i32
    %c0_i32_1 = arith.constant 0 : i32
    return %c0_i32, %c0_i32_0 : i32, i32
  }
  func.func @transform_7(%arg0: i32) -> (i32, i32, i32) {
    %c0_i32 = arith.constant 0 : i32
    %c0_i32_0 = arith.constant 0 : i32
    %c0_i32_1 = arith.constant 0 : i32
    %c0_i32_2 = arith.constant 0 : i32
    return %c0_i32, %c0_i32_0, %c0_i32_1 : i32, i32, i32
  }
  func.func @transform_8(%arg0: i32) -> (i32, i32) {
    %c0_i32 = arith.constant 0 : i32
    %c0_i32_0 = arith.constant 0 : i32
    %c0_i32_1 = arith.constant 0 : i32
    return %c0_i32, %c0_i32_0 : i32, i32
  }
  func.func @transform_9(%arg0: i32) -> (i32, i32) {
    %c0_i32 = arith.constant 0 : i32
    %c0_i32_0 = arith.constant 0 : i32
    %c0_i32_1 = arith.constant 0 : i32
    return %c0_i32, %c0_i32_0 : i32, i32
  }
  func.func @transform_10(%arg0: i32) -> (i32, i32) {
    %c0_i32 = arith.constant 0 : i32
    %c0_i32_0 = arith.constant 0 : i32
    %c0_i32_1 = arith.constant 0 : i32
    return %c0_i32, %c0_i32_0 : i32, i32
  }
  func.func @transform_11(%arg0: i32) -> (i32, i32) {
    %c0_i32 = arith.constant 0 : i32
    %c0_i32_0 = arith.constant 0 : i32
    %c0_i32_1 = arith.constant 0 : i32
    return %c0_i32, %c0_i32_0 : i32, i32
  }
  func.func @transform_12(%arg0: i32) -> (i32, i32) {
    %c0_i32 = arith.constant 0 : i32
    %c0_i32_0 = arith.constant 0 : i32
    %c0_i32_1 = arith.constant 0 : i32
    return %c0_i32, %c0_i32_0 : i32, i32
  }
  func.func @transform_13(%arg0: i32) -> (i32, i32) {
    %c0_i32 = arith.constant 0 : i32
    %c0_i32_0 = arith.constant 0 : i32
    %c0_i32_1 = arith.constant 0 : i32
    return %c0_i32, %c0_i32_0 : i32, i32
  }
  func.func @transform_14(%arg0: i32) -> (i32, i32, i32) {
    %c0_i32 = arith.constant 0 : i32
    %c0_i32_0 = arith.constant 0 : i32
    %c0_i32_1 = arith.constant 0 : i32
    return %arg0, %c0_i32, %c0_i32_0 : i32, i32, i32
  }
}

</mosaic_0001>

<bundles_post_ra>
// kernel: vision_mamba_forward.3
= control target key start
LH: loop header
LB: loop body
LE: loop exit
PB: predicated region body
PF: predicated region fallthrough
CT: control target
= control target key end

     0   :  { %vm71_vm0 = vcmask 1044480   ;;  %vm72_vm1 = vcmask 1045504   ;;  %v368_v3 = vmov 65535   ;;  %vm52_vm2 = vcmask 220160   ;;  %s516_s1 = inlined_call_operand.vmem [shape: f32[27,8], index: 1, kind: input, shape index: {}]   ;;  %s517_s0 = inlined_call_operand.vmem [shape: f32[96,27], index: 0, kind: input, shape index: {}]   ;;  %s518_s3 = inlined_call_operand.vmem [shape: f32[8,16], index: 3, kind: input, shape index: {}]   ;;  %s519_s2 = inlined_call_operand.vmem [shape: f32[1,8], index: 2, kind: input, shape index: {}]   ;;  %s520_s4 = inlined_call_operand.vmem [shape: f32[1,16], index: 4, kind: input, shape index: {}]   ;;  %s521_s5 = inlined_call_operand.vmem [shape: f32[96,16], index: 5, kind: output, shape index: {}]  }
   0x1   :  { %v39_v0 = vld [vmem:[%s516_s1] sm:$0xff]  ;;  %v40_v1 = vld [vmem:[%s516_s1 + $0x8] sm:$0xff]  ;;  %v41_v2 = vld [vmem:[%s516_s1 + $0x10] sm:$0xff]  ;;  %v73_v4 = vsel %vm71_vm0, 4294967295, %v368_v3  ;;  %vm205_vm3 = vcmask 1043456   ;;  %vm186_vm4 = vcmask 64512  }
   0x2   :  { %v43_v5 = vpack.c.bf16 %v40_v1, %v39_v0  ;;  %v42_v6 = vld [vmem:[%s516_s1 + $0x18] sm:$0x7]  ;;  %v74_v7 = vsel %vm72_vm1, %v73_v4, 0  ;;  %v21_v8 = vld [vmem:[%s517_s0] sm:$0xff]  ;;  %v22_v9 = vld [vmem:[%s517_s0 + $0x8] sm:$0xff]  ;;  %vm290_vm5 = vcmask 130048  }
   0x3   :  { %v44_v10 = vpack.c.bf16 %v42_v6, %v41_v2  ;;  %v33_v11 = vpack.c.bf16 %v22_v9, %v21_v8  ;;  %v23_v13 = vld [vmem:[%s517_s0 + $0x10] sm:$0xff]  ;;  %v24_v14 = vld [vmem:[%s517_s0 + $0x18] sm:$0xff]  ;;  %v25_v15 = vld [vmem:[%s517_s0 + $0x20] sm:$0xff] }
   0x4   :  { %336 = vmatprep.subr.bf16.mxu0 %v43_v5  ;;  %v26_v16 = vld [vmem:[%s517_s0 + $0x28] sm:$0xff]  ;;  %v34_v17 = vpack.c.bf16 %v24_v14, %v23_v13  ;;  %v27_v19 = vld [vmem:[%s517_s0 + $0x30] sm:$0xff]  ;;  %v28_v20 = vld [vmem:[%s517_s0 + $0x38] sm:$0xff] }
   0x5   :  { %337 = vmatpush3.bf16.msra.mxu0 %v43_v5  ;;  %v76_v12 = vand.u32 %v74_v7, %v44_v10  ;;  %340 = vmatprep.mubr.msk.bf16.mxu0 %vm52_vm2, %v33_v11  ;;  %v35_v18 = vpack.c.bf16 %v26_v16, %v25_v15  ;;  %v29_v21 = vld [vmem:[%s517_s0 + $0x40] sm:$0xff]  ;;  %v30_v22 = vld [vmem:[%s517_s0 + $0x48] sm:$0xff]  ;;  %v36_v23 = vpack.c.bf16 %v28_v20, %v27_v19  ;;  %v31_v25 = vld [vmem:[%s517_s0 + $0x50] sm:$0xff] }
   0x6   :  { %v37_v24 = vpack.c.bf16 %v30_v22, %v29_v21  ;;  %v32_v26 = vld [vmem:[%s517_s0 + $0x58] sm:$0xff]  ;;  %v177_v28 = vld [vmem:[%s518_s3] sm:$0xff] }
   0x7   :  { %338 = vmatprep.subr.bf16.mxu0 %v76_v12  ;;  %v38_v27 = vpack.c.bf16 %v32_v26, %v31_v25  ;;  %v178_v29 = vpack.c.bf16 %v177_v28, %v177_v28  ;;  %v307_v31 = vld [vmem:[%s519_s2] ss:$0 sm:$0xff] }
   0x8   :  { %v314_v10 = vld [vmem:[%s520_s4] ss:$0 sm:$0xff] }
   0x9   :  { %339 = vmatpush3.bf16.msra.mxu0 %v76_v12  ;;  %366 = vmatprep.subr.msk.bf16.mxu1 %vm205_vm3, %v178_v29  ;;  %v207_v30 = vsel %vm205_vm3, %v178_v29, 0 }
   0xa   :  { %353 = vmatpush3.bf16.msra.mxu1 %v207_v30 }
   0xc   :  { %341 = vmatmul.mubr.msk.bf16.vlgmr.msra.gmra.mrb[0].mxu0 %vm52_vm2, %v34_v17 }
   0xd   :  { %344 = vmatprep.mubr.msk.bf16.mxu0 %vm52_vm2, %v35_v18 }
  0x14   :  { %345 = vmatmul.mubr.msk.bf16.gmra.mrb[4].mxu0 %vm52_vm2, %v36_v23 }
  0x15   :  { %348 = vmatprep.mubr.msk.bf16.mxu0 %vm52_vm2, %v37_v24 }
  0x1c   :  { %349 = vmatmul.mubr.msk.bf16.gmra.mrb[8].mxu0 %vm52_vm2, %v38_v27 }
  0xdf   :  { %v342_v32 = vpop.f32.mrb[0].mxu0 }
  0xe0   :  { %v121_v33 = vadd.f32 %v342_v32, %v307_v31  ;;  %v112_v34 = vpop.f32.mrb[1].mxu0 }
  0xe1   :  { %v113_v35 = vadd.f32 %v307_v31, %v112_v34  ;;  %v343_v36 = vpop.f32.mrb[2].mxu0 }
  0xe2   :  { %v124_v37 = vadd.f32 %v343_v36, %v307_v31  ;;  %v115_v38 = vpop.f32.mrb[3].mxu0  ;;  %v161_v40 = vmax.f32 %v121_v33, 0.0 }
  0xe3   :  { %v116_v39 = vadd.f32 %v307_v31, %v115_v38  ;;  %v159_v42 = vmax.f32 %v113_v35, 0.0 }
  0xe4   :  { %v162_v41 = vmax.f32 %v124_v37, 0.0 }
  0xe5   :  { %v160_v43 = vmax.f32 %v116_v39, 0.0 }
  0xe6   :  { %v172_v44 = vpack.c.bf16 %v162_v41, %v161_v40 }
  0xe7   :  { %v346_v45 = vpop.f32.mrb[4].mxu0  ;;  %v171_v46 = vpack.c.bf16 %v160_v43, %v159_v42 }
  0xe8   :  { %v137_v47 = vadd.f32 %v346_v45, %v307_v31  ;;  %v128_v48 = vpop.f32.mrb[5].mxu0 }
  0xe9   :  { %v129_v49 = vadd.f32 %v307_v31, %v128_v48  ;;  %v347_v50 = vpop.f32.mrb[6].mxu0  ;;  %354 = vmatprep.mubr.msk.bf16.mxu1 %vm186_vm4, %v171_v46 }
  0xea   :  { %v140_v51 = vadd.f32 %v347_v50, %v307_v31  ;;  %v131_v52 = vpop.f32.mrb[7].mxu0  ;;  %355 = vmatmul.mubr.msk.bf16.vlgmr.msra.gmra.mrb[0].mxu1 %vm186_vm4, %v172_v44  ;;  %v165_v54 = vmax.f32 %v137_v47, 0.0 }
  0xeb   :  { %v132_v53 = vadd.f32 %v307_v31, %v131_v52  ;;  %v163_v56 = vmax.f32 %v129_v49, 0.0 }
  0xec   :  { %v166_v55 = vmax.f32 %v140_v51, 0.0 }
  0xed   :  { %v164_v57 = vmax.f32 %v132_v53, 0.0 }
  0xee   :  { %v174_v58 = vpack.c.bf16 %v166_v55, %v165_v54 }
  0xef   :  { %v173_v59 = vpack.c.bf16 %v164_v57, %v163_v56  ;;  %v350_v60 = vpop.f32.mrb[8].mxu0 }
  0xf0   :  { %v153_v61 = vadd.f32 %v350_v60, %v307_v31  ;;  %v144_v62 = vpop.f32.mrb[9].mxu0 }
  0xf1   :  { %v145_v63 = vadd.f32 %v307_v31, %v144_v62  ;;  %v351_v0 = vpop.f32.mrb[10].mxu0  ;;  %358 = vmatprep.mubr.msk.bf16.mxu1 %vm186_vm4, %v173_v59 }
  0xf2   :  { %v156_v1 = vadd.f32 %v351_v0, %v307_v31  ;;  %v147_v2 = vpop.f32.mrb[11].mxu0  ;;  %359 = vmatmul.mubr.msk.bf16.gmra.mrb[4].mxu1 %vm186_vm4, %v174_v58  ;;  %v169_v4 = vmax.f32 %v153_v61, 0.0 }
  0xf3   :  { %v148_v3 = vadd.f32 %v307_v31, %v147_v2  ;;  %v167_v6 = vmax.f32 %v145_v63, 0.0 }
  0xf4   :  { %v170_v5 = vmax.f32 %v156_v1, 0.0 }
  0xf5   :  { %v168_v7 = vmax.f32 %v148_v3, 0.0 }
  0xf6   :  { %v176_v8 = vpack.c.bf16 %v170_v5, %v169_v4 }
  0xf7   :  { %v175_v9 = vpack.c.bf16 %v168_v7, %v167_v6 }
  0xf9   :  { %362 = vmatprep.mubr.msk.bf16.mxu1 %vm186_vm4, %v175_v9 }
  0xfa   :  { %363 = vmatmul.mubr.msk.bf16.gmra.mrb[8].mxu1 %vm186_vm4, %v176_v8 }
 0x1bd   :  { %v356_v11 = vpop.f32.mrb[0].mxu1 }
 0x1be   :  { %v252_v12 = vadd.f32 %v356_v11, %v314_v10  ;;  %v243_v13 = vpop.f32.mrb[1].mxu1 }
 0x1bf   :  { %v244_v14 = vadd.f32 %v314_v10, %v243_v13  ;;  %v357_v15 = vpop.f32.mrb[2].mxu1 }
 0x1c0   :  { %293 = vst.msk [vmem:[%s521_s5 + $0x10] sm:$0xff] %vm290_vm5, %v252_v12  ;;  %v255_v16 = vadd.f32 %v357_v15, %v314_v10  ;;  %v246_v17 = vpop.f32.mrb[3].mxu1 }
 0x1c1   :  { %291 = vst.msk [vmem:[%s521_s5] sm:$0xff] %vm290_vm5, %v244_v14  ;;  %v247_v18 = vadd.f32 %v314_v10, %v246_v17 }
 0x1c2   :  { %294 = vst.msk [vmem:[%s521_s5 + $0x18] sm:$0xff] %vm290_vm5, %v255_v16 }
 0x1c3   :  { %292 = vst.msk [vmem:[%s521_s5 + $0x8] sm:$0xff] %vm290_vm5, %v247_v18 }
 0x1c5   :  { %v360_v19 = vpop.f32.mrb[4].mxu1 }
 0x1c6   :  { %v268_v20 = vadd.f32 %v360_v19, %v314_v10  ;;  %v259_v21 = vpop.f32.mrb[5].mxu1 }
 0x1c7   :  { %v260_v22 = vadd.f32 %v314_v10, %v259_v21  ;;  %v361_v23 = vpop.f32.mrb[6].mxu1 }
 0x1c8   :  { %297 = vst.msk [vmem:[%s521_s5 + $0x30] sm:$0xff] %vm290_vm5, %v268_v20  ;;  %v271_v24 = vadd.f32 %v361_v23, %v314_v10  ;;  %v262_v25 = vpop.f32.mrb[7].mxu1 }
 0x1c9   :  { %295 = vst.msk [vmem:[%s521_s5 + $0x20] sm:$0xff] %vm290_vm5, %v260_v22  ;;  %v263_v26 = vadd.f32 %v314_v10, %v262_v25 }
 0x1ca   :  { %298 = vst.msk [vmem:[%s521_s5 + $0x38] sm:$0xff] %vm290_vm5, %v271_v24 }
 0x1cb   :  { %296 = vst.msk [vmem:[%s521_s5 + $0x28] sm:$0xff] %vm290_vm5, %v263_v26 }
 0x1cd   :  { %v364_v27 = vpop.f32.mrb[8].mxu1 }
 0x1ce   :  { %v284_v28 = vadd.f32 %v364_v27, %v314_v10  ;;  %v275_v29 = vpop.f32.mrb[9].mxu1 }
 0x1cf   :  { %v276_v30 = vadd.f32 %v314_v10, %v275_v29  ;;  %v365_v31 = vpop.f32.mrb[10].mxu1 }
 0x1d0   :  { %301 = vst.msk [vmem:[%s521_s5 + $0x50] sm:$0xff] %vm290_vm5, %v284_v28  ;;  %v287_v32 = vadd.f32 %v365_v31, %v314_v10  ;;  %v278_v33 = vpop.f32.mrb[11].mxu1 }
 0x1d1   :  { %299 = vst.msk [vmem:[%s521_s5 + $0x40] sm:$0xff] %vm290_vm5, %v276_v30  ;;  %v279_v34 = vadd.f32 %v314_v10, %v278_v33 }
 0x1d2   :  { %302 = vst.msk [vmem:[%s521_s5 + $0x58] sm:$0xff] %vm290_vm5, %v287_v32 }
 0x1d3   :  { %300 = vst.msk [vmem:[%s521_s5 + $0x48] sm:$0xff] %vm290_vm5, %v279_v34 }

// kernel: vision_mamba_forward.4
= control target key start
LH: loop header
LB: loop body
LE: loop exit
PB: predicated region body
PF: predicated region fallthrough
CT: control target
= control target key end

     0   :  { %s5134_s29 = smov 0   ;;  %s7361_s0 = inlined_call_operand.vmem [shape: f32[2,48,16], index: 0, kind: input, shape index: {}]   ;;  %s7362_s1 = inlined_call_operand.vmem [shape: f32[2,48,16], index: 1, kind: input, shape index: {}]   ;;  %s7363_s2 = inlined_call_operand.vmem [shape: f32[1,16], index: 2, kind: input, shape index: {}]   ;;  %s7364_s3 = inlined_call_operand.vmem [shape: f32[1,16], index: 3, kind: input, shape index: {}]   ;;  %s7365_s4 = inlined_call_operand.vmem [shape: f32[16,64], index: 4, kind: input, shape index: {}]   ;;  %s7366_s5 = inlined_call_operand.vmem [shape: f32[1,32], index: 5, kind: input, shape index: {}]   ;;  %s7367_s6 = inlined_call_operand.vmem [shape: f32[1,32], index: 6, kind: input, shape index: {}]   ;;  %s7368_s7 = inlined_call_operand.vmem [shape: f32[2,32,48], index: 7, kind: input, shape index: {}]   ;;  %s7369_s8 = inlined_call_operand.vmem [shape: f32[1,64], index: 8, kind: input, shape index: {}]   ;;  %s7370_s9 = inlined_call_operand.vmem [shape: f32[8,64], index: 9, kind: input, shape index: {}]   ;;  %s7371_s10 = inlined_call_operand.vmem [shape: f32[1,32], index: 10, kind: input, shape index: {}]   ;;  %s7372_s11 = inlined_call_operand.vmem [shape: f32[1,32], index: 11, kind: input, shape index: {}]   ;;  %s7373_s12 = inlined_call_operand.vmem [shape: f32[1,32], index: 12, kind: input, shape index: {}]   ;;  %s7374_s13 = inlined_call_operand.vmem [shape: f32[32,16], index: 13, kind: input, shape index: {}]   ;;  %s7375_s14 = inlined_call_operand.vmem [shape: f32[2,48,16], index: 14, kind: output, shape index: {}]  }
   0x1 LB: > { %s4543_s30 = sadd.s32 4294967295, %s5043_s29   ;;  %p4547_p0 = scmp.ge.s32.totalorder %s5043_s29, 1  ;;  %s5043_s29 = sphi %s5134_s29, %s24_s29  }
   0x2   : > { %p422_p1 = scmp.lt.s32.totalorder %s5043_s29, 3 }
   0x4   : > { %p423_p2 = pnand %p4547_p0, %p422_p1 }
   0x6   : > { %426 = sbr.rel (%p423_p2) target bundleno = 2156 (0x86c), region = 76 }
   0xd   : > { %p473_p3 = scmp.lt.s32.totalorder %s4543_s30, 1  ;;  %vm497_vm0 = vcmask 130048   ;;  %vm5054_vm1 = vmmov 0   ;;  %s5055_s25 = smov 32   ;;  %vm993_vm2 = vcmask 261120   ;;  %vm1954_vm3 = vcmask 523264  }
   0xe   : > { %s7191_s19 = smov 0  }
   0xf   : > { %s7681_s30 = smov (!%p473_p3, %s4543_s30), 1 }
  0x10   : > { %s4768_s15 = smul.u32 48, %s7681_s30 }
  0x12   : > { %s5145_s18 = scalar_lea.vmem %s7361_s0, %s4768_s15  ;;  %s5150_s21 = scalar_lea.vmem %s7375_s14, %s4768_s15 }
  0x13   : > { %v5153_v0 = vld [vmem:[%s5145_s18 + $0x10] sm:$0xff]  ;;  %v5156_v1 = vld [vmem:[%s5145_s18 + $0x20] sm:$0xff]  ;;  %v5159_v2 = vld [vmem:[%s5145_s18 + $0x18] sm:$0xff]  ;;  %s482_s24 = scalar_lea.vmem %s7362_s1, %s4768_s15 }
  0x14   : > { %7436 = vst [vmem:[#allocation7_spill] sm:$0xff] %v5153_v0  ;;  %7437 = vst [vmem:[#allocation8_spill] sm:$0xff] %v5156_v1  ;;  %v504_v3 = vsel %vm497_vm0, %v5153_v0, 0.0  ;;  %v510_v4 = vsel %vm497_vm0, %v5156_v1, 0.0  ;;  %v5166_v5 = vld [vmem:[%s5145_s18 + $0x28] sm:$0xff]  ;;  %v507_v6 = vsel %vm497_vm0, %v5159_v2, 0.0 }
  0x15   : > { %7438 = vst [vmem:[#allocation9_spill] sm:$0xff] %v5159_v2  ;;  %7439 = vst [vmem:[#allocation10_spill] sm:$0xff] %v5166_v5  ;;  %505 = vadd.xlane.f32.xlu0 %v504_v3  ;;  %511 = vadd.xlane.f32.xlu1 %v510_v4  ;;  %v513_v7 = vsel %vm497_vm0, %v5166_v5, 0.0  ;;  %v771_v8 = vld [vmem:[%s482_s24] sm:$0xff]  ;;  %v772_v9 = vld [vmem:[%s482_s24 + $0x8] sm:$0xff] }
  0x16   : > { %v777_v10 = vsel %vm497_vm0, %v771_v8, 0.0  ;;  %v780_v11 = vsel %vm497_vm0, %v772_v9, 0.0  ;;  %v773_v12 = vld [vmem:[%s482_s24 + $0x10] sm:$0xff]  ;;  %v774_v13 = vld [vmem:[%s482_s24 + $0x18] sm:$0xff]  ;;  %v775_v16 = vld [vmem:[%s482_s24 + $0x20] sm:$0xff] }
  0x17   : > { %v783_v14 = vsel %vm497_vm0, %v773_v12, 0.0  ;;  %v786_v15 = vsel %vm497_vm0, %v774_v13, 0.0  ;;  %v776_v17 = vld [vmem:[%s482_s24 + $0x28] sm:$0xff]  ;;  %v789_v18 = vsel %vm497_vm0, %v775_v16, 0.0  ;;  %v5182_v20 = vld [vmem:[%s5145_s18] sm:$0xff] }
  0x18   : > { %v792_v19 = vsel %vm497_vm0, %v776_v17, 0.0  ;;  %7440 = vst [vmem:[#allocation11_spill] sm:$0xff] %v5182_v20  ;;  %v5185_v21 = vld [vmem:[%s5145_s18 + $0x8] sm:$0xff]  ;;  %v498_v22 = vsel %vm497_vm0, %v5182_v20, 0.0 }
  0x19   : > { %508 = vadd.xlane.f32.xlu0 %v507_v6  ;;  %514 = vadd.xlane.f32.xlu1 %v513_v7  ;;  %7441 = vst [vmem:[#allocation12_spill] sm:$0xff] %v5185_v21  ;;  %v501_v23 = vsel %vm497_vm0, %v5185_v21, 0.0 }
  0x1d   : > { %778 = vadd.xlane.f32.xlu0 %v777_v10  ;;  %781 = vadd.xlane.f32.xlu1 %v780_v11 }
  0x21   : > { %784 = vadd.xlane.f32.xlu0 %v783_v14  ;;  %787 = vadd.xlane.f32.xlu1 %v786_v15 }
  0x25   : > { %790 = vadd.xlane.f32.xlu0 %v789_v18  ;;  %793 = vadd.xlane.f32.xlu1 %v792_v19 }
  0x29   : > { %499 = vadd.xlane.f32.xlu0 %v498_v22  ;;  %502 = vadd.xlane.f32.xlu1 %v501_v23 }
  0xa2   : > { %v506_v24 = vpop.xlane.xlu0 %505  ;;  %v512_v25 = vpop.xlane.xlu1 %511 }
  0xa3   : > { %v519_v26 = vmul.f32 0.0625, %v506_v24  ;;  %v521_v27 = vmul.f32 0.0625, %v512_v25 }
  0xa5   : > { %v5192_v28 = vsub.f32 %v5153_v0, %v519_v26  ;;  %v5195_v29 = vsub.f32 %v5156_v1, %v521_v27  ;;  %v601_v26 = vld [vmem:[%s7365_s4] sm:$0xff]  ;;  %v602_v27 = vld [vmem:[%s7365_s4 + $0x8] sm:$0xff] }
  0xa6   : > { %v509_v30 = vpop.xlane.xlu0 %508  ;;  %v515_v31 = vpop.xlane.xlu1 %514 }
  0xa7   : > { %v520_v32 = vmul.f32 0.0625, %v509_v30  ;;  %v522_v33 = vmul.f32 0.0625, %v515_v31  ;;  %v531_v34 = vmul.f32 %v5192_v28, %v5192_v28  ;;  %v533_v35 = vmul.f32 %v5195_v29, %v5195_v29 }
  0xa8   : > { %v5263_v30 = vpack.c.bf16 %v602_v27, %v601_v26  ;;  %v7376_v31 = vmov 0.0  }
  0xa9   : > { %v5202_v36 = vsub.f32 %v5159_v2, %v520_v32  ;;  %v5205_v37 = vsub.f32 %v5166_v5, %v522_v33  ;;  %v541_v38 = vsel %vm497_vm0, %v531_v34, 0.0  ;;  %v547_v41 = vsel %vm497_vm0, %v533_v35, 0.0  ;;  %4766 = vmatprep.subr.bf16.mxu1 %v7376_v31  ;;  %4690 = vmatprep.subr.bf16.mxu0 %v7376_v31 }
  0xaa   : > { %v779_v39 = vpop.xlane.xlu0 %778  ;;  %542 = vadd.xlane.f32.xlu0 %v541_v38  ;;  %v782_v40 = vpop.xlane.xlu1 %781  ;;  %4767 = vmatpush3.bf16.msra.mxu1 %v5263_v30 }
  0xab   : > { %v795_v42 = vmul.f32 0.0625, %v779_v39  ;;  %v796_v43 = vmul.f32 0.0625, %v782_v40  ;;  %v532_v44 = vmul.f32 %v5202_v36, %v5202_v36  ;;  %v534_v45 = vmul.f32 %v5205_v37, %v5205_v37  ;;  %4691 = vmatpush3.bf16.msra.mxu0 %v5263_v30  ;;  %4704 = vmatprep.subr.bf16.mxu1 %v7376_v31 }
  0xac   : > { %4718 = vmatprep.subr.bf16.mxu0 %v7376_v31  ;;  %4696 = vmatprep.mubr.msk.bf16.mxu1 %vm5054_vm1, %v7376_v31 }
  0xad   : > { %v5213_v46 = vsub.f32 %v771_v8, %v795_v42  ;;  %v5215_v47 = vsub.f32 %v772_v9, %v796_v43  ;;  %v544_v48 = vsel %vm497_vm0, %v532_v44, 0.0  ;;  %v550_v51 = vsel %vm497_vm0, %v534_v45, 0.0  ;;  %4692 = vmatprep.mubr.msk.bf16.mxu0 %vm5054_vm1, %v7376_v31 }
  0xae   : > { %v785_v49 = vpop.xlane.xlu0 %784  ;;  %545 = vadd.xlane.f32.xlu1 %v544_v48  ;;  %548 = vadd.xlane.f32.xlu0 %v547_v41  ;;  %v788_v50 = vpop.xlane.xlu1 %787 }
  0xaf   : > { %v797_v52 = vmul.f32 0.0625, %v785_v49  ;;  %v798_v53 = vmul.f32 0.0625, %v788_v50  ;;  %v807_v54 = vmul.f32 %v5213_v46, %v5213_v46  ;;  %v808_v55 = vmul.f32 %v5215_v47, %v5215_v47 }
  0xb1   : > { %v5223_v56 = vsub.f32 %v773_v12, %v797_v52  ;;  %v5225_v57 = vsub.f32 %v774_v13, %v798_v53  ;;  %v813_v58 = vsel %vm497_vm0, %v807_v54, 0.0  ;;  %v816_v61 = vsel %vm497_vm0, %v808_v55, 0.0 }
  0xb2   : > { %v791_v59 = vpop.xlane.xlu0 %790  ;;  %551 = vadd.xlane.f32.xlu1 %v550_v51  ;;  %814 = vadd.xlane.f32.xlu0 %v813_v58  ;;  %v794_v60 = vpop.xlane.xlu1 %793 }
  0xb3   : > { %v799_v62 = vmul.f32 0.0625, %v791_v59  ;;  %v800_v63 = vmul.f32 0.0625, %v794_v60  ;;  %v809_v3 = vmul.f32 %v5223_v56, %v5223_v56  ;;  %v810_v4 = vmul.f32 %v5225_v57, %v5225_v57 }
  0xb5   : > { %v5233_v6 = vsub.f32 %v775_v16, %v799_v62  ;;  %v5235_v7 = vsub.f32 %v776_v17, %v800_v63  ;;  %v819_v8 = vsel %vm497_vm0, %v809_v3, 0.0  ;;  %v822_v10 = vsel %vm497_vm0, %v810_v4, 0.0 }
  0xb6   : > { %817 = vadd.xlane.f32.xlu1 %v816_v61  ;;  %820 = vadd.xlane.f32.xlu0 %v819_v8  ;;  %v500_v9 = vpop.xlane.xlu0 %499  ;;  %v503_v11 = vpop.xlane.xlu1 %502  ;;  %v5279_v61 = vld [vmem:[%s7363_s2] ss:$0 sm:$0xff] }
  0xb7   : > { %v517_v12 = vmul.f32 0.0625, %v500_v9  ;;  %v518_v13 = vmul.f32 0.0625, %v503_v11  ;;  %v811_v14 = vmul.f32 %v5233_v6, %v5233_v6  ;;  %v812_v15 = vmul.f32 %v5235_v7, %v5235_v7 }
  0xb9   : > { %v5244_v16 = vsub.f32 %v5182_v20, %v517_v12  ;;  %v5247_v17 = vsub.f32 %v5185_v21, %v518_v13  ;;  %v825_v18 = vsel %vm497_vm0, %v811_v14, 0.0  ;;  %v828_v19 = vsel %vm497_vm0, %v812_v15, 0.0 }
  0xba   : > { %823 = vadd.xlane.f32.xlu1 %v822_v10  ;;  %826 = vadd.xlane.f32.xlu0 %v825_v18 }
  0xbb   : > { %v529_v22 = vmul.f32 %v5244_v16, %v5244_v16  ;;  %v530_v23 = vmul.f32 %v5247_v17, %v5247_v17 }
  0xbd   : > { %v535_v24 = vsel %vm497_vm0, %v529_v22, 0.0  ;;  %v538_v25 = vsel %vm497_vm0, %v530_v23, 0.0 }
  0xbe   : > { %829 = vadd.xlane.f32.xlu1 %v828_v19  ;;  %536 = vadd.xlane.f32.xlu0 %v535_v24 }
  0xc2   : > { %539 = vadd.xlane.f32.xlu1 %v538_v25 }
 0x137   : > { %v543_v32 = vpop.xlane.xlu0 %542 }
 0x138   : > { %v555_v33 = vmul.f32 0.0625, %v543_v32 }
 0x13a   : > { %v561_v34 = vadd.f32 1e-05, %v555_v33 }
 0x13b   : > { %v546_v35 = vpop.xlane.xlu1 %545  ;;  %v549_v38 = vpop.xlane.xlu0 %548 }
 0x13c   : > { %4799 = vrsqrt.f32 %v561_v34  ;;  %v556_v39 = vmul.f32 0.0625, %v546_v35  ;;  %v557_v40 = vmul.f32 0.0625, %v549_v38 }
 0x13e   : > { %v562_v41 = vadd.f32 1e-05, %v556_v39  ;;  %v563_v42 = vadd.f32 1e-05, %v557_v40 }
 0x13f   : > { %v552_v43 = vpop.xlane.xlu1 %551  ;;  %v815_v44 = vpop.xlane.xlu0 %814 }
 0x140   : > { %4801 = vrsqrt.f32 %v562_v41  ;;  %v558_v45 = vmul.f32 0.0625, %v552_v43  ;;  %v831_v49 = vmul.f32 0.0625, %v815_v44 }
 0x141   : > { %4803 = vrsqrt.f32 %v563_v42 }
 0x142   : > { %v564_v48 = vadd.f32 1e-05, %v558_v45  ;;  %v837_v54 = vadd.f32 1e-05, %v831_v49 }
 0x143   : > { %v818_v50 = vpop.xlane.xlu1 %817  ;;  %v821_v51 = vpop.xlane.xlu0 %820 }
 0x144   : > { %4805 = vrsqrt.f32 %v564_v48  ;;  %v832_v52 = vmul.f32 0.0625, %v818_v50  ;;  %v833_v3 = vmul.f32 0.0625, %v821_v51 }
 0x146   : > { %v4800_v53 = vpop.eup %4799  ;;  %v838_v55 = vadd.f32 1e-05, %v832_v52  ;;  %v839_v18 = vadd.f32 1e-05, %v833_v3 }
 0x147   : > { %v824_v58 = vpop.xlane.xlu1 %823  ;;  %v827_v59 = vpop.xlane.xlu0 %826  ;;  %v573_v60 = vmul.f32 %v4800_v53, %v5192_v28  ;;  %v5286_v28 = vld [vmem:[%s7364_s3] ss:$0 sm:$0xff] }
 0x148   : > { %4807 = vrsqrt.f32 %v838_v55  ;;  %v834_v62 = vmul.f32 0.0625, %v824_v58  ;;  %v835_v35 = vmul.f32 0.0625, %v827_v59 }
 0x149   : > { %4809 = vrsqrt.f32 %v837_v54  ;;  %v585_v10 = vmul.f32 %v5279_v61, %v573_v60 }
 0x14a   : > { %v4802_v63 = vpop.eup %4801  ;;  %v840_v12 = vadd.f32 1e-05, %v834_v62  ;;  %v841_v42 = vadd.f32 1e-05, %v835_v35 }
 0x14b   : > { %v830_v4 = vpop.xlane.xlu1 %829  ;;  %v537_v8 = vpop.xlane.xlu0 %536  ;;  %v574_v9 = vmul.f32 %v4802_v63, %v5202_v36  ;;  %v597_v23 = vadd.f32 %v5286_v28, %v585_v10 }
 0x14c   : > { %v4804_v11 = vpop.eup %4803  ;;  %v553_v13 = vmul.f32 0.0625, %v537_v8  ;;  %4811 = vrsqrt.f32 %v840_v12  ;;  %v836_v26 = vmul.f32 0.0625, %v830_v4 }
 0x14d   : > { %v586_v14 = vmul.f32 %v5279_v61, %v574_v9  ;;  %v575_v24 = vmul.f32 %v4804_v11, %v5195_v29 }
 0x14e   : > { %v4806_v15 = vpop.eup %4805  ;;  %v559_v19 = vadd.f32 1e-05, %v553_v13  ;;  %v842_v41 = vadd.f32 1e-05, %v836_v26  ;;  %v989_v26 = vld [vmem:[%s7368_s7 + $0x10] sm:$0xff] }
 0x14f   : > { %v540_v22 = vpop.xlane.xlu1 %539  ;;  %v598_v36 = vadd.f32 %v5286_v28, %v586_v14  ;;  %v576_v25 = vmul.f32 %v4806_v15, %v5205_v37  ;;  %v587_v39 = vmul.f32 %v5279_v61, %v575_v24  ;;  %v4567_v24 = vld [vmem:[%s7368_s7 + $0x38] sm:$0xff] }
 0x150   : > { %v554_v27 = vmul.f32 0.0625, %v540_v22  ;;  %4813 = vrsqrt.f32 %v559_v19  ;;  %v988_v22 = vld [vmem:[%s7368_s7 + $0x8] sm:$0xff] }
 0x151   : > { %v605_v32 = vpack.c.bf16 %v598_v36, %v597_v23  ;;  %v588_v33 = vmul.f32 %v5279_v61, %v576_v25  ;;  %4815 = vrsqrt.f32 %v839_v18  ;;  %v599_v44 = vadd.f32 %v5286_v28, %v587_v39  ;;  %v4566_v23 = vld [vmem:[%s7368_s7 + $0x30] sm:$0xff] }
 0x152   : > { %v4808_v34 = vpop.eup %4807  ;;  %v560_v38 = vadd.f32 1e-05, %v554_v27  ;;  %v1069_v25 = vpack.c.bf16 %v4567_v24, %v4566_v23  ;;  %v990_v27 = vld [vmem:[%s7368_s7 + $0x18] sm:$0xff] }
 0x153   : > { %4697 = vmatmul.mubr.msk.bf16.vlgmr.msra.gmra.mrb[0].mxu1 %vm497_vm0, %v605_v32  ;;  %v4810_v40 = vpop.eup %4809  ;;  %v850_v29 = vmul.f32 %v4808_v34, %v5215_v47  ;;  %v600_v37 = vadd.f32 %v5286_v28, %v588_v33  ;;  %v992_v32 = vpack.c.bf16 %v990_v27, %v989_v26 }
 0x154   : > { %4817 = vrsqrt.f32 %v560_v38  ;;  %4700 = vmatprep.mubr.msk.bf16.mxu1 %vm5054_vm1, %v7376_v31  ;;  %4705 = vmatpush3.bf16.msra.mxu1 %v5263_v30  ;;  %v849_v43 = vmul.f32 %v4810_v40, %v5213_v46 }
 0x155   : > { %4734 = vmatprep.subr.bf16.mxu1 %v7376_v31  ;;  %4819 = vrsqrt.f32 %v842_v41  ;;  %v856_v45 = vmul.f32 %v5279_v61, %v850_v29  ;;  %v606_v48 = vpack.c.bf16 %v600_v37, %v599_v44 }
 0x156   : > { %v4812_v49 = vpop.eup %4811  ;;  %4821 = vrsqrt.f32 %v841_v42  ;;  %v855_v30 = vmul.f32 %v5279_v61, %v849_v43  ;;  %v5378_v42 = vld [vmem:[%s7366_s5] ss:$0 sm:$0xff] }
 0x157   : > { %v862_v46 = vadd.f32 %v5286_v28, %v856_v45  ;;  %v852_v52 = vmul.f32 %v4812_v49, %v5225_v57 }
 0x158   : > { %v861_v54 = vadd.f32 %v5286_v28, %v855_v30 }
 0x159   : > { %v858_v63 = vmul.f32 %v5279_v61, %v852_v52 }
 0x15a   : > { %v4814_v50 = vpop.eup %4813  ;;  %v867_v60 = vpack.c.bf16 %v862_v46, %v861_v54 }
 0x15b   : > { %4701 = vmatmul.mubr.msk.bf16.gmra.mrb[4].mxu1 %vm497_vm0, %v606_v48  ;;  %v4816_v47 = vpop.eup %4815  ;;  %v571_v51 = vmul.f32 %v4814_v50, %v5244_v16 }
 0x15c   : > { %4706 = vmatprep.mubr.msk.bf16.mxu1 %vm5054_vm1, %v7376_v31  ;;  %v851_v59 = vmul.f32 %v4816_v47, %v5223_v56  ;;  %v864_v56 = vadd.f32 %v5286_v28, %v858_v63  ;;  %v5389_v47 = vld [vmem:[%s7367_s6] ss:$0 sm:$0xff] }
 0x15d   : > { %v583_v58 = vmul.f32 %v5279_v61, %v571_v51 }
 0x15e   : > { %v4818_v53 = vpop.eup %4817  ;;  %v857_v4 = vmul.f32 %v5279_v61, %v851_v59 }
 0x15f   : > { %v572_v55 = vmul.f32 %v4818_v53, %v5247_v17  ;;  %v4820_v3 = vpop.eup %4819  ;;  %v595_v16 = vadd.f32 %v5286_v28, %v583_v58 }
 0x160   : > { %v4822_v8 = vpop.eup %4821  ;;  %v854_v9 = vmul.f32 %v4820_v3, %v5235_v7  ;;  %v863_v10 = vadd.f32 %v5286_v28, %v857_v4 }
 0x161   : > { %v584_v62 = vmul.f32 %v5279_v61, %v572_v55  ;;  %v853_v11 = vmul.f32 %v4822_v8, %v5233_v6  ;;  %v4564_v6 = vld [vmem:[%s7368_s7 + $0x20] sm:$0xff] }
 0x162   : > { %v868_v12 = vpack.c.bf16 %v864_v56, %v863_v10  ;;  %v860_v13 = vmul.f32 %v5279_v61, %v854_v9 }
 0x163   : > { %4707 = vmatmul.mubr.msk.bf16.vlgmr.msra.gmra.mrb[8].mxu1 %vm497_vm0, %v867_v60  ;;  %v596_v57 = vadd.f32 %v5286_v28, %v584_v62  ;;  %v859_v14 = vmul.f32 %v5279_v61, %v853_v11  ;;  %v4565_v61 = vld [vmem:[%s7368_s7 + $0x28] sm:$0xff] }
 0x164   : > { %4710 = vmatprep.mubr.msk.bf16.mxu1 %vm5054_vm1, %v7376_v31  ;;  %v866_v7 = vadd.f32 %v5286_v28, %v860_v13  ;;  %v1068_v19 = vpack.c.bf16 %v4565_v61, %v4564_v6 }
 0x165   : > { %v604_v17 = vpack.c.bf16 %v596_v57, %v595_v16  ;;  %v865_v15 = vadd.f32 %v5286_v28, %v859_v14  ;;  %v987_v28 = vld [vmem:[%s7368_s7] sm:$0xff] }
 0x166   : > { %4735 = vmatpush3.bf16.msra.mxu1 %v1068_v19  ;;  %v991_v36 = vpack.c.bf16 %v988_v22, %v987_v28 }
 0x167   : > { %4693 = vmatmul.mubr.msk.bf16.vlgmr.msra.gmra.mrb[0].mxu0 %vm497_vm0, %v604_v17  ;;  %v869_v18 = vpack.c.bf16 %v866_v7, %v865_v15  ;;  %4736 = vmatprep.subr.bf16.mxu1 %v7376_v31 }
 0x168   : > { %4722 = vmatprep.mubr.msk.bf16.mxu0 %vm5054_vm1, %v7376_v31  ;;  %4719 = vmatpush3.bf16.msra.mxu0 %v991_v36 }
 0x169   : > { %4720 = vmatprep.subr.bf16.mxu0 %v7376_v31 }
 0x16a   : > { %4737 = vmatpush3.bf16.msra.mxu1 %v1069_v25 }
 0x16b   : > { %4711 = vmatmul.mubr.msk.bf16.gmra.mrb[12].mxu1 %vm497_vm0, %v868_v12 }
 0x16c   : > { %4714 = vmatprep.mubr.msk.bf16.mxu1 %vm5054_vm1, %v7376_v31  ;;  %4721 = vmatpush3.bf16.msra.mxu0 %v992_v32 }
 0x173   : > { %4715 = vmatmul.mubr.msk.bf16.gmra.mrb[16].mxu1 %vm497_vm0, %v869_v18 }
 0x174   : > { %4738 = vmatprep.mubr.msk.bf16.mxu1 %vm5054_vm1, %v7376_v31 }
 0x226   : > { %v5367_v33 = vpop.f32.mrb[0].mxu1 }
 0x227   : > { %v675_v34 = vsub.f32 0.0, %v5367_v33  ;;  %v4698_v35 = vpop.f32.mrb[1].mxu1  ;;  %v718_v46 = vmul.f32 %v5378_v42, %v5367_v33 }
 0x228   : > { %v5370_v38 = vpop.f32.mrb[2].mxu1 }
 0x229   : > { %v683_v39 = vmul.f32 1.442695, %v675_v34  ;;  %v676_v40 = vsub.f32 0.0, %v5370_v38  ;;  %v4699_v41 = vpop.f32.mrb[3].mxu1  ;;  %v719_v45 = vmul.f32 %v5378_v42, %v5370_v38  ;;  %v5398_v62 = vadd.f32 %v5389_v47, %v718_v46 }
 0x22b   : > { %4823 = vpow2.f32 %v683_v39  ;;  %v685_v29 = vmul.f32 1.442695, %v676_v40  ;;  %v5394_v52 = vadd.f32 %v5389_v47, %v719_v45  ;;  %v737_v14 = vsub.f32 0.0, %v5398_v62 }
 0x22d   : > { %4825 = vpow2.f32 %v685_v29  ;;  %v738_v3 = vsub.f32 0.0, %v5394_v52 }
 0x22e   : > { %v5373_v37 = vpop.f32.mrb[4].mxu1 }
 0x22f   : > { %v677_v43 = vsub.f32 0.0, %v5373_v37  ;;  %v4702_v44 = vpop.f32.mrb[5].mxu1  ;;  %v720_v57 = vmul.f32 %v5378_v42, %v5373_v37  ;;  %v747_v7 = vmul.f32 1.442695, %v738_v3 }
 0x230   : > { %v5383_v48 = vpop.f32.mrb[6].mxu1 }
 0x231   : > { %v687_v49 = vmul.f32 1.442695, %v677_v43  ;;  %v678_v50 = vsub.f32 0.0, %v5383_v48  ;;  %v4703_v30 = vpop.f32.mrb[7].mxu1  ;;  %v721_v4 = vmul.f32 %v5378_v42, %v5383_v48  ;;  %v5422_v61 = vadd.f32 %v5389_v47, %v720_v57 }
 0x233   : > { %4827 = vpow2.f32 %v687_v49  ;;  %v689_v51 = vmul.f32 1.442695, %v678_v50  ;;  %v5425_v19 = vadd.f32 %v5389_v47, %v721_v4  ;;  %v739_v45 = vsub.f32 0.0, %v5422_v61 }
 0x235   : > { %v4824_v53 = vpop.eup %4823  ;;  %4829 = vpow2.f32 %v689_v51  ;;  %v740_v3 = vsub.f32 0.0, %v5425_v19 }
 0x236   : > { %v693_v54 = vadd.f32 1.0, %v4824_v53  ;;  %v913_v55 = vpop.f32.mrb[8].mxu1 }
 0x237   : > { %v4826_v58 = vpop.eup %4825  ;;  %v936_v59 = vmul.f32 %v5378_v42, %v913_v55  ;;  %v4708_v60 = vpop.f32.mrb[9].mxu1 }
 0x238   : > { %4831 = vrcp.f32 %v693_v54  ;;  %v694_v63 = vadd.f32 1.0, %v4826_v58  ;;  %v916_v16 = vpop.f32.mrb[10].mxu1 }
 0x239   : > { %v5406_v8 = vadd.f32 %v5389_v47, %v936_v59  ;;  %v937_v17 = vmul.f32 %v5378_v42, %v916_v16  ;;  %v4709_v56 = vpop.f32.mrb[11].mxu1 }
 0x23a   : > { %4833 = vrcp.f32 %v694_v63  ;;  %v5409_v9 = vpop.f32.mrb[0].mxu0  ;;  %v745_v63 = vmul.f32 1.442695, %v737_v14  ;;  %v749_v56 = vmul.f32 1.442695, %v739_v45 }
 0x23b   : > { %v948_v10 = vsub.f32 0.0, %v5406_v8  ;;  %v5413_v11 = vadd.f32 %v5389_v47, %v937_v17  ;;  %v673_v12 = vsub.f32 0.0, %v5409_v9  ;;  %v4694_v13 = vpop.f32.mrb[1].mxu0  ;;  %v716_v15 = vmul.f32 %v5378_v42, %v5409_v9 }
 0x23c   : > { %v5419_v18 = vpop.f32.mrb[2].mxu0 }
 0x23d   : > { %v4828_v6 = vpop.eup %4827  ;;  %v954_v28 = vmul.f32 1.442695, %v948_v10  ;;  %v949_v22 = vsub.f32 0.0, %v5413_v11  ;;  %v5429_v36 = vadd.f32 %v5389_v47, %v716_v15  ;;  %v674_v24 = vsub.f32 0.0, %v5419_v18  ;;  %v4695_v26 = vpop.f32.mrb[3].mxu0 }
 0x23e   : > { %v695_v23 = vadd.f32 1.0, %v4828_v6  ;;  %v717_v25 = vmul.f32 %v5378_v42, %v5419_v18  ;;  %v921_v27 = vpop.f32.mrb[12].mxu1  ;;  %v679_v35 = vmul.f32 1.442695, %v673_v12  ;;  %v751_v15 = vmul.f32 1.442695, %v740_v3 }
 0x23f   : > { %v4830_v32 = vpop.eup %4829  ;;  %4835 = vpow2.f32 %v954_v28  ;;  %v956_v34 = vmul.f32 1.442695, %v949_v22  ;;  %v938_v39 = vmul.f32 %v5378_v42, %v921_v27  ;;  %v4712_v40 = vpop.f32.mrb[13].mxu1  ;;  %v735_v29 = vsub.f32 0.0, %v5429_v36 }
 0x240   : > { %4837 = vrcp.f32 %v695_v23  ;;  %v696_v41 = vadd.f32 1.0, %v4830_v32  ;;  %v5437_v43 = vadd.f32 %v5389_v47, %v717_v25  ;;  %v924_v44 = vpop.f32.mrb[14].mxu1  ;;  %v681_v53 = vmul.f32 1.442695, %v674_v24 }
 0x241   : > { %4839 = vpow2.f32 %v956_v34  ;;  %v5441_v49 = vadd.f32 %v5389_v47, %v938_v39  ;;  %v939_v50 = vmul.f32 %v5378_v42, %v924_v44  ;;  %v4713_v30 = vpop.f32.mrb[15].mxu1  ;;  %v741_v46 = vmul.f32 1.442695, %v735_v29 }
 0x242   : > { %v4832_v51 = vpop.eup %4831  ;;  %4841 = vrcp.f32 %v696_v41  ;;  %v736_v54 = vsub.f32 0.0, %v5437_v43 }
 0x243   : > { %v5446_v55 = vmul.f32 %v4832_v51, %v5367_v33  ;;  %4843 = vpow2.f32 %v679_v35  ;;  %v950_v58 = vsub.f32 0.0, %v5441_v49  ;;  %v5450_v59 = vadd.f32 %v5389_v47, %v939_v50 }
 0x244   : > { %v4834_v60 = vpop.eup %4833  ;;  %4845 = vpow2.f32 %v747_v7  ;;  %v743_v16 = vmul.f32 1.442695, %v736_v54 }
 0x245   : > { %7442 = vst [vmem:[#allocation13_spill] sm:$0xff] %v5446_v55  ;;  %v5454_v57 = vmul.f32 %v4834_v60, %v5370_v38  ;;  %4847 = vpow2.f32 %v741_v46  ;;  %v958_v4 = vmul.f32 1.442695, %v950_v58  ;;  %v951_v33 = vsub.f32 0.0, %v5450_v59 }
 0x246   : > { %4849 = vpow2.f32 %v681_v53  ;;  %v929_v17 = vpop.f32.mrb[16].mxu1 }
 0x247   : > { %7443 = vst [vmem:[#allocation14_spill] sm:$0xff] %v5454_v57  ;;  %4851 = vpow2.f32 %v743_v16  ;;  %v960_v10 = vmul.f32 1.442695, %v951_v33  ;;  %v940_v12 = vmul.f32 %v5378_v42, %v929_v17  ;;  %v4716_v13 = vpop.f32.mrb[17].mxu1 }
 0x248   : > { %4853 = vpow2.f32 %v745_v63  ;;  %v932_v14 = vpop.f32.mrb[18].mxu1 }
 0x249   : > { %v4836_v7 = vpop.eup %4835  ;;  %4855 = vpow2.f32 %v958_v4  ;;  %v5459_v38 = vadd.f32 %v5389_v47, %v940_v12  ;;  %v941_v6 = vmul.f32 %v5378_v42, %v932_v14  ;;  %v4717_v28 = vpop.f32.mrb[19].mxu1 }
 0x24a   : > { %v4838_v22 = vpop.eup %4837  ;;  %v966_v23 = vadd.f32 1.0, %v4836_v7  ;;  %4857 = vpow2.f32 %v960_v10 }
 0x24b   : > { %v4840_v24 = vpop.eup %4839  ;;  %v5463_v25 = vmul.f32 %v4838_v22, %v5373_v37  ;;  %4859 = vpow2.f32 %v749_v56  ;;  %v952_v26 = vsub.f32 0.0, %v5459_v38  ;;  %v5467_v27 = vadd.f32 %v5389_v47, %v941_v6 }
 0x24c   : > { %v4842_v32 = vpop.eup %4841  ;;  %4861 = vrcp.f32 %v966_v23  ;;  %v967_v34 = vadd.f32 1.0, %v4840_v24 }
 0x24d   : > { %7444 = vst [vmem:[#allocation15_spill] sm:$0xff] %v5463_v25  ;;  %v4844_v35 = vpop.eup %4843  ;;  %v5470_v42 = vmul.f32 %v4842_v32, %v5383_v48  ;;  %4863 = vpow2.f32 %v751_v15  ;;  %v962_v39 = vmul.f32 1.442695, %v952_v26  ;;  %v953_v40 = vsub.f32 0.0, %v5467_v27 }
 0x24e   : > { %v4846_v41 = vpop.eup %4845  ;;  %4865 = vrcp.f32 %v967_v34  ;;  %v691_v37 = vadd.f32 1.0, %v4844_v35 }
 0x24f   : > { %7445 = vst [vmem:[#allocation16_spill] sm:$0xff] %v5470_v42  ;;  %v4848_v29 = vpop.eup %4847  ;;  %4867 = vpow2.f32 %v962_v39  ;;  %v964_v44 = vmul.f32 1.442695, %v953_v40  ;;  %v756_v54 = vadd.f32 1.0, %v4846_v41 }
 0x250   : > { %v4850_v45 = vpop.eup %4849  ;;  %4869 = vrcp.f32 %v691_v37  ;;  %v753_v47 = vadd.f32 1.0, %v4848_v29 }
 0x251   : > { %v4852_v50 = vpop.eup %4851  ;;  %v692_v30 = vadd.f32 1.0, %v4850_v45  ;;  %4871 = vpow2.f32 %v964_v44 }
 0x252   : > { %v4854_v51 = vpop.eup %4853  ;;  %4873 = vrcp.f32 %v753_v47  ;;  %v754_v48 = vadd.f32 1.0, %v4852_v50 }
 0x253   : > { %v4856_v46 = vpop.eup %4855  ;;  %4875 = vrcp.f32 %v692_v30  ;;  %v755_v16 = vadd.f32 1.0, %v4854_v51  ;;  %v1279_v30 = vlaneseq }
 0x254   : > { %v4858_v53 = vpop.eup %4857  ;;  %4877 = vrcp.f32 %v754_v48  ;;  %v968_v58 = vadd.f32 1.0, %v4856_v46 }
 0x255   : > { %v4860_v60 = vpop.eup %4859  ;;  %v969_v63 = vadd.f32 1.0, %v4858_v53  ;;  %v5529_v51 = vshrl.u32 %v1279_v30, 7 }
 0x256   : > { %v4862_v3 = vpop.eup %4861  ;;  %4879 = vrcp.f32 %v968_v58 }
 0x257   : > { %v4864_v4 = vpop.eup %4863  ;;  %4881 = vrcp.f32 %v969_v63  ;;  %v978_v33 = vmul.f32 %v4862_v3, %v5406_v8  ;;  %7454 = vst [vmem:[#allocation25_spill] sm:$0xff] %v5529_v51  ;;  %v5532_v48 = vsub.s32 1, %v5529_v51  ;;  %v5535_v46 = vsub.s32 3, %v5529_v51 }
 0x258   : > { %v4866_v17 = vpop.eup %4865  ;;  %4883 = vrcp.f32 %v756_v54  ;;  %v758_v6 = vadd.f32 1.0, %v4864_v4  ;;  %v5544_v53 = vsub.s32 4, %v5529_v51  ;;  %v5547_v54 = vsub.s32 7, %v5529_v51 }
 0x259   : > { %v4868_v56 = vpop.eup %4867  ;;  %1239 = vrot.lane.b32.xlu0 %v978_v33, %s5055_s25  ;;  %v979_v10 = vmul.f32 %v4866_v17, %v5413_v11  ;;  %4885 = vrcp.f32 %v755_v16  ;;  %v757_v11 = vadd.f32 1.0, %v4860_v60  ;;  %v5550_v58 = vsub.s32 6, %v5529_v51 }
 0x25a   : > { %v4870_v12 = vpop.eup %4869  ;;  %v970_v13 = vadd.f32 1.0, %v4868_v56 }
 0x25b   : > { %v4872_v14 = vpop.eup %4871  ;;  %v5477_v7 = vmul.f32 %v4870_v12, %v5409_v9  ;;  %1241 = vrot.lane.b32.xlu1 %v979_v10, %s5055_s25  ;;  %v1060_v15 = vpack.c.bf16 %v979_v10, %v978_v33 }
 0x25c   : > { %v4874_v8 = vpop.eup %4873  ;;  %4887 = vrcp.f32 %v970_v13  ;;  %v971_v28 = vadd.f32 1.0, %v4872_v14 }
 0x25d   : > { %7446 = vst [vmem:[#allocation17_spill] sm:$0xff] %v5477_v7  ;;  %v4876_v22 = vpop.eup %4875  ;;  %4739 = vmatmul.mubr.msk.bf16.vlgmr.msra.gmra.mrb[20].mxu1 %vm993_vm2, %v1060_v15  ;;  %v5487_v9 = vmul.f32 %v4874_v8, %v5429_v36 }
 0x25e   : > { %v4878_v23 = vpop.eup %4877  ;;  %v5482_v24 = vmul.f32 %v4876_v22, %v5419_v18  ;;  %4889 = vrcp.f32 %v971_v28  ;;  %4742 = vmatprep.mubr.msk.bf16.mxu1 %vm5054_vm1, %v7376_v31 }
 0x25f   : > { %7448 = vst [vmem:[#allocation19_spill] sm:$0xff] %v5487_v9  ;;  %v5490_v26 = vmul.f32 %v4878_v23, %v5437_v43  ;;  %4891 = vrcp.f32 %v758_v6 }
 0x260   : > { %7447 = vst [vmem:[#allocation18_spill] sm:$0xff] %v5482_v24  ;;  %v4880_v32 = vpop.eup %4879  ;;  %4893 = vrcp.f32 %v757_v11  ;;  %v5613_v11 = vsub.s32 0, %v5529_v51 }
 0x261   : > { %7449 = vst [vmem:[#allocation20_spill] sm:$0xff] %v5490_v26  ;;  %v4882_v34 = vpop.eup %4881  ;;  %v984_v35 = vpack.c.bf16 %v5490_v26, %v5487_v9  ;;  %v980_v39 = vmul.f32 %v4880_v32, %v5441_v49 }
 0x262   : > { %v4884_v18 = vpop.eup %4883  ;;  %v981_v40 = vmul.f32 %v4882_v34, %v5450_v59 }
 0x263   : > { %1243 = vrot.lane.b32.xlu0 %v980_v39, %s5055_s25  ;;  %4723 = vmatmul.mubr.msk.bf16.vlgmr.msra.gmra.mrb[4].mxu0 %vm993_vm2, %v984_v35  ;;  %v4886_v36 = vpop.eup %4885  ;;  %v5502_v41 = vmul.f32 %v4884_v18, %v5394_v52 }
 0x264   : > { %1245 = vrot.lane.b32.xlu1 %v981_v40, %s5055_s25  ;;  %v1061_v43 = vpack.c.bf16 %v981_v40, %v980_v39  ;;  %4726 = vmatprep.mubr.msk.bf16.mxu0 %vm5054_vm1, %v7376_v31  ;;  %v5506_v49 = vmul.f32 %v4886_v36, %v5398_v62 }
 0x265   : > { %7450 = vst [vmem:[#allocation21_spill] sm:$0xff] %v5502_v41 }
 0x266   : > { %v4888_v37 = vpop.eup %4887  ;;  %4743 = vmatmul.mubr.msk.bf16.gmra.mrb[24].mxu1 %vm993_vm2, %v1061_v43  ;;  %7451 = vst [vmem:[#allocation22_spill] sm:$0xff] %v5506_v49  ;;  %v985_v44 = vpack.c.bf16 %v5502_v41, %v5506_v49 }
 0x267   : > { %v982_v59 = vmul.f32 %v4888_v37, %v5459_v38  ;;  %4746 = vmatprep.mubr.msk.bf16.mxu1 %vm5054_vm1, %v7376_v31 }
 0x268   : > { %v4890_v29 = vpop.eup %4889 }
 0x269   : > { %1247 = vrot.lane.b32.xlu0 %v982_v59, %s5055_s25  ;;  %v983_v52 = vmul.f32 %v4890_v29, %v5467_v27  ;;  %v4892_v45 = vpop.eup %4891 }
 0x26a   : > { %v4894_v47 = vpop.eup %4893  ;;  %v5520_v38 = vmul.f32 %v4892_v45, %v5425_v19  ;;  %v5538_v19 = vsub.s32 2, %v5529_v51 }
 0x26b   : > { %4727 = vmatmul.mubr.msk.bf16.gmra.mrb[8].mxu0 %vm993_vm2, %v985_v44  ;;  %1249 = vrot.lane.b32.xlu1 %v983_v52, %s5055_s25  ;;  %v1062_v62 = vpack.c.bf16 %v983_v52, %v982_v59  ;;  %v5524_v50 = vmul.f32 %v4894_v47, %v5422_v61  ;;  %v5541_v61 = vsub.s32 5, %v5529_v51 }
 0x26c   : > { %4730 = vmatprep.mubr.msk.bf16.mxu0 %vm5054_vm1, %v7376_v31  ;;  %7452 = vst [vmem:[#allocation23_spill] sm:$0xff] %v5520_v38 }
 0x26d   : > { %7453 = vst [vmem:[#allocation24_spill] sm:$0xff] %v5524_v50  ;;  %v986_v27 = vpack.c.bf16 %v5520_v38, %v5524_v50 }
 0x26e   : > { %4747 = vmatmul.mubr.msk.bf16.gmra.mrb[28].mxu1 %vm993_vm2, %v1062_v62 }
 0x273   : > { %4731 = vmatmul.mubr.msk.bf16.gmra.mrb[12].mxu0 %vm993_vm2, %v986_v27 }
 0x330   : > { %v5552_v60 = vpop.f32.mrb[20].mxu1 }
 0x331   : > { %v4740_v63 = vpop.f32.mrb[21].mxu1  ;;  %v5556_v3 = vrot.slane %v5552_v60, %v5532_v48  ;;  %v5560_v16 = vrot.slane %v5552_v60, %v5535_v46  ;;  %v5564_v4 = vrot.slane %v5552_v60, %v5538_v19  ;;  %v5570_v17 = vrot.slane %v5552_v60, %v5541_v61 }
 0x332   : > { %v5566_v33 = vpop.f32.mrb[22].mxu1  ;;  %v5574_v56 = vrot.slane %v5552_v60, %v5544_v53  ;;  %v5578_v10 = vrot.slane %v5552_v60, %v5547_v54  ;;  %v5582_v12 = vrot.slane %v5552_v60, %v5550_v58 }
 0x333   : > { %v4741_v13 = vpop.f32.mrb[23].mxu1  ;;  %v5586_v14 = vrot.slane %v5566_v33, %v5532_v48  ;;  %v5590_v15 = vrot.slane %v5566_v33, %v5535_v46  ;;  %v5594_v8 = vrot.slane %v5566_v33, %v5538_v19  ;;  %v5598_v6 = vrot.slane %v5566_v33, %v5541_v61 }
 0x334   : > { %v5602_v28 = vrot.slane %v5566_v33, %v5544_v53  ;;  %v5606_v22 = vrot.slane %v5566_v33, %v5547_v54  ;;  %v5610_v23 = vrot.slane %v5566_v33, %v5550_v58 }
 0x335   : > { %7455 = vst [vmem:[#allocation26_spill] sm:$0xff] %v5598_v6 }
 0x336   : > { %7456 = vst [vmem:[#allocation27_spill] sm:$0xff] %v5602_v28  ;;  %7457 = vst [vmem:[#allocation28_spill] sm:$0xff] %v5606_v22  ;;  %v5615_v32 = vpop.f32.mrb[4].mxu0 }
 0x337   : > { %7458 = vst [vmem:[#allocation29_spill] sm:$0xff] %v5610_v23  ;;  %7459 = vst [vmem:[#allocation30_spill] sm:$0xff] %v5615_v32  ;;  %v4724_v34 = vpop.f32.mrb[5].mxu0  ;;  %v5619_v35 = vrot.slane %v5615_v32, %v5532_v48  ;;  %v5623_v39 = vrot.slane %v5615_v32, %v5613_v11  ;;  %v5635_v59 = vrot.slane %v5615_v32, %v5535_v46 }
 0x338   : > { %v5625_v18 = vpop.f32.mrb[6].mxu0  ;;  %v5639_v29 = vrot.slane %v5615_v32, %v5538_v19  ;;  %v5669_v63 = vrot.slane %v5615_v32, %v5541_v61  ;;  %v5699_v2 = vrot.slane %v5615_v32, %v5544_v53  ;;  %v2062_v38 = vrot.slane %v5615_v32, %v5547_v54 }
 0x339   : > { %2017 = vbcast.lane.b32.xlu1 %v5619_v35, 288  ;;  %2009 = vbcast.lane.b32.xlu0 %v5623_v39, 288  ;;  %v4725_v40 = vpop.f32.mrb[7].mxu0  ;;  %v5629_v36 = vpop.f32.mrb[24].mxu1 }
 0x33a   : > { %7460 = vst [vmem:[#allocation31_spill] sm:$0xff] %v5629_v36  ;;  %v4744_v43 = vpop.f32.mrb[25].mxu1  ;;  %v5643_v44 = vrot.slane %v5629_v36, %v5538_v19  ;;  %v5647_v52 = vrot.slane %v5629_v36, %v5532_v48  ;;  %v5651_v62 = vrot.slane %v5629_v36, %v5544_v53  ;;  %v5655_v47 = vrot.slane %v5629_v36, %v5535_v46 }
 0x33b   : > { %v5631_v37 = vpop.f32.mrb[26].mxu1  ;;  %v5659_v27 = vrot.slane %v5629_v36, %v5550_v58  ;;  %v5663_v30 = vrot.slane %v5629_v36, %v5541_v61  ;;  %v5673_v13 = vrot.slane %v5629_v36, %v5547_v54 }
 0x33c   : > { %7461 = vst [vmem:[#allocation32_spill] sm:$0xff] %v5631_v37  ;;  %7462 = vst [vmem:[#allocation33_spill] sm:$0xff] %v5643_v44  ;;  %v4745_v45 = vpop.f32.mrb[27].mxu1  ;;  %v5677_v34 = vrot.slane %v5631_v37, %v5538_v19  ;;  %v5683_v43 = vrot.slane %v5631_v37, %v5532_v48  ;;  %v5691_v31 = vrot.slane %v5631_v37, %v5535_v46 }
 0x33d   : > { %7463 = vst [vmem:[#allocation34_spill] sm:$0xff] %v5647_v52  ;;  %7464 = vst [vmem:[#allocation35_spill] sm:$0xff] %v5651_v62  ;;  %2033 = vbcast.lane.b32.xlu1 %v5635_v59, 288  ;;  %2025 = vbcast.lane.b32.xlu0 %v5639_v29, 288  ;;  %v5687_v45 = vrot.slane %v5631_v37, %v5544_v53  ;;  %v5695_v5 = vrot.slane %v5631_v37, %v5550_v58 }
 0x33e   : > { %7465 = vst [vmem:[#allocation36_spill] sm:$0xff] %v5655_v47  ;;  %7466 = vst [vmem:[#allocation37_spill] sm:$0xff] %v5659_v27  ;;  %v5679_v40 = vpop.f32.mrb[8].mxu0  ;;  %v5775_v26 = vrot.slane %v5631_v37, %v5547_v54 }
 0x33f   : > { %7467 = vst [vmem:[#allocation38_spill] sm:$0xff] %v5663_v30  ;;  %7468 = vst [vmem:[#allocation39_spill] sm:$0xff] %v5673_v13  ;;  %v4728_v1 = vpop.f32.mrb[9].mxu0  ;;  %v5703_v0 = vrot.slane %v5679_v40, %v5532_v48  ;;  %v5707_v21 = vrot.slane %v5679_v40, %v5535_v46  ;;  %v5711_v20 = vrot.slane %v5679_v40, %v5538_v19 }
 0x340   : > { %7469 = vst [vmem:[#allocation40_spill] sm:$0xff] %v5677_v34  ;;  %7470 = vst [vmem:[#allocation41_spill] sm:$0xff] %v5679_v40  ;;  %v5713_v42 = vpop.f32.mrb[10].mxu0  ;;  %v5717_v1 = vrot.slane %v5679_v40, %v5541_v61  ;;  %v5721_v25 = vrot.slane %v5679_v40, %v5544_v53  ;;  %v5725_v57 = vrot.slane %v5679_v40, %v5547_v54 }
 0x341   : > { %7471 = vst [vmem:[#allocation42_spill] sm:$0xff] %v5683_v43  ;;  %7472 = vst [vmem:[#allocation43_spill] sm:$0xff] %v5687_v45  ;;  %v5729_v7 = vrot.slane %v5679_v40, %v5550_v58  ;;  %2049 = vbcast.lane.b32.xlu1 %v5669_v63, 288  ;;  %2041 = vbcast.lane.b32.xlu0 %v5699_v2, 288  ;;  %v4729_v55 = vpop.f32.mrb[11].mxu0  ;;  %v5733_v24 = vpop.f32.mrb[28].mxu1  ;;  %v5739_v50 = vrot.slane %v5713_v42, %v5532_v48 }
 0x342   : > { %7473 = vst [vmem:[#allocation44_spill] sm:$0xff] %v5691_v31  ;;  %7474 = vst [vmem:[#allocation45_spill] sm:$0xff] %v5695_v5  ;;  %v5743_v41 = vrot.slane %v5713_v42, %v5535_v46  ;;  %v4748_v49 = vpop.f32.mrb[29].mxu1  ;;  %v5747_v5 = vrot.slane %v5713_v42, %v5538_v19  ;;  %v5751_v55 = vrot.slane %v5713_v42, %v5541_v61 }
 0x343   : > { %7475 = vst [vmem:[#allocation46_spill] sm:$0xff] %v5713_v42  ;;  %7476 = vst [vmem:[#allocation47_spill] sm:$0xff] %v5733_v24  ;;  %v5755_v31 = vrot.slane %v5713_v42, %v5544_v53  ;;  %v5759_v45 = vrot.slane %v5713_v42, %v5547_v54  ;;  %v5761_v43 = vpop.f32.mrb[30].mxu1  ;;  %v2054_v49 = vrot.slane %v5615_v32, %v5550_v58 }
 0x344   : > { %v5767_v34 = vrot.slane %v5713_v42, %v5550_v58  ;;  %v5771_v13 = vrot.slane %v5631_v37, %v5541_v61  ;;  %7478 = vst [vmem:[#allocation49_spill] sm:$0xff] %v5775_v26  ;;  %v4749_v9 = vpop.f32.mrb[31].mxu1  ;;  %v5779_v30 = vrot.slane %v5733_v24, %v5538_v19  ;;  %v5783_v51 = vrot.slane %v5733_v24, %v5532_v48 }
 0x345   : > { %v5787_v27 = vrot.slane %v5733_v24, %v5544_v53  ;;  %2065 = vbcast.lane.b32.xlu1 %v2062_v38, 288  ;;  %2057 = vbcast.lane.b32.xlu0 %v2054_v49, 288  ;;  %v5795_v9 = vrot.slane %v5733_v24, %v5550_v58  ;;  %v5881_v23 = vrot.slane %v5761_v43, %v5535_v46 }
 0x346   : > { %7477 = vst [vmem:[#allocation48_spill] sm:$0xff] %v5771_v13  ;;  %7479 = vst [vmem:[#allocation50_spill] sm:$0xff] %v5779_v30  ;;  %v5791_v13 = vrot.slane %v5733_v24, %v5535_v46  ;;  %v5799_v30 = vrot.slane %v5733_v24, %v5541_v61  ;;  %v5805_v26 = vpop.f32.mrb[12].mxu0  ;;  %v5885_v22 = vrot.slane %v5761_v43, %v5550_v58 }
 0x347   : > { %7480 = vst [vmem:[#allocation51_spill] sm:$0xff] %v5783_v51  ;;  %7481 = vst [vmem:[#allocation52_spill] sm:$0xff] %v5787_v27  ;;  %v5803_v51 = vrot.slane %v5733_v24, %v5547_v54  ;;  %v5809_v27 = vrot.slane %v5761_v43, %v5538_v19  ;;  %v4732_v47 = vpop.f32.mrb[13].mxu0  ;;  %v5847_v62 = vrot.slane %v5805_v26, %v5550_v58 }
 0x348   : > { %7482 = vst [vmem:[#allocation53_spill] sm:$0xff] %v5791_v13  ;;  %7483 = vst [vmem:[#allocation54_spill] sm:$0xff] %v5795_v9  ;;  %v5813_v13 = vrot.slane %v5761_v43, %v5532_v48  ;;  %v5817_v9 = vrot.slane %v5761_v43, %v5544_v53  ;;  %v5831_v24 = vpop.f32.mrb[14].mxu0  ;;  %v5839_v47 = vrot.slane %v5805_v26, %v5544_v53 }
 0x349   : > { %7484 = vst [vmem:[#allocation55_spill] sm:$0xff] %v5799_v30  ;;  %7485 = vst [vmem:[#allocation56_spill] sm:$0xff] %v5803_v51  ;;  %v5821_v30 = vrot.slane %v5805_v26, %v5532_v48  ;;  %v5825_v51 = vrot.slane %v5805_v26, %v5535_v46  ;;  %3461 = vbcast.lane.b32.xlu1 %v5619_v35, 296  ;;  %3457 = vbcast.lane.b32.xlu0 %v5623_v39, 296  ;;  %v4733_v52 = vpop.f32.mrb[15].mxu0 }
 0x34a   : > { %7486 = vst [vmem:[#allocation57_spill] sm:$0xff] %v5805_v26  ;;  %7487 = vst [vmem:[#allocation58_spill] sm:$0xff] %v5809_v27  ;;  %v5829_v27 = vrot.slane %v5805_v26, %v5538_v19  ;;  %v5853_v44 = vrot.slane %v5831_v24, %v5532_v48  ;;  %v5857_v37 = vrot.slane %v5831_v24, %v5535_v46 }
 0x34b   : > { %7488 = vst [vmem:[#allocation59_spill] sm:$0xff] %v5813_v13  ;;  %7489 = vst [vmem:[#allocation60_spill] sm:$0xff] %v5817_v9  ;;  %v5835_v13 = vrot.slane %v5805_v26, %v5541_v61  ;;  %v5843_v9 = vrot.slane %v5805_v26, %v5547_v54  ;;  %v5861_v36 = vrot.slane %v5831_v24, %v5538_v19 }
 0x34c   : > { %7490 = vst [vmem:[#allocation61_spill] sm:$0xff] %v5831_v24  ;;  %v5865_v32 = vrot.slane %v5831_v24, %v5541_v61  ;;  %v5869_v35 = vrot.slane %v5831_v24, %v5544_v53  ;;  %v5873_v39 = vrot.slane %v5831_v24, %v5547_v54  ;;  %v5877_v52 = vrot.slane %v5831_v24, %v5550_v58 }
 0x34d   : > { %7491 = vst [vmem:[#allocation62_spill] sm:$0xff] %v5881_v23  ;;  %7492 = vst [vmem:[#allocation63_spill] sm:$0xff] %v5885_v22  ;;  %v5889_v28 = vrot.slane %v5761_v43, %v5541_v61  ;;  %v5893_v6 = vrot.slane %v5761_v43, %v5547_v54  ;;  %3469 = vbcast.lane.b32.xlu1 %v5635_v59, 296  ;;  %3465 = vbcast.lane.b32.xlu0 %v5639_v29, 296 }
 0x34e   : > { %v2078_v22 = vrot.slane %v5625_v18, %v5532_v48  ;;  %v2086_v59 = vrot.slane %v5625_v18, %v5538_v19  ;;  %v2126_v48 = vrot.slane %v5625_v18, %v5547_v54  ;;  %v2118_v29 = vrot.slane %v5625_v18, %v5550_v58 }
 0x34f   : > { %7493 = vst [vmem:[#allocation64_spill] sm:$0xff] %v5889_v28  ;;  %7494 = vst [vmem:[#allocation65_spill] sm:$0xff] %v5893_v6  ;;  %v2070_v28 = vrot.slane %v5625_v18, %v5613_v11  ;;  %v2094_v6 = vrot.slane %v5625_v18, %v5535_v46  ;;  %v2134_v46 = vrot.slane %v5679_v40, %v5613_v11 }
 0x350   : > { %v2198_v19 = vrot.slane %v5713_v42, %v5613_v11 }
 0x351   : > { %3477 = vbcast.lane.b32.xlu1 %v5669_v63, 296  ;;  %3473 = vbcast.lane.b32.xlu0 %v5699_v2, 296  ;;  %v2110_v2 = vrot.slane %v5625_v18, %v5541_v61 }
 0x355   : > { %3485 = vbcast.lane.b32.xlu1 %v2062_v38, 296  ;;  %3481 = vbcast.lane.b32.xlu0 %v2054_v49, 296  ;;  %v2102_v38 = vrot.slane %v5625_v18, %v5544_v53 }
 0x359   : > { %2081 = vbcast.lane.b32.xlu1 %v2078_v22, 288  ;;  %2073 = vbcast.lane.b32.xlu0 %v2070_v28, 288 }
 0x35d   : > { %2097 = vbcast.lane.b32.xlu1 %v2094_v6, 288  ;;  %2089 = vbcast.lane.b32.xlu0 %v2086_v59, 288 }
 0x361   : > { %2113 = vbcast.lane.b32.xlu1 %v2110_v2, 288  ;;  %2105 = vbcast.lane.b32.xlu0 %v2102_v38, 288 }
 0x365   : > { %2129 = vbcast.lane.b32.xlu1 %v2126_v48, 288  ;;  %2121 = vbcast.lane.b32.xlu0 %v2118_v29, 288 }
 0x369   : > { %3493 = vbcast.lane.b32.xlu1 %v2078_v22, 296  ;;  %3489 = vbcast.lane.b32.xlu0 %v2070_v28, 296  ;;  %v2262_v22 = vrot.slane %v5805_v26, %v5613_v11 }
 0x36d   : > { %3501 = vbcast.lane.b32.xlu1 %v2094_v6, 296  ;;  %3497 = vbcast.lane.b32.xlu0 %v2086_v59, 296 }
 0x371   : > { %3509 = vbcast.lane.b32.xlu1 %v2110_v2, 296  ;;  %3505 = vbcast.lane.b32.xlu0 %v2102_v38, 296  ;;  %v2390_v38 = vrot.slane %v5552_v60, %v5613_v11 }
 0x375   : > { %3517 = vbcast.lane.b32.xlu1 %v2126_v48, 296  ;;  %3513 = vbcast.lane.b32.xlu0 %v2118_v29, 296 }
 0x379   : > { %2145 = vbcast.lane.b32.xlu1 %v5703_v0, 288  ;;  %2137 = vbcast.lane.b32.xlu0 %v2134_v46, 288 }
 0x37d   : > { %2161 = vbcast.lane.b32.xlu1 %v5707_v21, 288  ;;  %2153 = vbcast.lane.b32.xlu0 %v5711_v20, 288 }
 0x381   : > { %2177 = vbcast.lane.b32.xlu1 %v5717_v1, 288  ;;  %2169 = vbcast.lane.b32.xlu0 %v5721_v25, 288 }
 0x385   : > { %2193 = vbcast.lane.b32.xlu1 %v5725_v57, 288  ;;  %2185 = vbcast.lane.b32.xlu0 %v5729_v7, 288 }
 0x389   : > { %3525 = vbcast.lane.b32.xlu1 %v5703_v0, 296  ;;  %3521 = vbcast.lane.b32.xlu0 %v2134_v46, 296  ;;  %v5936_v0 = vpop.permute.xlu0 %1239 }
 0x38d   : > { %3533 = vbcast.lane.b32.xlu1 %v5707_v21, 296  ;;  %3529 = vbcast.lane.b32.xlu0 %v5711_v20, 296  ;;  %v5938_v20 = vpop.permute.xlu1 %1241  ;;  %v5942_v21 = vpop.permute.xlu0 %1243 }
 0x38e   : > { %7495 = vst [vmem:[#allocation66_spill] sm:$0xff] %v5942_v21 }
 0x391   : > { %3541 = vbcast.lane.b32.xlu1 %v5717_v1, 296  ;;  %3537 = vbcast.lane.b32.xlu0 %v5721_v25, 296  ;;  %v5948_v25 = vpop.permute.xlu0 %1247 }
 0x392   : > { %7497 = vst [vmem:[#allocation68_spill] sm:$0xff] %v5948_v25 }
 0x395   : > { %3549 = vbcast.lane.b32.xlu1 %v5725_v57, 296  ;;  %3545 = vbcast.lane.b32.xlu0 %v5729_v7, 296  ;;  %v5944_v57 = vpop.permute.xlu1 %1245 }
 0x396   : > { %7496 = vst [vmem:[#allocation67_spill] sm:$0xff] %v5944_v57 }
 0x399   : > { %2209 = vbcast.lane.b32.xlu1 %v5739_v50, 288  ;;  %2201 = vbcast.lane.b32.xlu0 %v2198_v19, 288  ;;  %v5950_v7 = vpop.permute.xlu1 %1249 }
 0x39a   : > { %7498 = vst [vmem:[#allocation69_spill] sm:$0xff] %v5950_v7 }
 0x39d   : > { %2225 = vbcast.lane.b32.xlu1 %v5743_v41, 288  ;;  %2217 = vbcast.lane.b32.xlu0 %v5747_v5, 288 }
 0x3a1   : > { %2241 = vbcast.lane.b32.xlu1 %v5751_v55, 288  ;;  %2233 = vbcast.lane.b32.xlu0 %v5755_v31, 288 }
 0x3a5   : > { %2257 = vbcast.lane.b32.xlu1 %v5759_v45, 288  ;;  %2249 = vbcast.lane.b32.xlu0 %v5767_v34, 288 }
 0x3a9   : > { %3557 = vbcast.lane.b32.xlu1 %v5739_v50, 296  ;;  %3553 = vbcast.lane.b32.xlu0 %v2198_v19, 296 }
 0x3ab   : > { %v5953_v61 = vpop.permute.xlu1 %2017  ;;  %v5955_v53 = vpop.permute.xlu0 %2009 }
 0x3ad   : > { %3565 = vbcast.lane.b32.xlu1 %v5743_v41, 296  ;;  %3561 = vbcast.lane.b32.xlu0 %v5747_v5, 296 }
 0x3af   : > { %v5959_v54 = vpop.permute.xlu1 %2033  ;;  %v5961_v58 = vpop.permute.xlu0 %2025 }
 0x3b1   : > { %3573 = vbcast.lane.b32.xlu1 %v5751_v55, 296  ;;  %3569 = vbcast.lane.b32.xlu0 %v5755_v31, 296 }
 0x3b3   : > { %v5965_v6 = vpop.permute.xlu1 %2049  ;;  %v5967_v50 = vpop.permute.xlu0 %2041 }
 0x3b5   : > { %3581 = vbcast.lane.b32.xlu1 %v5759_v45, 296  ;;  %3577 = vbcast.lane.b32.xlu0 %v5767_v34, 296 }
 0x3b7   : > { %v5971_v28 = vpop.permute.xlu1 %2065  ;;  %v5973_v41 = vpop.permute.xlu0 %2057 }
 0x3b9   : > { %1144 = vrot.lane.b32.xlu1 %v5566_v33, %s5055_s25  ;;  %1142 = vrot.lane.b32.xlu0 %v5552_v60, %s5055_s25 }
 0x3bb   : > { %v5979_v5 = vpop.permute.xlu1 %3461  ;;  %v5981_v31 = vpop.permute.xlu0 %3457 }
 0x3bd   : > { %2273 = vbcast.lane.b32.xlu1 %v5821_v30, 288  ;;  %2265 = vbcast.lane.b32.xlu0 %v2262_v22, 288 }
 0x3bf   : > { %v5986_v63 = vpop.permute.xlu1 %3469  ;;  %v5988_v34 = vpop.permute.xlu0 %3465 }
 0x3c1   : > { %2289 = vbcast.lane.b32.xlu1 %v5825_v51, 288  ;;  %2281 = vbcast.lane.b32.xlu0 %v5829_v27, 288 }
 0x3c3   : > { %v5992_v45 = vpop.permute.xlu1 %3477  ;;  %v5994_v1 = vpop.permute.xlu0 %3473 }
 0x3c5   : > { %2305 = vbcast.lane.b32.xlu1 %v5835_v13, 288  ;;  %2297 = vbcast.lane.b32.xlu0 %v5839_v47, 288 }
 0x3c7   : > { %v5998_v55 = vpop.permute.xlu1 %3485  ;;  %v6000_v49 = vpop.permute.xlu0 %3481 }
 0x3c9   : > { %2321 = vbcast.lane.b32.xlu1 %v5843_v9, 288  ;;  %2313 = vbcast.lane.b32.xlu0 %v5847_v62, 288 }
 0x3cb   : > { %v6004_v59 = vpop.permute.xlu1 %2081  ;;  %v6006_v2 = vpop.permute.xlu0 %2073 }
 0x3cd   : > { %2401 = vbcast.lane.b32.xlu1 %v5556_v3, 288  ;;  %2393 = vbcast.lane.b32.xlu0 %v2390_v38, 288 }
 0x3cf   : > { %v6011_v48 = vpop.permute.xlu1 %2097  ;;  %v6013_v29 = vpop.permute.xlu0 %2089 }
 0x3d1   : > { %2417 = vbcast.lane.b32.xlu1 %v5560_v16, 288  ;;  %2409 = vbcast.lane.b32.xlu0 %v5564_v4, 288 }
 0x3d3   : > { %v6017_v46 = vpop.permute.xlu1 %2113  ;;  %v6019_v19 = vpop.permute.xlu0 %2105 }
 0x3d5   : > { %2433 = vbcast.lane.b32.xlu1 %v5570_v17, 288  ;;  %2425 = vbcast.lane.b32.xlu0 %v5574_v56, 288 }
 0x3d7   : > { %v6023_v60 = vpop.permute.xlu1 %2129  ;;  %v6025_v7 = vpop.permute.xlu0 %2121 }
 0x3d9   : > { %2449 = vbcast.lane.b32.xlu1 %v5578_v10, 288  ;;  %2441 = vbcast.lane.b32.xlu0 %v5582_v12, 288 }
 0x3db   : > { %v6029_v25 = vpop.permute.xlu1 %3493  ;;  %v6031_v26 = vpop.permute.xlu0 %3489 }
 0x3dd   : > { %3589 = vbcast.lane.b32.xlu1 %v5821_v30, 296  ;;  %3585 = vbcast.lane.b32.xlu0 %v2262_v22, 296 }
 0x3df   : > { %v6034_v57 = vpop.permute.xlu1 %3501  ;;  %v6036_v21 = vpop.permute.xlu0 %3497 }
 0x3e0   : > { %7499 = vst [vmem:[#allocation70_spill] sm:$0xff] %v6034_v57  ;;  %7500 = vst [vmem:[#allocation71_spill] sm:$0xff] %v6036_v21 }
 0x3e1   : > { %3597 = vbcast.lane.b32.xlu1 %v5825_v51, 296  ;;  %3593 = vbcast.lane.b32.xlu0 %v5829_v27, 296 }
 0x3e3   : > { %v6040_v42 = vpop.permute.xlu1 %3509  ;;  %v6042_v40 = vpop.permute.xlu0 %3505 }
 0x3e4   : > { %7501 = vst [vmem:[#allocation72_spill] sm:$0xff] %v6040_v42  ;;  %7502 = vst [vmem:[#allocation73_spill] sm:$0xff] %v6042_v40 }
 0x3e5   : > { %3605 = vbcast.lane.b32.xlu1 %v5835_v13, 296  ;;  %3601 = vbcast.lane.b32.xlu0 %v5839_v47, 296 }
 0x3e7   : > { %v6046_v23 = vpop.permute.xlu1 %3517  ;;  %v6048_v30 = vpop.permute.xlu0 %3513 }
 0x3e8   : > { %7503 = vst [vmem:[#allocation74_spill] sm:$0xff] %v6046_v23  ;;  %7504 = vst [vmem:[#allocation75_spill] sm:$0xff] %v6048_v30  ;;  %v7561_v23 = vld [vmem:[#allocation20_spill] sm:$0xff] }
 0x3e9   : > { %3613 = vbcast.lane.b32.xlu1 %v5843_v9, 296  ;;  %3609 = vbcast.lane.b32.xlu0 %v5847_v62, 296  ;;  %v1258_v40 = vsel %vm993_vm2, %v7561_v23, %v5938_v20 }
 0x3eb   : > { %v6052_v22 = vpop.permute.xlu1 %2145  ;;  %v6054_v51 = vpop.permute.xlu0 %2137 }
 0x3ec   : > { %7505 = vst [vmem:[#allocation76_spill] sm:$0xff] %v6052_v22  ;;  %7506 = vst [vmem:[#allocation77_spill] sm:$0xff] %v6054_v51 }
 0x3ed   : > { %3653 = vbcast.lane.b32.xlu1 %v5556_v3, 296  ;;  %3649 = vbcast.lane.b32.xlu0 %v2390_v38, 296 }
 0x3ef   : > { %v6057_v27 = vpop.permute.xlu1 %2161  ;;  %v6059_v13 = vpop.permute.xlu0 %2153 }
 0x3f0   : > { %7507 = vst [vmem:[#allocation78_spill] sm:$0xff] %v6057_v27  ;;  %7508 = vst [vmem:[#allocation79_spill] sm:$0xff] %v6059_v13  ;;  %v2454_v27 = vrot.slane %v5566_v33, %v5613_v11 }
 0x3f1   : > { %3661 = vbcast.lane.b32.xlu1 %v5560_v16, 296  ;;  %3657 = vbcast.lane.b32.xlu0 %v5564_v4, 296  ;;  %v2326_v4 = vrot.slane %v5831_v24, %v5613_v11 }
 0x3f3   : > { %v6063_v47 = vpop.permute.xlu1 %2177  ;;  %v6065_v9 = vpop.permute.xlu0 %2169 }
 0x3f4   : > { %7509 = vst [vmem:[#allocation80_spill] sm:$0xff] %v6063_v47  ;;  %7510 = vst [vmem:[#allocation81_spill] sm:$0xff] %v6065_v9 }
 0x3f5   : > { %3669 = vbcast.lane.b32.xlu1 %v5570_v17, 296  ;;  %3665 = vbcast.lane.b32.xlu0 %v5574_v56, 296 }
 0x3f7   : > { %v6069_v62 = vpop.permute.xlu1 %2193  ;;  %v6071_v3 = vpop.permute.xlu0 %2185 }
 0x3f8   : > { %7511 = vst [vmem:[#allocation82_spill] sm:$0xff] %v6069_v62  ;;  %7512 = vst [vmem:[#allocation83_spill] sm:$0xff] %v6071_v3 }
 0x3f9   : > { %3677 = vbcast.lane.b32.xlu1 %v5578_v10, 296  ;;  %3673 = vbcast.lane.b32.xlu0 %v5582_v12, 296 }
 0x3fb   : > { %v6075_v38 = vpop.permute.xlu1 %3525  ;;  %v6077_v16 = vpop.permute.xlu0 %3521 }
 0x3fc   : > { %7513 = vst [vmem:[#allocation84_spill] sm:$0xff] %v6075_v38  ;;  %7514 = vst [vmem:[#allocation85_spill] sm:$0xff] %v6077_v16 }
 0x3fd   : > { %2337 = vbcast.lane.b32.xlu1 %v5853_v44, 288  ;;  %2329 = vbcast.lane.b32.xlu0 %v2326_v4, 288 }
 0x3ff   : > { %v6082_v17 = vpop.permute.xlu1 %3533  ;;  %v6084_v56 = vpop.permute.xlu0 %3529 }
 0x400   : > { %7515 = vst [vmem:[#allocation86_spill] sm:$0xff] %v6082_v17  ;;  %7516 = vst [vmem:[#allocation87_spill] sm:$0xff] %v6084_v56  ;;  %v7558_v17 = vld [vmem:[#allocation25_spill] sm:$0xff]  ;;  %v7559_v56 = vld [vmem:[#allocation38_spill] sm:$0xff] }
 0x401   : > { %2353 = vbcast.lane.b32.xlu1 %v5857_v37, 288  ;;  %2345 = vbcast.lane.b32.xlu0 %v5861_v36, 288 }
 0x403   : > { %v6088_v10 = vpop.permute.xlu1 %3541  ;;  %v6090_v12 = vpop.permute.xlu0 %3537 }
 0x404   : > { %7517 = vst [vmem:[#allocation88_spill] sm:$0xff] %v6088_v10  ;;  %7518 = vst [vmem:[#allocation89_spill] sm:$0xff] %v6090_v12  ;;  %v7531_v10 = vld [vmem:[#allocation28_spill] sm:$0xff] }
 0x405   : > { %2369 = vbcast.lane.b32.xlu1 %v5865_v32, 288  ;;  %2361 = vbcast.lane.b32.xlu0 %v5869_v35, 288 }
 0x407   : > { %v6094_v24 = vpop.permute.xlu1 %3549  ;;  %v6096_v62 = vpop.permute.xlu0 %3545 }
 0x408   : > { %7519 = vst [vmem:[#allocation90_spill] sm:$0xff] %v6094_v24  ;;  %7520 = vst [vmem:[#allocation91_spill] sm:$0xff] %v6096_v62 }
 0x409   : > { %2385 = vbcast.lane.b32.xlu1 %v5873_v39, 288  ;;  %2377 = vbcast.lane.b32.xlu0 %v5877_v52, 288 }
 0x40b   : > { %v6100_v47 = vpop.permute.xlu1 %2209  ;;  %v6102_v3 = vpop.permute.xlu0 %2201 }
 0x40c   : > { %7521 = vst [vmem:[#allocation92_spill] sm:$0xff] %v6100_v47  ;;  %7522 = vst [vmem:[#allocation93_spill] sm:$0xff] %v6102_v3  ;;  %v7527_v47 = vld [vmem:[#allocation26_spill] sm:$0xff]  ;;  %v7528_v3 = vld [vmem:[#allocation27_spill] sm:$0xff] }
 0x40d   : > { %2465 = vbcast.lane.b32.xlu1 %v5586_v14, 288  ;;  %2457 = vbcast.lane.b32.xlu0 %v2454_v27, 288 }
 0x40f   : > { %v6107_v9 = vpop.permute.xlu1 %2225  ;;  %v6109_v22 = vpop.permute.xlu0 %2217 }
 0x410   : > { %7523 = vst [vmem:[#allocation94_spill] sm:$0xff] %v6107_v9  ;;  %7524 = vst [vmem:[#allocation95_spill] sm:$0xff] %v6109_v22  ;;  %v7532_v9 = vld [vmem:[#allocation29_spill] sm:$0xff] }
 0x411   : > { %2481 = vbcast.lane.b32.xlu1 %v5590_v15, 288  ;;  %2473 = vbcast.lane.b32.xlu0 %v5594_v8, 288 }
 0x413   : > { %v6113_v24 = vpop.permute.xlu1 %2241  ;;  %v6115_v13 = vpop.permute.xlu0 %2233 }
 0x414   : > { %7525 = vst [vmem:[#allocation96_spill] sm:$0xff] %v6113_v24  ;;  %7526 = vst [vmem:[#allocation97_spill] sm:$0xff] %v6115_v13 }
 0x415   : > { %2497 = vbcast.lane.b32.xlu1 %v7527_v47, 288  ;;  %2489 = vbcast.lane.b32.xlu0 %v7528_v3, 288 }
 0x417   : > { %v6119_v33 = vpop.permute.xlu1 %2257  ;;  %v6121_v51 = vpop.permute.xlu0 %2249 }
 0x418   : > { %7529 = vst [vmem:[#allocation26_spill] sm:$0xff] %v6119_v33  ;;  %7530 = vst [vmem:[#allocation27_spill] sm:$0xff] %v6121_v51 }
 0x419   : > { %2513 = vbcast.lane.b32.xlu1 %v7531_v10, 288  ;;  %2505 = vbcast.lane.b32.xlu0 %v7532_v9, 288 }
 0x41b   : > { %v6125_v22 = vpop.permute.xlu1 %3557  ;;  %v6127_v62 = vpop.permute.xlu0 %3553 }
 0x41c   : > { %7533 = vst [vmem:[#allocation28_spill] sm:$0xff] %v6125_v22  ;;  %7534 = vst [vmem:[#allocation29_spill] sm:$0xff] %v6127_v62 }
 0x41d   : > { %3621 = vbcast.lane.b32.xlu1 %v5853_v44, 296  ;;  %3617 = vbcast.lane.b32.xlu0 %v2326_v4, 296 }
 0x41f   : > { %v6130_v24 = vpop.permute.xlu1 %3565  ;;  %v6132_v13 = vpop.permute.xlu0 %3561 }
 0x420   : > { %7535 = vst [vmem:[#allocation98_spill] sm:$0xff] %v6130_v24  ;;  %7536 = vst [vmem:[#allocation99_spill] sm:$0xff] %v6132_v13 }
 0x421   : > { %3629 = vbcast.lane.b32.xlu1 %v5857_v37, 296  ;;  %3625 = vbcast.lane.b32.xlu0 %v5861_v36, 296  ;;  %v6151_v36 = vld [vmem:[%s7369_s8] ss:$0 sm:$0xff] }
 0x422   : > { %7541 = vst [vmem:[#allocation104_spill] sm:$0xff] %v6151_v36 }
 0x423   : > { %v6136_v33 = vpop.permute.xlu1 %3573  ;;  %v6138_v51 = vpop.permute.xlu0 %3569 }
 0x424   : > { %7537 = vst [vmem:[#allocation100_spill] sm:$0xff] %v6136_v33  ;;  %7538 = vst [vmem:[#allocation101_spill] sm:$0xff] %v6138_v51  ;;  %v7542_v33 = vld [vmem:[#allocation30_spill] sm:$0xff] }
 0x425   : > { %3637 = vbcast.lane.b32.xlu1 %v5865_v32, 296  ;;  %3633 = vbcast.lane.b32.xlu0 %v5869_v35, 296 }
 0x427   : > { %v6142_v22 = vpop.permute.xlu1 %3581  ;;  %v6144_v44 = vpop.permute.xlu0 %3577 }
 0x428   : > { %7539 = vst [vmem:[#allocation102_spill] sm:$0xff] %v6142_v22  ;;  %7540 = vst [vmem:[#allocation103_spill] sm:$0xff] %v6144_v44 }
 0x429   : > { %3645 = vbcast.lane.b32.xlu1 %v5873_v39, 296  ;;  %3641 = vbcast.lane.b32.xlu0 %v5877_v52, 296 }
 0x42b   : > { %v1145_v37 = vpop.permute.xlu1 %1144  ;;  %v1143_v4 = vpop.permute.xlu0 %1142 }
 0x42c   : > { %v1161_v32 = vsel %vm993_vm2, %v5625_v18, %v1145_v37  ;;  %v1160_v35 = vsel %vm993_vm2, %v7542_v33, %v1143_v4 }
 0x42d   : > { %v6158_v22 = vadd.f32 %v6151_v36, %v1161_v32  ;;  %v6161_v39 = vadd.f32 %v6151_v36, %v1160_v35  ;;  %3685 = vbcast.lane.b32.xlu1 %v5586_v14, 296  ;;  %3681 = vbcast.lane.b32.xlu0 %v2454_v27, 296  ;;  %v7560_v36 = vld [vmem:[#allocation19_spill] sm:$0xff] }
 0x42e   : > { %v1257_v30 = vsel %vm993_vm2, %v7560_v36, %v5936_v0 }
 0x42f   : > { %v1186_v52 = vand.u32 2147483647, %v6158_v22  ;;  %v1185_v44 = vand.u32 2147483647, %v6161_v39  ;;  %v6166_v24 = vpop.permute.xlu1 %2273  ;;  %v6168_v51 = vpop.permute.xlu0 %2265  ;;  %v1180_v12 = vmax.f32 %v6158_v22, 0.0 }
 0x430   : > { %7543 = vst [vmem:[#allocation30_spill] sm:$0xff] %v6166_v24  ;;  %7544 = vst [vmem:[#allocation105_spill] sm:$0xff] %v6168_v51  ;;  %v7557_v51 = vld [vmem:[#allocation37_spill] sm:$0xff] }
 0x431   : > { %v1192_v18 = vsub.f32 0.0, %v1186_v52  ;;  %v1191_v37 = vsub.f32 0.0, %v1185_v44  ;;  %3693 = vbcast.lane.b32.xlu1 %v5590_v15, 296  ;;  %3689 = vbcast.lane.b32.xlu0 %v5594_v8, 296  ;;  %v7551_v44 = vld [vmem:[#allocation31_spill] sm:$0xff] }
 0x432   : > { %v2518_v52 = vrot.slane %v7551_v44, %v5613_v11 }
 0x433   : > { %v1199_v33 = vmul.f32 1.442695, %v1192_v18  ;;  %v1197_v4 = vmul.f32 1.442695, %v1191_v37  ;;  %v6172_v32 = vpop.permute.xlu1 %2289  ;;  %v6174_v14 = vpop.permute.xlu0 %2281 }
 0x434   : > { %7545 = vst [vmem:[#allocation106_spill] sm:$0xff] %v6172_v32  ;;  %7546 = vst [vmem:[#allocation107_spill] sm:$0xff] %v6174_v14 }
 0x435   : > { %4895 = vpow2.f32 %v1199_v33  ;;  %3701 = vbcast.lane.b32.xlu1 %v7527_v47, 296  ;;  %3697 = vbcast.lane.b32.xlu0 %v7528_v3, 296 }
 0x436   : > { %4897 = vpow2.f32 %v1197_v4 }
 0x437   : > { %v6178_v27 = vpop.permute.xlu1 %2305  ;;  %v6180_v35 = vpop.permute.xlu0 %2297 }
 0x438   : > { %7547 = vst [vmem:[#allocation108_spill] sm:$0xff] %v6178_v27  ;;  %7548 = vst [vmem:[#allocation109_spill] sm:$0xff] %v6180_v35  ;;  %v7554_v35 = vld [vmem:[#allocation34_spill] sm:$0xff] }
 0x439   : > { %3709 = vbcast.lane.b32.xlu1 %v7531_v10, 296  ;;  %3705 = vbcast.lane.b32.xlu0 %v7532_v9, 296  ;;  %v7552_v10 = vld [vmem:[#allocation32_spill] sm:$0xff]  ;;  %v7553_v9 = vld [vmem:[#allocation33_spill] sm:$0xff] }
 0x43a   : > { %v6223_v22 = vrot.slane %v7552_v10, %v5613_v11 }
 0x43b   : > { %v6184_v15 = vpop.permute.xlu1 %2321  ;;  %v6186_v8 = vpop.permute.xlu0 %2313 }
 0x43c   : > { %7549 = vst [vmem:[#allocation110_spill] sm:$0xff] %v6184_v15  ;;  %7550 = vst [vmem:[#allocation111_spill] sm:$0xff] %v6186_v8  ;;  %v5056_v8 = vmov 1966171168  }
 0x43d   : > { %1146 = vrot.lane.b32.xlu1 %v7551_v44, %s5055_s25  ;;  %2521 = vbcast.lane.b32.xlu0 %v2518_v52, 288  ;;  %v1277_v32 = vunpack.c.l.s4 %v5056_v8  ;;  %v7555_v44 = vld [vmem:[#allocation35_spill] sm:$0xff] }
 0x43f   : > { %v4896_v47 = vpop.eup %4895  ;;  %v2402_v3 = vpop.permute.xlu1 %2401 }
 0x440   : > { %v2394_v18 = vpop.permute.xlu0 %2393  ;;  %v4898_v37 = vpop.eup %4897  ;;  %v1210_v33 = vadd.f32 1.0, %v4896_v47  ;;  %v1278_v47 = vunpack.c.0.s8 %v1277_v32  ;;  %v1179_v32 = vmax.f32 %v6161_v39, 0.0 }
 0x441   : > { %v1209_v4 = vadd.f32 1.0, %v4898_v37  ;;  %1148 = vrot.lane.b32.xlu1 %v7552_v10, %s5055_s25  ;;  %2537 = vbcast.lane.b32.xlu0 %v7553_v9, 288  ;;  %v7556_v37 = vld [vmem:[#allocation36_spill] sm:$0xff]  ;;  %v6231_v0 = vsel %vm993_vm2, %v5955_v53, %v2394_v18 }
 0x442   : > { %4899 = vlog2.f32 %v1210_v33  ;;  %v6206_v8 = vsub.s32 %v1278_v47, %v7558_v17 }
 0x443   : > { %4901 = vlog2.f32 %v1209_v4  ;;  %v2418_v15 = vpop.permute.xlu1 %2417 }
 0x444   : > { %v2410_v27 = vpop.permute.xlu0 %2409  ;;  %v6235_v23 = vsel %vm993_vm2, %v5959_v54, %v2418_v15 }
 0x445   : > { %2529 = vbcast.lane.b32.xlu1 %v7554_v35, 288  ;;  %2553 = vbcast.lane.b32.xlu0 %v7555_v44, 288 }
 0x447   : > { %v6197_v24 = vpop.permute.xlu1 %2433 }
 0x448   : > { %v2426_v14 = vpop.permute.xlu0 %2425 }
 0x449   : > { %2545 = vbcast.lane.b32.xlu1 %v7556_v37, 288  ;;  %2569 = vbcast.lane.b32.xlu0 %v7557_v51, 288  ;;  %v6249_v54 = vsel %vm993_vm2, %v5967_v50, %v2426_v14 }
 0x44b   : > { %v6201_v13 = vpop.permute.xlu1 %2449 }
 0x44c   : > { %v6203_v33 = vpop.permute.xlu0 %2441  ;;  %v4900_v4 = vpop.eup %4899 }
 0x44d   : > { %v4902_v62 = vpop.eup %4901  ;;  %v1218_v38 = vmul.f32 0.6931472, %v4900_v4  ;;  %2561 = vbcast.lane.b32.xlu1 %v7559_v56, 288  ;;  %3713 = vbcast.lane.b32.xlu0 %v2518_v52, 296 }
 0x44e   : > { %v1216_v16 = vmul.f32 0.6931472, %v4902_v62  ;;  %v6227_v62 = vsel %vm993_vm2, %v5953_v61, %v2402_v3 }
 0x44f   : > { %v1228_v42 = vadd.f32 %v1218_v38, %v1180_v12  ;;  %v6217_v17 = vpop.permute.xlu1 %3589  ;;  %v6240_v12 = vsel %vm993_vm2, %v5961_v58, %v2410_v27 }
 0x450   : > { %7562 = vst [vmem:[#allocation31_spill] sm:$0xff] %v6217_v17  ;;  %v6219_v47 = vpop.permute.xlu0 %3585  ;;  %v1227_v52 = vadd.f32 %v1216_v16, %v1179_v32  ;;  %v7564_v16 = vld [vmem:[#allocation39_spill] sm:$0xff] }
 0x451   : > { %7563 = vst [vmem:[#allocation32_spill] sm:$0xff] %v6219_v47  ;;  %v1324_v20 = vcombine.high %v1228_v42, %v1228_v42  ;;  %v1331_v38 = vrot.slane %v1228_v42, %v6206_v8  ;;  %2577 = vbcast.lane.b32.xlu1 %v7564_v16, 288  ;;  %3721 = vbcast.lane.b32.xlu0 %v7553_v9, 296 }
 0x452   : > { %v6244_v61 = vmul.f32 %v1257_v30, %v1227_v52  ;;  %v1275_v36 = vcombine.high %v1227_v52, %v1227_v52  ;;  %v1282_v53 = vrot.slane %v1227_v52, %v6206_v8  ;;  %v6251_v39 = vmul.f32 %v1258_v40, %v1228_v42  ;;  %v6270_v42 = vld [vmem:[%s7370_s9] sm:$0xff] }
 0x453   : > { %v1338_v15 = vrot.slane %v1324_v20, %v6206_v8  ;;  %v1339_v3 = vcombine.high %v1331_v38, %v1331_v38  ;;  %v1347_v58 = vrot.slane %v1331_v38, %v6206_v8  ;;  %v6255_v27 = vpop.permute.xlu1 %3597 }
 0x454   : > { %7565 = vst [vmem:[#allocation33_spill] sm:$0xff] %v6255_v27  ;;  %v6257_v18 = vpop.permute.xlu0 %3593  ;;  %v1289_v30 = vrot.slane %v1275_v36, %v6206_v8  ;;  %v1290_v10 = vcombine.high %v1282_v53, %v1282_v53  ;;  %v6261_v9 = vrot.slane %v1282_v53, %v6206_v8  ;;  %v6265_v50 = vrot.slane %v6244_v61, %v6206_v8 }
 0x455   : > { %7566 = vst [vmem:[#allocation34_spill] sm:$0xff] %v6257_v18  ;;  %v1340_v40 = vcombine.high %v1338_v15, %v1338_v15  ;;  %v1354_v14 = vrot.slane %v1338_v15, %v6206_v8  ;;  %v1361_v4 = vrot.slane %v1339_v3, %v6206_v8  ;;  %v1369_v32 = vcombine.high %v1347_v58, %v1347_v58 }
 0x456   : > { %3717 = vbcast.lane.b32.xlu1 %v7554_v35, 296  ;;  %v1605_v52 = vrot.slane %v1347_v58, %v5613_v11  ;;  %v1291_v20 = vcombine.high %v1289_v30, %v1289_v30  ;;  %v6277_v38 = vrot.slane %v1289_v30, %v6206_v8  ;;  %v1312_v36 = vrot.slane %v1290_v10, %v6206_v8 }
 0x457   : > { %3729 = vbcast.lane.b32.xlu0 %v7555_v44, 296  ;;  %v1368_v53 = vrot.slane %v1340_v40, %v6206_v8  ;;  %v1370_v27 = vcombine.high %v1354_v14, %v1354_v14  ;;  %v1371_v17 = vcombine.high %v1361_v4, %v1361_v4  ;;  %v1609_v15 = vrot.slane %v1361_v4, %v5613_v11  ;;  %v6283_v3 = vpop.permute.xlu1 %3605 }
 0x458   : > { %7567 = vst [vmem:[#allocation35_spill] sm:$0xff] %v6283_v3  ;;  %v6285_v18 = vpop.permute.xlu0 %3601  ;;  %v1613_v35 = vrot.slane %v1369_v32, %v5613_v11  ;;  %v1621_v58 = vrot.slane %v1354_v14, %v5613_v11  ;;  %v1818_v30 = vmul.f32 %v1605_v52, %v6270_v42  ;;  %v1319_v10 = vrot.slane %v1291_v20, %v6206_v8 }
 0x459   : > { %7568 = vst [vmem:[#allocation36_spill] sm:$0xff] %v6285_v18  ;;  %v1372_v47 = vcombine.high %v1368_v53, %v1368_v53  ;;  %v1617_v44 = vrot.slane %v1371_v17, %v5613_v11  ;;  %v1625_v40 = vrot.slane %v1368_v53, %v5613_v11  ;;  %v1629_v21 = vrot.slane %v1370_v27, %v5613_v11 }
 0x45a   : > { %3725 = vbcast.lane.b32.xlu1 %v7556_v37, 296  ;;  %v1819_v4 = vmul.f32 %v1609_v15, %v6270_v42  ;;  %v1820_v3 = vmul.f32 %v1613_v35, %v6270_v42  ;;  %v1822_v32 = vmul.f32 %v1621_v58, %v6270_v42  ;;  %v1874_v14 = vmul.f32 1.442695, %v1818_v30 }
 0x45b   : > { %3737 = vbcast.lane.b32.xlu0 %v7557_v51, 296  ;;  %v1633_v52 = vrot.slane %v1372_v47, %v5613_v11  ;;  %v1821_v20 = vmul.f32 %v1617_v44, %v6270_v42  ;;  %v1823_v17 = vmul.f32 %v1625_v40, %v6270_v42  ;;  %v1824_v53 = vmul.f32 %v1629_v21, %v6270_v42  ;;  %v6303_v27 = vpop.permute.xlu1 %3613 }
 0x45c   : > { %7569 = vst [vmem:[#allocation37_spill] sm:$0xff] %v6303_v27  ;;  %v6305_v37 = vpop.permute.xlu0 %3609  ;;  %4903 = vpow2.f32 %v1874_v14  ;;  %v1876_v15 = vmul.f32 1.442695, %v1819_v4  ;;  %v1878_v35 = vmul.f32 1.442695, %v1820_v3  ;;  %v1320_v47 = vcombine.high %v6261_v9, %v6261_v9 }
 0x45d   : > { %7570 = vst [vmem:[#allocation25_spill] sm:$0xff] %v6305_v37  ;;  %v1882_v18 = vmul.f32 1.442695, %v1822_v32  ;;  %v1825_v58 = vmul.f32 %v1633_v52, %v6270_v42  ;;  %v1880_v30 = vmul.f32 1.442695, %v1821_v20  ;;  %v1321_v21 = vcombine.high %v6277_v38, %v6277_v38 }
 0x45e   : > { %v1884_v51 = vmul.f32 1.442695, %v1823_v17  ;;  %v1886_v57 = vmul.f32 1.442695, %v1824_v53  ;;  %4905 = vpow2.f32 %v1876_v15  ;;  %v1322_v44 = vcombine.high %v1312_v36, %v1312_v36  ;;  %3733 = vbcast.lane.b32.xlu1 %v7559_v56, 296 }
 0x45f   : > { %2585 = vbcast.lane.b32.xlu0 %v6223_v22, 288  ;;  %4907 = vpow2.f32 %v1878_v35  ;;  %v1888_v3 = vmul.f32 1.442695, %v1825_v58  ;;  %v1323_v40 = vcombine.high %v1319_v10, %v1319_v10  ;;  %v1573_v4 = vrot.slane %v6261_v9, %v5613_v11  ;;  %v3654_v32 = vpop.permute.xlu1 %3653 }
 0x460   : > { %v6316_v14 = vpop.permute.xlu0 %3649  ;;  %4909 = vpow2.f32 %v1880_v30  ;;  %v1577_v52 = vrot.slane %v1312_v36, %v5613_v11  ;;  %v1581_v20 = vrot.slane %v1320_v47, %v5613_v11  ;;  %v1585_v17 = vrot.slane %v1322_v44, %v5613_v11  ;;  %v7571_v36 = vld [vmem:[#allocation40_spill] sm:$0xff] }
 0x461   : > { %4911 = vpow2.f32 %v1882_v18  ;;  %v1589_v56 = vrot.slane %v6277_v38, %v5613_v11  ;;  %v1593_v53 = vrot.slane %v1319_v10, %v5613_v11  ;;  %v1597_v15 = vrot.slane %v1321_v21, %v5613_v11 }
 0x462   : > { %4913 = vpow2.f32 %v1884_v51  ;;  %v1601_v9 = vrot.slane %v1323_v40, %v5613_v11  ;;  %v1810_v35 = vmul.f32 %v1573_v4, %v6270_v42  ;;  %v1811_v58 = vmul.f32 %v1577_v52, %v6270_v42  ;;  %3741 = vbcast.lane.b32.xlu1 %v7564_v16, 296 }
 0x463   : > { %2601 = vbcast.lane.b32.xlu0 %v7571_v36, 288  ;;  %4915 = vpow2.f32 %v1886_v57  ;;  %v1812_v18 = vmul.f32 %v1581_v20, %v6270_v42  ;;  %v1813_v38 = vmul.f32 %v1585_v17, %v6270_v42  ;;  %v1814_v10 = vmul.f32 %v1589_v56, %v6270_v42  ;;  %v6333_v30 = vpop.permute.xlu1 %3661 }
 0x464   : > { %v6335_v51 = vpop.permute.xlu0 %3657  ;;  %4917 = vpow2.f32 %v1888_v3  ;;  %v1815_v47 = vmul.f32 %v1593_v53, %v6270_v42  ;;  %v1816_v21 = vmul.f32 %v1597_v15, %v6270_v42  ;;  %v1817_v16 = vmul.f32 %v1601_v9, %v6270_v42  ;;  %v7572_v9 = vld [vmem:[#allocation42_spill] sm:$0xff] }
 0x465   : > { %v1858_v44 = vmul.f32 1.442695, %v1810_v35  ;;  %v1860_v40 = vmul.f32 1.442695, %v1811_v58  ;;  %v1862_v57 = vmul.f32 1.442695, %v1812_v18  ;;  %v2840_v4 = vcombine.high %v6265_v50, %v6265_v50 }
 0x466   : > { %v4904_v52 = vpop.eup %4903  ;;  %v1864_v20 = vmul.f32 1.442695, %v1813_v38  ;;  %v1866_v17 = vmul.f32 1.442695, %v1814_v10  ;;  %v1868_v56 = vmul.f32 1.442695, %v1815_v47  ;;  %v2848_v27 = vrot.slane %v6265_v50, %v6206_v8 }
 0x467   : > { %1963 = vst.msk [vmem:[#allocation2 + $0x40] sm:$0xff] %vm1954_vm3, %v4904_v52  ;;  %4919 = vpow2.f32 %v1858_v44  ;;  %v1870_v3 = vmul.f32 1.442695, %v1816_v21  ;;  %v1872_v53 = vmul.f32 1.442695, %v1817_v16  ;;  %v2862_v15 = vrot.slane %v2840_v4, %v6206_v8  ;;  %2593 = vbcast.lane.b32.xlu1 %v7572_v9, 288  ;;  %v3670_v58 = vpop.permute.xlu1 %3669 }
 0x468   : > { %v7573_v35 = vld [vmem:[#allocation43_spill] sm:$0xff]  ;;  %v3666_v18 = vpop.permute.xlu0 %3665  ;;  %v4906_v37 = vpop.eup %4905  ;;  %4921 = vpow2.f32 %v1860_v40  ;;  %v3122_v38 = vrot.slane %v2848_v27, %v5613_v11  ;;  %v2870_v10 = vcombine.high %v2848_v27, %v2848_v27  ;;  %v2825_v50 = vcombine.high %v6244_v61, %v6244_v61  ;;  %v7574_v52 = vld [vmem:[#allocation44_spill] sm:$0xff] }
 0x469   : > { %2617 = vbcast.lane.b32.xlu0 %v7573_v35, 288  ;;  %v4908_v47 = vpop.eup %4907  ;;  %1964 = vst.msk [vmem:[#allocation2 + $0x48] sm:$0xff] %vm1954_vm3, %v4906_v37  ;;  %4923 = vpow2.f32 %v1862_v57  ;;  %v3126_v21 = vrot.slane %v2862_v15, %v5613_v11  ;;  %v2872_v16 = vcombine.high %v2862_v15, %v2862_v15  ;;  %v3840_v44 = vsel %vm993_vm2, %v5979_v5, %v3654_v32 }
 0x46a   : > { %v4910_v4 = vpop.eup %4909  ;;  %1965 = vst.msk [vmem:[#allocation2 + $0x50] sm:$0xff] %vm1954_vm3, %v4908_v47  ;;  %4925 = vpow2.f32 %v1864_v20  ;;  %v3359_v40 = vmul.f32 %v3122_v38, %v6231_v0  ;;  %v3130_v27 = vrot.slane %v2870_v10, %v5613_v11  ;;  %v2839_v61 = vrot.slane %v2825_v50, %v6206_v8  ;;  %3888 = vst.msk [vmem:[#allocation4 + $0x8] sm:$0xff] %vm1954_vm3, %v3840_v44  ;;  %v7575_v0 = vld [vmem:[#allocation45_spill] sm:$0xff] }
 0x46b   : > { %v4912_v37 = vpop.eup %4911  ;;  %1966 = vst.msk [vmem:[#allocation2 + $0x58] sm:$0xff] %vm1954_vm3, %v4910_v4  ;;  %4927 = vpow2.f32 %v1866_v17  ;;  %v3360_v57 = vmul.f32 %v3126_v21, %v6227_v62  ;;  %v3134_v5 = vrot.slane %v2872_v16, %v5613_v11  ;;  %v3839_v32 = vsel %vm993_vm2, %v5981_v31, %v6316_v14  ;;  %2609 = vbcast.lane.b32.xlu1 %v7574_v52, 288  ;;  %v3678_v20 = vpop.permute.xlu1 %3677 }
 0x46c   : > { %v3674_v15 = vpop.permute.xlu0 %3673  ;;  %v4914_v38 = vpop.eup %4913  ;;  %1967 = vst.msk [vmem:[#allocation2 + $0x60] sm:$0xff] %vm1954_vm3, %v4912_v37  ;;  %4929 = vpow2.f32 %v1868_v56  ;;  %3407 = vst.msk [vmem:[#allocation3] sm:$0xff] %vm1954_vm3, %v3359_v40  ;;  %v3361_v62 = vmul.f32 %v3130_v27, %v6240_v12  ;;  %v2841_v17 = vcombine.high %v2839_v61, %v2839_v61  ;;  %v2855_v10 = vrot.slane %v2839_v61, %v6206_v8 }
 0x46d   : > { %2633 = vbcast.lane.b32.xlu0 %v7575_v0, 288  ;;  %3887 = vst.msk [vmem:[#allocation4] sm:$0xff] %vm1954_vm3, %v3839_v32  ;;  %v4916_v31 = vpop.eup %4915  ;;  %1968 = vst.msk [vmem:[#allocation2 + $0x68] sm:$0xff] %vm1954_vm3, %v4914_v38  ;;  %4931 = vpow2.f32 %v1870_v3  ;;  %v3362_v14 = vmul.f32 %v3134_v5, %v6235_v23  ;;  %v3842_v56 = vsel %vm993_vm2, %v5986_v63, %v6333_v30 }
 0x46e   : > { %3408 = vst.msk [vmem:[#allocation3 + $0x8] sm:$0xff] %vm1954_vm3, %v3360_v57  ;;  %v3841_v12 = vsel %vm993_vm2, %v5988_v34, %v6335_v51  ;;  %v4918_v50 = vpop.eup %4917  ;;  %1969 = vst.msk [vmem:[#allocation2 + $0x70] sm:$0xff] %vm1954_vm3, %v4916_v31  ;;  %4933 = vpow2.f32 %v1872_v53  ;;  %v2869_v3 = vrot.slane %v2841_v17, %v6206_v8  ;;  %v3138_v47 = vrot.slane %v2855_v10, %v5613_v11  ;;  %v7576_v51 = vld [vmem:[#allocation48_spill] sm:$0xff] }
 0x46f   : > { %3409 = vst.msk [vmem:[#allocation3 + $0x10] sm:$0xff] %vm1954_vm3, %v3361_v62  ;;  %v2871_v21 = vcombine.high %v2855_v10, %v2855_v10  ;;  %3890 = vst.msk [vmem:[#allocation4 + $0x18] sm:$0xff] %vm1954_vm3, %v3842_v56  ;;  %v3844_v63 = vsel %vm993_vm2, %v5992_v45, %v3670_v58  ;;  %v3843_v34 = vsel %vm993_vm2, %v5994_v1, %v3666_v18  ;;  %2625 = vbcast.lane.b32.xlu1 %v7576_v51, 288  ;;  %v6399_v53 = vpop.permute.xlu1 %2337 }
 0x470   : > { %3889 = vst.msk [vmem:[#allocation4 + $0x10] sm:$0xff] %vm1954_vm3, %v3841_v12  ;;  %1970 = vst.msk [vmem:[#allocation2 + $0x78] sm:$0xff] %vm1954_vm3, %v4918_v50  ;;  %v3846_v23 = vsel %vm993_vm2, %v5998_v55, %v3678_v20  ;;  %v3845_v30 = vsel %vm993_vm2, %v6000_v49, %v3674_v15  ;;  %v6401_v16 = vpop.permute.xlu0 %2329  ;;  %v3142_v44 = vrot.slane %v2869_v3, %v5613_v11 }
 0x471   : > { %3410 = vst.msk [vmem:[#allocation3 + $0x18] sm:$0xff] %vm1954_vm3, %v3362_v14  ;;  %v3363_v4 = vmul.f32 %v3138_v47, %v6249_v54  ;;  %v2873_v45 = vcombine.high %v2869_v3, %v2869_v3  ;;  %v3146_v58 = vrot.slane %v2871_v21, %v5613_v11  ;;  %3892 = vst.msk [vmem:[#allocation4 + $0x28] sm:$0xff] %vm1954_vm3, %v3844_v63  ;;  %3745 = vbcast.lane.b32.xlu0 %v6223_v22, 296  ;;  %v4920_v1 = vpop.eup %4919  ;;  %v7578_v3 = vld [vmem:[#allocation47_spill] sm:$0xff] }
 0x472   : > { %3891 = vst.msk [vmem:[#allocation4 + $0x20] sm:$0xff] %vm1954_vm3, %v3843_v34  ;;  %3894 = vst.msk [vmem:[#allocation4 + $0x38] sm:$0xff] %vm1954_vm3, %v3846_v23  ;;  %v2776_v55 = vsel %vm993_vm2, %v5965_v6, %v6197_v24  ;;  %v2777_v49 = vsel %vm993_vm2, %v5973_v41, %v6203_v33  ;;  %v4922_v54 = vpop.eup %4921  ;;  %v2778_v24 = vsel %vm993_vm2, %v5971_v28, %v6201_v13  ;;  %v7577_v6 = vld [vmem:[#allocation49_spill] sm:$0xff] }
 0x473   : > { %3893 = vst.msk [vmem:[#allocation4 + $0x30] sm:$0xff] %vm1954_vm3, %v3845_v30  ;;  %1955 = vst.msk [vmem:[#allocation2] sm:$0xff] %vm1954_vm3, %v4920_v1  ;;  %v3364_v18 = vmul.f32 %v3142_v44, %v2776_v55  ;;  %v3150_v40 = vrot.slane %v2873_v45, %v5613_v11  ;;  %v3365_v27 = vmul.f32 %v3146_v58, %v2777_v49  ;;  %v4924_v61 = vpop.eup %4923  ;;  %2641 = vbcast.lane.b32.xlu1 %v7577_v6, 288  ;;  %v6425_v22 = vpop.permute.xlu1 %2353 }
 0x474   : > { %3411 = vst.msk [vmem:[#allocation3 + $0x20] sm:$0xff] %vm1954_vm3, %v3363_v4  ;;  %1956 = vst.msk [vmem:[#allocation2 + $0x8] sm:$0xff] %vm1954_vm3, %v4922_v54  ;;  %v6427_v41 = vpop.permute.xlu0 %2345  ;;  %v2881_v33 = vrot.slane %v6251_v39, %v6206_v8  ;;  %v4926_v37 = vpop.eup %4925  ;;  %v2646_v34 = vrot.slane %v7578_v3, %v5613_v11 }
 0x475   : > { %1957 = vst.msk [vmem:[#allocation2 + $0x10] sm:$0xff] %vm1954_vm3, %v4924_v61  ;;  %3412 = vst.msk [vmem:[#allocation3 + $0x28] sm:$0xff] %vm1954_vm3, %v3364_v18  ;;  %v3366_v57 = vmul.f32 %v3150_v40, %v2778_v24  ;;  %3753 = vbcast.lane.b32.xlu0 %v7571_v36, 296  ;;  %v4928_v28 = vpop.eup %4927  ;;  %v2874_v36 = vcombine.high %v6251_v39, %v6251_v39 }
 0x476   : > { %3413 = vst.msk [vmem:[#allocation3 + $0x30] sm:$0xff] %vm1954_vm3, %v3365_v27  ;;  %1958 = vst.msk [vmem:[#allocation2 + $0x18] sm:$0xff] %vm1954_vm3, %v4926_v37  ;;  %v4930_v13 = vpop.eup %4929  ;;  %v2889_v15 = vcombine.high %v2881_v33, %v2881_v33  ;;  %v2897_v62 = vrot.slane %v2881_v33, %v6206_v8  ;;  %v7579_v27 = vld [vmem:[#allocation50_spill] sm:$0xff]  ;;  %v7580_v33 = vld [vmem:[#allocation51_spill] sm:$0xff] }
 0x477   : > { %1959 = vst.msk [vmem:[#allocation2 + $0x20] sm:$0xff] %vm1954_vm3, %v4928_v28  ;;  %3414 = vst.msk [vmem:[#allocation3 + $0x38] sm:$0xff] %vm1954_vm3, %v3366_v57  ;;  %v4932_v5 = vpop.eup %4931  ;;  %3749 = vbcast.lane.b32.xlu1 %v7572_v9, 296  ;;  %v6440_v32 = vpop.permute.xlu1 %2369  ;;  %v2888_v31 = vrot.slane %v2874_v36, %v6206_v8 }
 0x478   : > { %1960 = vst.msk [vmem:[#allocation2 + $0x28] sm:$0xff] %vm1954_vm3, %v4930_v13  ;;  %v6442_v20 = vpop.permute.xlu0 %2361  ;;  %v4934_v38 = vpop.eup %4933  ;;  %1961 = vst.msk [vmem:[#allocation2 + $0x30] sm:$0xff] %vm1954_vm3, %v4932_v5  ;;  %v2911_v10 = vrot.slane %v2889_v15, %v6206_v8  ;;  %v3154_v39 = vrot.slane %v2897_v62, %v5613_v11  ;;  %v7581_v5 = vld [vmem:[#allocation52_spill] sm:$0xff] }
 0x479   : > { %3761 = vbcast.lane.b32.xlu0 %v7573_v35, 296  ;;  %1962 = vst.msk [vmem:[#allocation2 + $0x38] sm:$0xff] %vm1954_vm3, %v4934_v38  ;;  %v2890_v50 = vcombine.high %v2888_v31, %v2888_v31  ;;  %v7582_v38 = vld [vmem:[#allocation53_spill] sm:$0xff] }
 0x47a   : > { %v3158_v35 = vrot.slane %v2911_v10, %v5613_v11  ;;  %v2921_v12 = vcombine.high %v2911_v10, %v2911_v10 }
 0x47b   : > { %3757 = vbcast.lane.b32.xlu1 %v7574_v52, 296  ;;  %v6451_v9 = vpop.permute.xlu1 %2385  ;;  %v2919_v52 = vcombine.high %v2897_v62, %v2897_v62  ;;  %v2918_v44 = vrot.slane %v2890_v50, %v6206_v8 }
 0x47c   : > { %v6453_v17 = vpop.permute.xlu0 %2377  ;;  %v3166_v23 = vrot.slane %v2921_v12, %v5613_v11 }
 0x47d   : > { %3769 = vbcast.lane.b32.xlu0 %v7575_v0, 296  ;;  %v3174_v55 = vrot.slane %v2918_v44, %v5613_v11  ;;  %v2922_v40 = vcombine.high %v2918_v44, %v2918_v44  ;;  %v7589_v44 = vld [vmem:[#allocation72_spill] sm:$0xff] }
 0x47f   : > { %3765 = vbcast.lane.b32.xlu1 %v7576_v51, 296  ;;  %v2466_v14 = vpop.permute.xlu1 %2465  ;;  %v3162_v51 = vrot.slane %v2919_v52, %v5613_v11  ;;  %v3182_v37 = vrot.slane %v2922_v40, %v5613_v11  ;;  %v7594_v40 = vld [vmem:[#allocation75_spill] sm:$0xff] }
 0x480   : > { %v2458_v56 = vpop.permute.xlu0 %2457  ;;  %v2780_v47 = vsel %vm993_vm2, %v6004_v59, %v2466_v14 }
 0x481   : > { %1150 = vrot.lane.b32.xlu0 %v7578_v3, %s5055_s25  ;;  %v2779_v0 = vsel %vm993_vm2, %v6006_v2, %v2458_v56  ;;  %v3368_v21 = vmul.f32 %v3158_v35, %v2780_v47  ;;  %v2904_v2 = vrot.slane %v2888_v31, %v6206_v8  ;;  %v7583_v31 = vld [vmem:[#allocation54_spill] sm:$0xff] }
 0x482   : > { %v3367_v63 = vmul.f32 %v3154_v39, %v2779_v0  ;;  %v7584_v39 = vld [vmem:[#allocation55_spill] sm:$0xff] }
 0x483   : > { %3416 = vst.msk [vmem:[#allocation3 + $0x48] sm:$0xff] %vm1954_vm3, %v3368_v21  ;;  %3773 = vbcast.lane.b32.xlu1 %v7577_v6, 296  ;;  %v2482_v30 = vpop.permute.xlu1 %2481  ;;  %v3170_v54 = vrot.slane %v2904_v2, %v5613_v11  ;;  %v2710_v21 = vrot.slane %v5761_v43, %v5613_v11 }
 0x484   : > { %3415 = vst.msk [vmem:[#allocation3 + $0x40] sm:$0xff] %vm1954_vm3, %v3367_v63  ;;  %v2474_v59 = vpop.permute.xlu0 %2473  ;;  %v2782_v4 = vsel %vm993_vm2, %v6011_v48, %v2482_v30  ;;  %v2920_v48 = vcombine.high %v2904_v2, %v2904_v2 }
 0x485   : > { %2649 = vbcast.lane.b32.xlu0 %v2646_v34, 288  ;;  %v2781_v45 = vsel %vm993_vm2, %v6013_v29, %v2474_v59  ;;  %v3370_v58 = vmul.f32 %v3166_v23, %v2782_v4  ;;  %v7586_v23 = vld [vmem:[#allocation70_spill] sm:$0xff]  ;;  %v7590_v4 = vld [vmem:[#allocation73_spill] sm:$0xff] }
 0x486   : > { %v3369_v1 = vmul.f32 %v3162_v51, %v2781_v45  ;;  %v3178_v28 = vrot.slane %v2920_v48, %v5613_v11  ;;  %v7587_v51 = vld [vmem:[#allocation71_spill] sm:$0xff] }
 0x487   : > { %3418 = vst.msk [vmem:[#allocation3 + $0x58] sm:$0xff] %vm1954_vm3, %v3370_v58  ;;  %1152 = vrot.lane.b32.xlu1 %v5761_v43, %s5055_s25  ;;  %v2498_v49 = vpop.permute.xlu1 %2497  ;;  %v7588_v43 = vld [vmem:[#allocation58_spill] sm:$0xff]  ;;  %v7591_v58 = vld [vmem:[#allocation59_spill] sm:$0xff] }
 0x488   : > { %3417 = vst.msk [vmem:[#allocation3 + $0x50] sm:$0xff] %vm1954_vm3, %v3369_v1  ;;  %v2490_v18 = vpop.permute.xlu0 %2489  ;;  %v2784_v29 = vsel %vm993_vm2, %v6017_v46, %v2498_v49  ;;  %v7592_v49 = vld [vmem:[#allocation60_spill] sm:$0xff] }
 0x489   : > { %2665 = vbcast.lane.b32.xlu0 %v7579_v27, 288  ;;  %v2783_v61 = vsel %vm993_vm2, %v6019_v19, %v2490_v18  ;;  %v3372_v24 = vmul.f32 %v3174_v55, %v2784_v29 }
 0x48a   : > { %v3371_v6 = vmul.f32 %v3170_v54, %v2783_v61  ;;  %v7593_v54 = vld [vmem:[#allocation74_spill] sm:$0xff] }
 0x48b   : > { %3420 = vst.msk [vmem:[#allocation3 + $0x68] sm:$0xff] %vm1954_vm3, %v3372_v24  ;;  %2657 = vbcast.lane.b32.xlu1 %v7580_v33, 288  ;;  %v2514_v57 = vpop.permute.xlu1 %2513  ;;  %v7596_v24 = vld [vmem:[#allocation63_spill] sm:$0xff] }
 0x48c   : > { %3419 = vst.msk [vmem:[#allocation3 + $0x60] sm:$0xff] %vm1954_vm3, %v3371_v6  ;;  %v2506_v13 = vpop.permute.xlu0 %2505  ;;  %v2786_v46 = vsel %vm993_vm2, %v6023_v60, %v2514_v57  ;;  %v7597_v6 = vld [vmem:[#allocation41_spill] sm:$0xff] }
 0x48d   : > { %2681 = vbcast.lane.b32.xlu0 %v7581_v5, 288  ;;  %v2785_v19 = vsel %vm993_vm2, %v6025_v7, %v2506_v13  ;;  %v3374_v15 = vmul.f32 %v3182_v37, %v2786_v46  ;;  %v7585_v7 = vld [vmem:[#allocation56_spill] sm:$0xff] }
 0x48e   : > { %v3373_v36 = vmul.f32 %v3178_v28, %v2785_v19  ;;  %v7598_v37 = vld [vmem:[#allocation104_spill] sm:$0xff]  ;;  %v7600_v19 = vld [vmem:[#allocation46_spill] sm:$0xff] }
 0x48f   : > { %3422 = vst.msk [vmem:[#allocation3 + $0x78] sm:$0xff] %vm1954_vm3, %v3374_v15  ;;  %2673 = vbcast.lane.b32.xlu1 %v7582_v38, 288  ;;  %v6504_v62 = vpop.permute.xlu1 %3621  ;;  %v7599_v13 = vld [vmem:[#allocation64_spill] sm:$0xff] }
 0x490   : > { %3421 = vst.msk [vmem:[#allocation3 + $0x70] sm:$0xff] %vm1954_vm3, %v3373_v36  ;;  %v6506_v10 = vpop.permute.xlu0 %3617 }
 0x491   : > { %2697 = vbcast.lane.b32.xlu0 %v7583_v31, 288 }
 0x493   : > { %2689 = vbcast.lane.b32.xlu1 %v7584_v39, 288  ;;  %v6510_v60 = vpop.permute.xlu1 %3629 }
 0x494   : > { %v6512_v35 = vpop.permute.xlu0 %3625 }
 0x495   : > { %3777 = vbcast.lane.b32.xlu0 %v2646_v34, 296 }
 0x497   : > { %2705 = vbcast.lane.b32.xlu1 %v7585_v7, 288  ;;  %v6515_v14 = vpop.permute.xlu1 %3637 }
 0x498   : > { %v6517_v56 = vpop.permute.xlu0 %3633 }
 0x499   : > { %3785 = vbcast.lane.b32.xlu0 %v7579_v27, 296  ;;  %v7595_v27 = vld [vmem:[#allocation62_spill] sm:$0xff] }
 0x49b   : > { %3781 = vbcast.lane.b32.xlu1 %v7580_v33, 296  ;;  %v6521_v12 = vpop.permute.xlu1 %3645 }
 0x49c   : > { %v6523_v52 = vpop.permute.xlu0 %3641 }
 0x49d   : > { %3793 = vbcast.lane.b32.xlu0 %v7581_v5, 296 }
 0x49f   : > { %3789 = vbcast.lane.b32.xlu1 %v7582_v38, 296  ;;  %v3686_v50 = vpop.permute.xlu1 %3685 }
 0x4a0   : > { %v3682_v3 = vpop.permute.xlu0 %3681  ;;  %v3848_v47 = vsel %vm993_vm2, %v6029_v25, %v3686_v50 }
 0x4a1   : > { %3801 = vbcast.lane.b32.xlu0 %v7583_v31, 296  ;;  %v3847_v0 = vsel %vm993_vm2, %v6031_v26, %v3682_v3  ;;  %3896 = vst.msk [vmem:[#allocation4 + $0x48] sm:$0xff] %vm1954_vm3, %v3848_v47 }
 0x4a2   : > { %3895 = vst.msk [vmem:[#allocation4 + $0x40] sm:$0xff] %vm1954_vm3, %v3847_v0 }
 0x4a3   : > { %3797 = vbcast.lane.b32.xlu1 %v7584_v39, 296  ;;  %v3694_v63 = vpop.permute.xlu1 %3693 }
 0x4a4   : > { %v3690_v34 = vpop.permute.xlu0 %3689  ;;  %v3850_v30 = vsel %vm993_vm2, %v7586_v23, %v3694_v63 }
 0x4a5   : > { %2713 = vbcast.lane.b32.xlu0 %v2710_v21, 288  ;;  %v3849_v25 = vsel %vm993_vm2, %v7587_v51, %v3690_v34  ;;  %3898 = vst.msk [vmem:[#allocation4 + $0x58] sm:$0xff] %vm1954_vm3, %v3850_v30  ;;  %v7602_v30 = vld [vmem:[#allocation85_spill] sm:$0xff] }
 0x4a6   : > { %3897 = vst.msk [vmem:[#allocation4 + $0x50] sm:$0xff] %vm1954_vm3, %v3849_v25 }
 0x4a7   : > { %3805 = vbcast.lane.b32.xlu1 %v7585_v7, 296  ;;  %v3702_v26 = vpop.permute.xlu1 %3701  ;;  %v7601_v7 = vld [vmem:[#allocation65_spill] sm:$0xff] }
 0x4a8   : > { %v3698_v59 = vpop.permute.xlu0 %3697  ;;  %v3852_v2 = vsel %vm993_vm2, %v7589_v44, %v3702_v26  ;;  %v7603_v44 = vld [vmem:[#allocation87_spill] sm:$0xff] }
 0x4a9   : > { %2729 = vbcast.lane.b32.xlu0 %v7588_v43, 288  ;;  %v3851_v45 = vsel %vm993_vm2, %v7590_v4, %v3698_v59  ;;  %3900 = vst.msk [vmem:[#allocation4 + $0x68] sm:$0xff] %vm1954_vm3, %v3852_v2 }
 0x4aa   : > { %3899 = vst.msk [vmem:[#allocation4 + $0x60] sm:$0xff] %vm1954_vm3, %v3851_v45 }
 0x4ab   : > { %2721 = vbcast.lane.b32.xlu1 %v7591_v58, 288  ;;  %v3710_v1 = vpop.permute.xlu1 %3709 }
 0x4ac   : > { %v3706_v55 = vpop.permute.xlu0 %3705  ;;  %v3854_v18 = vsel %vm993_vm2, %v7593_v54, %v3710_v1  ;;  %v7604_v1 = vld [vmem:[#allocation84_spill] sm:$0xff]  ;;  %v7605_v54 = vld [vmem:[#allocation89_spill] sm:$0xff] }
 0x4ad   : > { %2745 = vbcast.lane.b32.xlu0 %v7592_v49, 288  ;;  %v3853_v48 = vsel %vm993_vm2, %v7594_v40, %v3706_v55  ;;  %3902 = vst.msk [vmem:[#allocation4 + $0x78] sm:$0xff] %vm1954_vm3, %v3854_v18 }
 0x4ae   : > { %3901 = vst.msk [vmem:[#allocation4 + $0x70] sm:$0xff] %vm1954_vm3, %v3853_v48  ;;  %v7606_v48 = vld [vmem:[#allocation86_spill] sm:$0xff] }
 0x4af   : > { %2737 = vbcast.lane.b32.xlu1 %v7595_v27, 288  ;;  %v1147_v29 = vpop.permute.xlu1 %1146 }
 0x4b0   : > { %v6560_v61 = vpop.permute.xlu0 %2521  ;;  %v1162_v33 = vsel %vm993_vm2, %v7597_v6, %v1147_v29 }
 0x4b1   : > { %2761 = vbcast.lane.b32.xlu0 %v7596_v24, 288  ;;  %v6566_v57 = vadd.f32 %v7598_v37, %v1162_v33 }
 0x4b3   : > { %v1187_v28 = vand.u32 2147483647, %v6566_v57  ;;  %2753 = vbcast.lane.b32.xlu1 %v7599_v13, 288  ;;  %v1149_v5 = vpop.permute.xlu1 %1148 }
 0x4b4   : > { %v6570_v46 = vpop.permute.xlu0 %2537  ;;  %v1163_v15 = vsel %vm993_vm2, %v7600_v19, %v1149_v5  ;;  %v7608_v19 = vld [vmem:[#allocation88_spill] sm:$0xff] }
 0x4b5   : > { %3809 = vbcast.lane.b32.xlu0 %v2710_v21, 296  ;;  %v1193_v36 = vsub.f32 0.0, %v1187_v28  ;;  %v6575_v38 = vadd.f32 %v7598_v37, %v1163_v15 }
 0x4b7   : > { %v1201_v31 = vmul.f32 1.442695, %v1193_v36  ;;  %v1188_v39 = vand.u32 2147483647, %v6575_v38  ;;  %2769 = vbcast.lane.b32.xlu1 %v7601_v7, 288  ;;  %v2530_v50 = vpop.permute.xlu1 %2529  ;;  %v7609_v36 = vld [vmem:[#allocation66_spill] sm:$0xff] }
 0x4b8   : > { %v2554_v3 = vpop.permute.xlu0 %2553 }
 0x4b9   : > { %3817 = vbcast.lane.b32.xlu0 %v7588_v43, 296  ;;  %4935 = vpow2.f32 %v1201_v31  ;;  %v1194_v47 = vsub.f32 0.0, %v1188_v39  ;;  %v7610_v31 = vld [vmem:[#allocation22_spill] sm:$0xff] }
 0x4ba   : > { %v1259_v39 = vsel %vm993_vm2, %v7610_v31, %v7609_v36 }
 0x4bb   : > { %v1203_v0 = vmul.f32 1.442695, %v1194_v47  ;;  %3813 = vbcast.lane.b32.xlu1 %v7591_v58, 296  ;;  %v2546_v21 = vpop.permute.xlu1 %2545  ;;  %v7612_v47 = vld [vmem:[#allocation21_spill] sm:$0xff] }
 0x4bc   : > { %v2570_v63 = vpop.permute.xlu0 %2569 }
 0x4bd   : > { %3825 = vbcast.lane.b32.xlu0 %v7592_v49, 296  ;;  %4937 = vpow2.f32 %v1203_v0 }
 0x4bf   : > { %3821 = vbcast.lane.b32.xlu1 %v7595_v27, 296  ;;  %v2562_v34 = vpop.permute.xlu1 %2561 }
 0x4c0   : > { %v3714_v23 = vpop.permute.xlu0 %3713 }
 0x4c1   : > { %3833 = vbcast.lane.b32.xlu0 %v7596_v24, 296  ;;  %v3855_v51 = vsel %vm993_vm2, %v7602_v30, %v3714_v23  ;;  %v7607_v24 = vld [vmem:[#allocation91_spill] sm:$0xff]  ;;  %v7613_v30 = vld [vmem:[#allocation77_spill] sm:$0xff] }
 0x4c2   : > { %3903 = vst.msk [vmem:[#allocation4 + $0x80] sm:$0xff] %vm1954_vm3, %v3855_v51 }
 0x4c3   : > { %v4936_v25 = vpop.eup %4935  ;;  %3829 = vbcast.lane.b32.xlu1 %v7599_v13, 296  ;;  %v2578_v26 = vpop.permute.xlu1 %2577  ;;  %v1181_v13 = vmax.f32 %v6566_v57, 0.0  ;;  %v6619_v57 = vsel %vm993_vm2, %v7613_v30, %v6560_v61 }
 0x4c4   : > { %v3722_v59 = vpop.permute.xlu0 %3721  ;;  %v1211_v43 = vadd.f32 1.0, %v4936_v25  ;;  %v1182_v25 = vmax.f32 %v6575_v38, 0.0 }
 0x4c5   : > { %v3857_v2 = vsel %vm993_vm2, %v7603_v44, %v3722_v59  ;;  %v7614_v59 = vld [vmem:[#allocation79_spill] sm:$0xff]  ;;  %v7615_v44 = vld [vmem:[#allocation76_spill] sm:$0xff] }
 0x4c6   : > { %3905 = vst.msk [vmem:[#allocation4 + $0x90] sm:$0xff] %vm1954_vm3, %v3857_v2  ;;  %4939 = vlog2.f32 %v1211_v43  ;;  %v6625_v43 = vsel %vm993_vm2, %v7614_v59, %v6570_v46  ;;  %v6629_v2 = vsel %vm993_vm2, %v7615_v44, %v2530_v50 }
 0x4c7   : > { %v4938_v4 = vpop.eup %4937  ;;  %3837 = vbcast.lane.b32.xlu1 %v7601_v7, 296  ;;  %v7611_v7 = vld [vmem:[#allocation67_spill] sm:$0xff] }
 0x4c8   : > { %v3718_v45 = vpop.permute.xlu1 %3717  ;;  %v1212_v58 = vadd.f32 1.0, %v4938_v4  ;;  %v6614_v0 = vsel %vm993_vm2, %v7612_v47, %v7611_v7  ;;  %v7616_v4 = vld [vmem:[#allocation81_spill] sm:$0xff] }
 0x4c9   : > { %v3856_v55 = vsel %vm993_vm2, %v7604_v1, %v3718_v45  ;;  %v3730_v49 = vpop.permute.xlu0 %3729  ;;  %v6633_v45 = vsel %vm993_vm2, %v7616_v4, %v2554_v3 }
 0x4ca   : > { %3904 = vst.msk [vmem:[#allocation4 + $0x88] sm:$0xff] %vm1954_vm3, %v3856_v55  ;;  %v3859_v18 = vsel %vm993_vm2, %v7605_v54, %v3730_v49  ;;  %4941 = vlog2.f32 %v1212_v58  ;;  %v7617_v54 = vld [vmem:[#allocation78_spill] sm:$0xff] }
 0x4cb   : > { %3907 = vst.msk [vmem:[#allocation4 + $0xa0] sm:$0xff] %vm1954_vm3, %v3859_v18  ;;  %v6642_v46 = vsel %vm993_vm2, %v7617_v54, %v2546_v21  ;;  %v7618_v18 = vld [vmem:[#allocation83_spill] sm:$0xff] }
 0x4cc   : > { %v3726_v40 = vpop.permute.xlu1 %3725  ;;  %v6646_v50 = vsel %vm993_vm2, %v7618_v18, %v2570_v63 }
 0x4cd   : > { %v3858_v27 = vsel %vm993_vm2, %v7606_v48, %v3726_v40  ;;  %v3738_v29 = vpop.permute.xlu0 %3737  ;;  %v7619_v40 = vld [vmem:[#allocation80_spill] sm:$0xff]  ;;  %v7620_v48 = vld [vmem:[#allocation90_spill] sm:$0xff] }
 0x4ce   : > { %3906 = vst.msk [vmem:[#allocation4 + $0x98] sm:$0xff] %vm1954_vm3, %v3858_v27  ;;  %v3861_v6 = vsel %vm993_vm2, %v7607_v24, %v3738_v29  ;;  %v6650_v3 = vsel %vm993_vm2, %v7619_v40, %v2562_v34 }
 0x4cf   : > { %3909 = vst.msk [vmem:[#allocation4 + $0xb0] sm:$0xff] %vm1954_vm3, %v3861_v6 }
 0x4d0   : > { %v4940_v33 = vpop.eup %4939  ;;  %v3734_v37 = vpop.permute.xlu1 %3733 }
 0x4d1   : > { %v2586_v28 = vpop.permute.xlu0 %2585  ;;  %v1220_v5 = vmul.f32 0.6931472, %v4940_v33  ;;  %v3860_v15 = vsel %vm993_vm2, %v7608_v19, %v3734_v37  ;;  %v7621_v33 = vld [vmem:[#allocation82_spill] sm:$0xff] }
 0x4d2   : > { %3908 = vst.msk [vmem:[#allocation4 + $0xa8] sm:$0xff] %vm1954_vm3, %v3860_v15  ;;  %v6667_v37 = vsel %vm993_vm2, %v7621_v33, %v2578_v26 }
 0x4d3   : > { %v1229_v23 = vadd.f32 %v1220_v5, %v1181_v13  ;;  %v7622_v13 = vld [vmem:[#allocation93_spill] sm:$0xff] }
 0x4d4   : > { %v4942_v51 = vpop.eup %4941  ;;  %v3742_v58 = vpop.permute.xlu1 %3741  ;;  %v6671_v5 = vsel %vm993_vm2, %v7622_v13, %v2586_v28 }
 0x4d5   : > { %v6635_v1 = vpop.permute.xlu0 %2601  ;;  %v1373_v61 = vcombine.high %v1229_v23, %v1229_v23  ;;  %v1380_v55 = vrot.slane %v1229_v23, %v6206_v8  ;;  %v6638_v38 = vmul.f32 %v1259_v39, %v1229_v23  ;;  %v1222_v49 = vmul.f32 0.6931472, %v4942_v51 }
 0x4d6   : > { %v3862_v27 = vsel %vm993_vm2, %v7620_v48, %v3742_v58 }
 0x4d7   : > { %v1387_v29 = vrot.slane %v1373_v61, %v6206_v8  ;;  %v1388_v24 = vcombine.high %v1380_v55, %v1380_v55  ;;  %v1396_v6 = vrot.slane %v1380_v55, %v6206_v8  ;;  %v6658_v21 = vrot.slane %v6638_v38, %v6206_v8  ;;  %3910 = vst.msk [vmem:[#allocation4 + $0xb8] sm:$0xff] %vm1954_vm3, %v3862_v27 }
 0x4d8   : > { %v6661_v63 = vadd.f32 %v1222_v49, %v1182_v25  ;;  %v2923_v34 = vcombine.high %v6638_v38, %v6638_v38 }
 0x4d9   : > { %v1389_v19 = vcombine.high %v1387_v29, %v1387_v29  ;;  %v1403_v15 = vrot.slane %v1387_v29, %v6206_v8  ;;  %v1410_v36 = vrot.slane %v1388_v24, %v6206_v8  ;;  %v1418_v31 = vcombine.high %v1396_v6, %v1396_v6  ;;  %v6675_v39 = vpop.permute.xlu1 %2593 }
 0x4da   : > { %v1637_v47 = vrot.slane %v1396_v6, %v5613_v11  ;;  %v2946_v26 = vrot.slane %v6658_v21, %v6206_v8  ;;  %v1422_v23 = vcombine.high %v6661_v63, %v6661_v63  ;;  %v1429_v28 = vrot.slane %v6661_v63, %v6206_v8 }
 0x4db   : > { %v6677_v7 = vpop.permute.xlu0 %2617  ;;  %v1417_v30 = vrot.slane %v1389_v19, %v6206_v8  ;;  %v1419_v51 = vcombine.high %v1403_v15, %v1403_v15  ;;  %v1420_v25 = vcombine.high %v1410_v36, %v1410_v36  ;;  %v1641_v59 = vrot.slane %v1410_v36, %v5613_v11 }
 0x4dc   : > { %v1645_v44 = vrot.slane %v1418_v31, %v5613_v11  ;;  %v1653_v4 = vrot.slane %v1403_v15, %v5613_v11  ;;  %v1826_v58 = vmul.f32 %v1637_v47, %v6270_v42  ;;  %v3186_v61 = vrot.slane %v2946_v26, %v5613_v11 }
 0x4dd   : > { %v1421_v55 = vcombine.high %v1417_v30, %v1417_v30  ;;  %v1649_v49 = vrot.slane %v1420_v25, %v5613_v11  ;;  %v1657_v54 = vrot.slane %v1417_v30, %v5613_v11  ;;  %v1661_v18 = vrot.slane %v1419_v51, %v5613_v11  ;;  %v6695_v40 = vpop.permute.xlu1 %2609 }
 0x4de   : > { %v1827_v27 = vmul.f32 %v1641_v59, %v6270_v42  ;;  %v1828_v29 = vmul.f32 %v1645_v44, %v6270_v42  ;;  %v1830_v24 = vmul.f32 %v1653_v4, %v6270_v42  ;;  %v1890_v6 = vmul.f32 1.442695, %v1826_v58 }
 0x4df   : > { %v6697_v48 = vpop.permute.xlu0 %2633  ;;  %v1665_v33 = vrot.slane %v1421_v55, %v5613_v11  ;;  %v1829_v13 = vmul.f32 %v1649_v49, %v6270_v42  ;;  %v1831_v19 = vmul.f32 %v1657_v54, %v6270_v42  ;;  %v1832_v15 = vmul.f32 %v1661_v18, %v6270_v42 }
 0x4e0   : > { %4943 = vpow2.f32 %v1890_v6  ;;  %v1892_v36 = vmul.f32 1.442695, %v1827_v27  ;;  %v1894_v31 = vmul.f32 1.442695, %v1828_v29  ;;  %v1898_v47 = vmul.f32 1.442695, %v1830_v24 }
 0x4e1   : > { %v1833_v30 = vmul.f32 %v1665_v33, %v6270_v42  ;;  %v1896_v51 = vmul.f32 1.442695, %v1829_v13  ;;  %v1900_v25 = vmul.f32 1.442695, %v1831_v19  ;;  %v1902_v59 = vmul.f32 1.442695, %v1832_v15  ;;  %v6707_v44 = vpop.permute.xlu1 %2625 }
 0x4e2   : > { %4945 = vpow2.f32 %v1892_v36  ;;  %v3375_v4 = vmul.f32 %v3186_v61, %v6619_v57  ;;  %v1436_v58 = vrot.slane %v1422_v23, %v6206_v8  ;;  %v1437_v55 = vcombine.high %v1429_v28, %v1429_v28 }
 0x4e3   : > { %v6711_v49 = vpop.permute.xlu0 %3745  ;;  %4947 = vpow2.f32 %v1894_v31  ;;  %v1904_v54 = vmul.f32 1.442695, %v1833_v30  ;;  %v1445_v18 = vrot.slane %v1429_v28, %v6206_v8  ;;  %v2968_v27 = vcombine.high %v2946_v26, %v2946_v26 }
 0x4e4   : > { %4949 = vpow2.f32 %v1896_v51  ;;  %3423 = vst.msk [vmem:[#allocation3 + $0x80] sm:$0xff] %vm1954_vm3, %v3375_v4  ;;  %v1438_v29 = vcombine.high %v1436_v58, %v1436_v58  ;;  %v1452_v24 = vrot.slane %v1436_v58, %v6206_v8  ;;  %v1459_v6 = vrot.slane %v1437_v55, %v6206_v8 }
 0x4e5   : > { %4951 = vpow2.f32 %v1898_v47  ;;  %v1467_v57 = vcombine.high %v1445_v18, %v1445_v18  ;;  %v1669_v23 = vrot.slane %v1445_v18, %v5613_v11  ;;  %v3194_v61 = vrot.slane %v2968_v27, %v5613_v11  ;;  %v6719_v33 = vpop.permute.xlu1 %2641 }
 0x4e6   : > { %4953 = vpow2.f32 %v1900_v25  ;;  %v1466_v28 = vrot.slane %v1438_v29, %v6206_v8  ;;  %v1468_v26 = vcombine.high %v1452_v24, %v1452_v24  ;;  %v1469_v13 = vcombine.high %v1459_v6, %v1459_v6 }
 0x4e7   : > { %v6722_v19 = vpop.permute.xlu0 %3753  ;;  %4955 = vpow2.f32 %v1902_v59  ;;  %v1673_v15 = vrot.slane %v1459_v6, %v5613_v11  ;;  %v1677_v36 = vrot.slane %v1467_v57, %v5613_v11  ;;  %v1685_v31 = vrot.slane %v1452_v24, %v5613_v11 }
 0x4e8   : > { %4957 = vpow2.f32 %v1904_v54  ;;  %v1470_v47 = vcombine.high %v1466_v28, %v1466_v28  ;;  %v1681_v30 = vrot.slane %v1469_v13, %v5613_v11  ;;  %v1689_v51 = vrot.slane %v1466_v28, %v5613_v11 }
 0x4e9   : > { %v1693_v25 = vrot.slane %v1468_v26, %v5613_v11  ;;  %v1834_v4 = vmul.f32 %v1669_v23, %v6270_v42  ;;  %v1835_v58 = vmul.f32 %v1673_v15, %v6270_v42  ;;  %v1836_v59 = vmul.f32 %v1677_v36, %v6270_v42  ;;  %v6733_v55 = vpop.permute.xlu1 %3749 }
 0x4ea   : > { %v4944_v18 = vpop.eup %4943  ;;  %v1697_v27 = vrot.slane %v1470_v47, %v5613_v11  ;;  %v1837_v54 = vmul.f32 %v1681_v30, %v6270_v42  ;;  %v1838_v29 = vmul.f32 %v1685_v31, %v6270_v42  ;;  %v1839_v24 = vmul.f32 %v1689_v51, %v6270_v42  ;;  %v7623_v30 = vld [vmem:[#allocation95_spill] sm:$0xff] }
 0x4eb   : > { %v6739_v6 = vpop.permute.xlu0 %3761  ;;  %1971 = vst.msk [vmem:[#allocation2 + $0x80] sm:$0xff] %vm1954_vm3, %v4944_v18  ;;  %v1840_v57 = vmul.f32 %v1693_v25, %v6270_v42  ;;  %v1906_v23 = vmul.f32 1.442695, %v1834_v4  ;;  %v1908_v28 = vmul.f32 1.442695, %v1835_v58  ;;  %v6747_v31 = vsel %vm993_vm2, %v7623_v30, %v6635_v1 }
 0x4ec   : > { %v1910_v26 = vmul.f32 1.442695, %v1836_v59  ;;  %v4946_v13 = vpop.eup %4945  ;;  %v1841_v15 = vmul.f32 %v1697_v27, %v6270_v42  ;;  %v1912_v36 = vmul.f32 1.442695, %v1837_v54  ;;  %v1914_v47 = vmul.f32 1.442695, %v1838_v29 }
 0x4ed   : > { %v4948_v51 = vpop.eup %4947  ;;  %1972 = vst.msk [vmem:[#allocation2 + $0x88] sm:$0xff] %vm1954_vm3, %v4946_v13  ;;  %4959 = vpow2.f32 %v1906_v23  ;;  %v1916_v18 = vmul.f32 1.442695, %v1839_v24  ;;  %v3377_v25 = vmul.f32 %v3194_v61, %v6625_v43  ;;  %v2938_v4 = vcombine.high %v6658_v21, %v6658_v21  ;;  %v6753_v58 = vpop.permute.xlu1 %3757  ;;  %v7624_v29 = vld [vmem:[#allocation92_spill] sm:$0xff] }
 0x4ee   : > { %v4950_v42 = vpop.eup %4949  ;;  %1973 = vst.msk [vmem:[#allocation2 + $0x90] sm:$0xff] %vm1954_vm3, %v4948_v51  ;;  %4961 = vpow2.f32 %v1908_v28  ;;  %v1918_v59 = vmul.f32 1.442695, %v1840_v57  ;;  %v2937_v1 = vrot.slane %v2923_v34, %v6206_v8  ;;  %v1266_v27 = vmul.f32 %v6614_v0, %v6661_v63 }
 0x4ef   : > { %v6762_v54 = vpop.permute.xlu0 %3769  ;;  %v4952_v43 = vpop.eup %4951  ;;  %1974 = vst.msk [vmem:[#allocation2 + $0x98] sm:$0xff] %vm1954_vm3, %v4950_v42  ;;  %4963 = vpow2.f32 %v1910_v26  ;;  %v1920_v21 = vmul.f32 1.442695, %v1841_v15  ;;  %3425 = vst.msk [vmem:[#allocation3 + $0x90] sm:$0xff] %vm1954_vm3, %v3377_v25  ;;  %v2960_v61 = vrot.slane %v2938_v4, %v6206_v8  ;;  %v6770_v24 = vsel %vm993_vm2, %v7624_v29, %v6675_v39 }
 0x4f0   : > { %v4954_v38 = vpop.eup %4953  ;;  %1975 = vst.msk [vmem:[#allocation2 + $0xa0] sm:$0xff] %vm1954_vm3, %v4952_v43  ;;  %4965 = vpow2.f32 %v1912_v36  ;;  %v2953_v0 = vrot.slane %v2937_v1, %v6206_v8  ;;  %v2939_v63 = vcombine.high %v2937_v1, %v2937_v1  ;;  %v2979_v34 = vrot.slane %v1266_v27, %v6206_v8 }
 0x4f1   : > { %v4956_v57 = vpop.eup %4955  ;;  %1976 = vst.msk [vmem:[#allocation2 + $0xa8] sm:$0xff] %vm1954_vm3, %v4954_v38  ;;  %4967 = vpow2.f32 %v1914_v47  ;;  %v3190_v23 = vrot.slane %v2960_v61, %v5613_v11  ;;  %v2970_v28 = vcombine.high %v2960_v61, %v2960_v61  ;;  %v2972_v26 = vcombine.high %v1266_v27, %v1266_v27  ;;  %v6777_v13 = vpop.permute.xlu1 %3765 }
 0x4f2   : > { %v4958_v39 = vpop.eup %4957  ;;  %1977 = vst.msk [vmem:[#allocation2 + $0xb0] sm:$0xff] %vm1954_vm3, %v4956_v57  ;;  %4969 = vpow2.f32 %v1916_v18  ;;  %v3202_v15 = vrot.slane %v2953_v0, %v5613_v11  ;;  %v2969_v36 = vcombine.high %v2953_v0, %v2953_v0  ;;  %v2967_v30 = vrot.slane %v2939_v63, %v6206_v8 }
 0x4f3   : > { %v6782_v51 = vpop.permute.xlu0 %1150  ;;  %1978 = vst.msk [vmem:[#allocation2 + $0xb8] sm:$0xff] %vm1954_vm3, %v4958_v39  ;;  %4971 = vpow2.f32 %v1918_v59  ;;  %v3376_v47 = vmul.f32 %v3190_v23, %v6629_v2  ;;  %v3198_v25 = vrot.slane %v2970_v28, %v5613_v11  ;;  %v2995_v4 = vrot.slane %v2979_v34, %v6206_v8  ;;  %v7625_v28 = vld [vmem:[#allocation97_spill] sm:$0xff] }
 0x4f4   : > { %4973 = vpow2.f32 %v1920_v21  ;;  %v3379_v42 = vmul.f32 %v3202_v15, %v6633_v45  ;;  %v3210_v18 = vrot.slane %v2969_v36, %v5613_v11  ;;  %v3206_v1 = vrot.slane %v2967_v30, %v5613_v11 }
 0x4f5   : > { %3424 = vst.msk [vmem:[#allocation3 + $0x88] sm:$0xff] %vm1954_vm3, %v3376_v47  ;;  %v3378_v27 = vmul.f32 %v3198_v25, %v6642_v46  ;;  %v2971_v43 = vcombine.high %v2967_v30, %v2967_v30  ;;  %v3218_v59 = vrot.slane %v2995_v4, %v5613_v11  ;;  %v3017_v61 = vcombine.high %v2995_v4, %v2995_v4  ;;  %v6794_v2 = vpop.permute.xlu1 %3773  ;;  %v7627_v47 = vld [vmem:[#allocation27_spill] sm:$0xff]  ;;  %v7628_v4 = vld [vmem:[#allocation29_spill] sm:$0xff] }
 0x4f6   : > { %3427 = vst.msk [vmem:[#allocation3 + $0xa0] sm:$0xff] %vm1954_vm3, %v3379_v42  ;;  %v3381_v21 = vmul.f32 %v3210_v18, %v6646_v50  ;;  %v3380_v45 = vmul.f32 %v3206_v1, %v6650_v3  ;;  %v2987_v29 = vcombine.high %v2979_v34, %v2979_v34  ;;  %v2986_v38 = vrot.slane %v2972_v26, %v6206_v8  ;;  %v7626_v26 = vld [vmem:[#allocation94_spill] sm:$0xff] }
 0x4f7   : > { %v6800_v0 = vpop.permute.xlu0 %2649  ;;  %v4960_v63 = vpop.eup %4959  ;;  %3426 = vst.msk [vmem:[#allocation3 + $0x98] sm:$0xff] %vm1954_vm3, %v3378_v27  ;;  %v3214_v46 = vrot.slane %v2971_v43, %v5613_v11  ;;  %v3383_v57 = vmul.f32 %v3218_v59, %v6671_v5  ;;  %v3226_v23 = vrot.slane %v3017_v61, %v5613_v11  ;;  %v2799_v50 = vsel %vm993_vm2, %v7625_v28, %v6677_v7 }
 0x4f8   : > { %v4962_v39 = vpop.eup %4961  ;;  %1979 = vst.msk [vmem:[#allocation2 + $0xc0] sm:$0xff] %vm1954_vm3, %v4960_v63  ;;  %3429 = vst.msk [vmem:[#allocation3 + $0xb0] sm:$0xff] %vm1954_vm3, %v3381_v21  ;;  %v3009_v3 = vrot.slane %v2987_v29, %v6206_v8  ;;  %v3002_v34 = vrot.slane %v2986_v38, %v6206_v8  ;;  %v2798_v5 = vsel %vm993_vm2, %v7626_v26, %v6695_v40  ;;  %v7630_v21 = vld [vmem:[#allocation99_spill] sm:$0xff]  ;;  %v7631_v29 = vld [vmem:[#allocation28_spill] sm:$0xff] }
 0x4f9   : > { %3428 = vst.msk [vmem:[#allocation3 + $0xa8] sm:$0xff] %vm1954_vm3, %v3380_v45  ;;  %v2988_v15 = vcombine.high %v2986_v38, %v2986_v38  ;;  %v4964_v36 = vpop.eup %4963  ;;  %1980 = vst.msk [vmem:[#allocation2 + $0xc8] sm:$0xff] %vm1954_vm3, %v4962_v39  ;;  %v3382_v7 = vmul.f32 %v3214_v46, %v6667_v37  ;;  %v3385_v30 = vmul.f32 %v3226_v23, %v6747_v31  ;;  %v1153_v18 = vpop.permute.xlu1 %1152  ;;  %v7632_v39 = vld [vmem:[#allocation101_spill] sm:$0xff] }
 0x4fa   : > { %3431 = vst.msk [vmem:[#allocation3 + $0xc0] sm:$0xff] %vm1954_vm3, %v3383_v57  ;;  %v2801_v25 = vsel %vm993_vm2, %v7627_v47, %v6697_v48  ;;  %v3863_v42 = vsel %vm993_vm2, %v7628_v4, %v6711_v49  ;;  %v4966_v40 = vpop.eup %4965  ;;  %1981 = vst.msk [vmem:[#allocation2 + $0xd0] sm:$0xff] %vm1954_vm3, %v4964_v36  ;;  %v3222_v1 = vrot.slane %v3009_v3, %v5613_v11  ;;  %v7629_v49 = vld [vmem:[#allocation96_spill] sm:$0xff] }
 0x4fb   : > { %v3234_v37 = vrot.slane %v3002_v34, %v5613_v11  ;;  %v3019_v27 = vcombine.high %v3009_v3, %v3009_v3  ;;  %v3018_v43 = vcombine.high %v3002_v34, %v3002_v34  ;;  %3911 = vst.msk [vmem:[#allocation4 + $0xc0] sm:$0xff] %vm1954_vm3, %v3863_v42  ;;  %v6831_v31 = vpop.permute.xlu0 %2665  ;;  %v4968_v59 = vpop.eup %4967  ;;  %1982 = vst.msk [vmem:[#allocation2 + $0xd8] sm:$0xff] %vm1954_vm3, %v4966_v40 }
 0x4fc   : > { %3430 = vst.msk [vmem:[#allocation3 + $0xb8] sm:$0xff] %vm1954_vm3, %v3382_v7  ;;  %3433 = vst.msk [vmem:[#allocation3 + $0xd0] sm:$0xff] %vm1954_vm3, %v3385_v30  ;;  %v3016_v48 = vrot.slane %v2988_v15, %v6206_v8  ;;  %v2800_v61 = vsel %vm993_vm2, %v7629_v49, %v6707_v44  ;;  %v3865_v45 = vsel %vm993_vm2, %v7630_v21, %v6722_v19  ;;  %v4970_v63 = vpop.eup %4969 }
 0x4fd   : > { %v3864_v38 = vsel %vm993_vm2, %v7631_v29, %v6733_v55  ;;  %1983 = vst.msk [vmem:[#allocation2 + $0xe0] sm:$0xff] %vm1954_vm3, %v4968_v59  ;;  %v3384_v46 = vmul.f32 %v3222_v1, %v6770_v24  ;;  %v3387_v57 = vmul.f32 %v3234_v37, %v2799_v50  ;;  %v3230_v23 = vrot.slane %v3019_v27, %v5613_v11  ;;  %v4972_v44 = vpop.eup %4971  ;;  %v7633_v24 = vld [vmem:[#allocation98_spill] sm:$0xff]  ;;  %v6860_v34 = vpop.permute.xlu1 %2657  ;;  %v5015_v37 = vld [vmem:[%s7369_s8] ss:$0 sm:$0xff] }
 0x4fe   : > { %v3242_v28 = vrot.slane %v3018_v43, %v5613_v11  ;;  %3913 = vst.msk [vmem:[#allocation4 + $0xd0] sm:$0xff] %vm1954_vm3, %v3865_v45  ;;  %3912 = vst.msk [vmem:[#allocation4 + $0xc8] sm:$0xff] %vm1954_vm3, %v3864_v38  ;;  %v3238_v19 = vrot.slane %v3016_v48, %v5613_v11  ;;  %v3020_v55 = vcombine.high %v3016_v48, %v3016_v48  ;;  %v4974_v26 = vpop.eup %4973 }
 0x4ff   : > { %1984 = vst.msk [vmem:[#allocation2 + $0xe8] sm:$0xff] %vm1954_vm3, %v4970_v63  ;;  %v3867_v3 = vsel %vm993_vm2, %v7632_v39, %v6739_v6  ;;  %v3866_v50 = vsel %vm993_vm2, %v7633_v24, %v6753_v58  ;;  %1985 = vst.msk [vmem:[#allocation2 + $0xf0] sm:$0xff] %vm1954_vm3, %v4972_v44  ;;  %v3386_v15 = vmul.f32 %v3230_v23, %v2798_v5  ;;  %v7634_v6 = vld [vmem:[#allocation103_spill] sm:$0xff]  ;;  %v7635_v58 = vld [vmem:[#allocation100_spill] sm:$0xff]  ;;  %v6873_v47 = vpop.permute.xlu0 %2681 }
 0x500   : > { %3432 = vst.msk [vmem:[#allocation3 + $0xc8] sm:$0xff] %vm1954_vm3, %v3384_v46  ;;  %3435 = vst.msk [vmem:[#allocation3 + $0xe0] sm:$0xff] %vm1954_vm3, %v3387_v57  ;;  %v3389_v36 = vmul.f32 %v3242_v28, %v2801_v25  ;;  %v3869_v7 = vsel %vm993_vm2, %v7634_v6, %v6762_v54  ;;  %v3868_v30 = vsel %vm993_vm2, %v7635_v58, %v6777_v13  ;;  %v7636_v25 = vld [vmem:[#allocation57_spill] sm:$0xff]  ;;  %v7637_v54 = vld [vmem:[#allocation102_spill] sm:$0xff] }
 0x501   : > { %3915 = vst.msk [vmem:[#allocation4 + $0xe0] sm:$0xff] %vm1954_vm3, %v3867_v3  ;;  %3914 = vst.msk [vmem:[#allocation4 + $0xd8] sm:$0xff] %vm1954_vm3, %v3866_v50  ;;  %v3388_v4 = vmul.f32 %v3238_v19, %v2800_v61  ;;  %v3246_v5 = vrot.slane %v3020_v55, %v5613_v11  ;;  %v1164_v42 = vsel %vm993_vm2, %v7636_v25, %v6782_v51  ;;  %v7638_v13 = vld [vmem:[#allocation26_spill] sm:$0xff]  ;;  %v7639_v51 = vld [vmem:[#allocation61_spill] sm:$0xff]  ;;  %v2674_v48 = vpop.permute.xlu1 %2673 }
 0x502   : > { %1986 = vst.msk [vmem:[#allocation2 + $0xf8] sm:$0xff] %vm1954_vm3, %v4974_v26  ;;  %3917 = vst.msk [vmem:[#allocation4 + $0xf0] sm:$0xff] %vm1954_vm3, %v3869_v7  ;;  %v3870_v40 = vsel %vm993_vm2, %v7637_v54, %v6794_v2  ;;  %v2802_v1 = vsel %vm993_vm2, %v7638_v13, %v6719_v33  ;;  %v6893_v27 = vadd.f32 %v5015_v37, %v1164_v42  ;;  %v7641_v44 = vld [vmem:[#allocation34_spill] sm:$0xff]  ;;  %v7642_v39 = vld [vmem:[#allocation31_spill] sm:$0xff] }
 0x503   : > { %3916 = vst.msk [vmem:[#allocation4 + $0xe8] sm:$0xff] %vm1954_vm3, %v3868_v30  ;;  %3434 = vst.msk [vmem:[#allocation3 + $0xd8] sm:$0xff] %vm1954_vm3, %v3386_v15  ;;  %v1165_v43 = vsel %vm993_vm2, %v7639_v51, %v1153_v18  ;;  %v3390_v2 = vmul.f32 %v3246_v5, %v2802_v1  ;;  %v2698_v33 = vpop.permute.xlu0 %2697  ;;  %v7640_v18 = vld [vmem:[#allocation32_spill] sm:$0xff]  ;;  %v7644_v6 = vld [vmem:[#allocation33_spill] sm:$0xff] }
 0x504   : > { %3437 = vst.msk [vmem:[#allocation3 + $0xf0] sm:$0xff] %vm1954_vm3, %v3389_v36  ;;  %3918 = vst.msk [vmem:[#allocation4 + $0xf8] sm:$0xff] %vm1954_vm3, %v3870_v40  ;;  %v6899_v59 = vadd.f32 %v5015_v37, %v1165_v43  ;;  %v1189_v49 = vand.u32 2147483647, %v6893_v27  ;;  %v7643_v50 = vld [vmem:[#allocation36_spill] sm:$0xff]  ;;  %v7645_v5 = vld [vmem:[#allocation25_spill] sm:$0xff] }
 0x505   : > { %3436 = vst.msk [vmem:[#allocation3 + $0xe8] sm:$0xff] %vm1954_vm3, %v3388_v4  ;;  %3438 = vst.msk [vmem:[#allocation3 + $0xf8] sm:$0xff] %vm1954_vm3, %v3390_v2  ;;  %v2690_v29 = vpop.permute.xlu1 %2689  ;;  %v7646_v40 = vld [vmem:[#allocation35_spill] sm:$0xff]  ;;  %v7647_v37 = vld [vmem:[#allocation37_spill] sm:$0xff] }
 0x506   : > { %v1190_v61 = vand.u32 2147483647, %v6899_v59  ;;  %v1195_v21 = vsub.f32 0.0, %v1189_v49 }
 0x507   : > { %v3778_v63 = vpop.permute.xlu0 %3777 }
 0x508   : > { %v1196_v45 = vsub.f32 0.0, %v1190_v61  ;;  %v1205_v38 = vmul.f32 1.442695, %v1195_v21  ;;  %v3871_v57 = vsel %vm993_vm2, %v7640_v18, %v3778_v63  ;;  %v7648_v61 = vld [vmem:[#allocation68_spill] sm:$0xff]  ;;  %v7650_v63 = vld [vmem:[#allocation69_spill] sm:$0xff] }
 0x509   : > { %3919 = vst.msk [vmem:[#allocation4 + $0x100] sm:$0xff] %vm1954_vm3, %v3871_v57  ;;  %v2706_v23 = vpop.permute.xlu1 %2705  ;;  %v7649_v21 = vld [vmem:[#allocation24_spill] sm:$0xff]  ;;  %v1183_v57 = vmax.f32 %v6893_v27, 0.0 }
 0x50a   : > { %v1207_v46 = vmul.f32 1.442695, %v1196_v45  ;;  %4975 = vpow2.f32 %v1205_v38  ;;  %v1261_v45 = vsel %vm993_vm2, %v7649_v21, %v7648_v61 }
 0x50b   : > { %v3786_v28 = vpop.permute.xlu0 %3785 }
 0x50c   : > { %4977 = vpow2.f32 %v1207_v46  ;;  %v3873_v19 = vsel %vm993_vm2, %v7641_v44, %v3786_v28  ;;  %v7651_v46 = vld [vmem:[#allocation23_spill] sm:$0xff]  ;;  %v7652_v44 = vld [vmem:[#allocation105_spill] sm:$0xff] }
 0x50d   : > { %3921 = vst.msk [vmem:[#allocation4 + $0x110] sm:$0xff] %vm1954_vm3, %v3873_v19  ;;  %v3782_v55 = vpop.permute.xlu1 %3781  ;;  %v1262_v18 = vsel %vm993_vm2, %v7651_v46, %v7650_v63  ;;  %v6938_v19 = vsel %vm993_vm2, %v7652_v44, %v6800_v0 }
 0x50e   : > { %v3872_v3 = vsel %vm993_vm2, %v7642_v39, %v3782_v55  ;;  %v1184_v55 = vmax.f32 %v6899_v59, 0.0 }
 0x50f   : > { %v3794_v24 = vpop.permute.xlu0 %3793  ;;  %3920 = vst.msk [vmem:[#allocation4 + $0x108] sm:$0xff] %vm1954_vm3, %v3872_v3  ;;  %v7653_v3 = vld [vmem:[#allocation107_spill] sm:$0xff] }
 0x510   : > { %v3875_v26 = vsel %vm993_vm2, %v7643_v50, %v3794_v24  ;;  %v6944_v24 = vsel %vm993_vm2, %v7653_v3, %v6831_v31  ;;  %v7654_v50 = vld [vmem:[#allocation30_spill] sm:$0xff] }
 0x511   : > { %3923 = vst.msk [vmem:[#allocation4 + $0x120] sm:$0xff] %vm1954_vm3, %v3875_v26  ;;  %v3790_v15 = vpop.permute.xlu1 %3789  ;;  %v6949_v26 = vsel %vm993_vm2, %v7654_v50, %v6860_v34 }
 0x512   : > { %v3874_v7 = vsel %vm993_vm2, %v7644_v6, %v3790_v15  ;;  %v7656_v6 = vld [vmem:[#allocation106_spill] sm:$0xff] }
 0x513   : > { %v3802_v58 = vpop.permute.xlu0 %3801  ;;  %3922 = vst.msk [vmem:[#allocation4 + $0x118] sm:$0xff] %vm1954_vm3, %v3874_v7  ;;  %v6958_v59 = vsel %vm993_vm2, %v7656_v6, %v2674_v48  ;;  %v7657_v7 = vld [vmem:[#allocation111_spill] sm:$0xff] }
 0x514   : > { %v4976_v36 = vpop.eup %4975  ;;  %v3877_v25 = vsel %vm993_vm2, %v7645_v5, %v3802_v58  ;;  %v6962_v31 = vsel %vm993_vm2, %v7657_v7, %v2698_v33 }
 0x515   : > { %v1213_v4 = vadd.f32 1.0, %v4976_v36  ;;  %3925 = vst.msk [vmem:[#allocation4 + $0x130] sm:$0xff] %vm1954_vm3, %v3877_v25  ;;  %v3798_v54 = vpop.permute.xlu1 %3797  ;;  %v7655_v36 = vld [vmem:[#allocation109_spill] sm:$0xff] }
 0x516   : > { %v4978_v30 = vpop.eup %4977  ;;  %v3876_v13 = vsel %vm993_vm2, %v7646_v40, %v3798_v54  ;;  %v6954_v0 = vsel %vm993_vm2, %v7655_v36, %v6873_v47 }
 0x517   : > { %v1214_v42 = vadd.f32 1.0, %v4978_v30  ;;  %4979 = vlog2.f32 %v1213_v4  ;;  %3924 = vst.msk [vmem:[#allocation4 + $0x128] sm:$0xff] %vm1954_vm3, %v3876_v13  ;;  %v2714_v43 = vpop.permute.xlu0 %2713  ;;  %v7658_v30 = vld [vmem:[#allocation108_spill] sm:$0xff]  ;;  %v7659_v4 = vld [vmem:[#allocation110_spill] sm:$0xff] }
 0x518   : > { %v6966_v34 = vsel %vm993_vm2, %v7658_v30, %v2690_v29  ;;  %v6970_v5 = vsel %vm993_vm2, %v7659_v4, %v2706_v23  ;;  %v6974_v47 = vsel %vm993_vm2, %v6401_v16, %v2714_v43 }
 0x519   : > { %4981 = vlog2.f32 %v1214_v42  ;;  %v3806_v1 = vpop.permute.xlu1 %3805 }
 0x51a   : > { %v3878_v51 = vsel %vm993_vm2, %v7647_v37, %v3806_v1 }
 0x51b   : > { %3926 = vst.msk [vmem:[#allocation4 + $0x138] sm:$0xff] %vm1954_vm3, %v3878_v51  ;;  %v2730_v27 = vpop.permute.xlu0 %2729 }
 0x51c   : > { %v6981_v33 = vsel %vm993_vm2, %v6427_v41, %v2730_v27 }
 0x51d   : > { %v2722_v2 = vpop.permute.xlu1 %2721 }
 0x51e   : > { %v6990_v16 = vsel %vm993_vm2, %v6399_v53, %v2722_v2 }
 0x521   : > { %v4980_v49 = vpop.eup %4979  ;;  %v6983_v54 = vpop.permute.xlu1 %2737 }
 0x522   : > { %v1224_v28 = vmul.f32 0.6931472, %v4980_v49 }
 0x523   : > { %v4982_v38 = vpop.eup %4981 }
 0x524   : > { %v1226_v39 = vmul.f32 0.6931472, %v4982_v38  ;;  %v1231_v15 = vadd.f32 %v1224_v28, %v1183_v57  ;;  %v7006_v38 = vpop.permute.xlu0 %2745 }
 0x525   : > { %v7018_v3 = vpop.permute.xlu1 %2753 }
 0x526   : > { %v1232_v58 = vadd.f32 %v1226_v39, %v1184_v55  ;;  %v1471_v25 = vcombine.high %v1231_v15, %v1231_v15  ;;  %v1478_v48 = vrot.slane %v1231_v15, %v6206_v8  ;;  %v6977_v42 = vmul.f32 %v1261_v45, %v1231_v15  ;;  %v5016_v15 = vld [vmem:[%s7370_s9] sm:$0xff] }
 0x528   : > { %v1520_v29 = vcombine.high %v1232_v58, %v1232_v58  ;;  %v1527_v40 = vrot.slane %v1232_v58, %v6206_v8  ;;  %v6986_v23 = vmul.f32 %v1262_v18, %v1232_v58  ;;  %v1485_v13 = vrot.slane %v1471_v25, %v6206_v8 }
 0x529   : > { %v1486_v1 = vcombine.high %v1478_v48, %v1478_v48  ;;  %v1494_v37 = vrot.slane %v1478_v48, %v6206_v8  ;;  %v6996_v41 = vrot.slane %v6977_v42, %v6206_v8 }
 0x52a   : > { %v1534_v51 = vrot.slane %v1520_v29, %v6206_v8  ;;  %v1535_v43 = vcombine.high %v1527_v40, %v1527_v40  ;;  %v7000_v49 = vrot.slane %v1527_v40, %v6206_v8  ;;  %v1487_v53 = vcombine.high %v1485_v13, %v1485_v13 }
 0x52b   : > { %v1501_v2 = vrot.slane %v1485_v13, %v6206_v8  ;;  %v1508_v21 = vrot.slane %v1486_v1, %v6206_v8  ;;  %v1516_v45 = vcombine.high %v1494_v37, %v1494_v37  ;;  %v1701_v63 = vrot.slane %v1494_v37, %v5613_v11 }
 0x52c   : > { %v7011_v46 = vrot.slane %v6996_v41, %v6206_v8  ;;  %v1536_v18 = vcombine.high %v1534_v51, %v1534_v51  ;;  %v7014_v57 = vrot.slane %v1534_v51, %v6206_v8  ;;  %v1515_v28 = vrot.slane %v1487_v53, %v6206_v8  ;;  %v7031_v53 = vpop.permute.xlu0 %2761 }
 0x52d   : > { %v1517_v44 = vcombine.high %v1501_v2, %v1501_v2  ;;  %v1518_v55 = vcombine.high %v1508_v21, %v1508_v21  ;;  %v1705_v39 = vrot.slane %v1508_v21, %v5613_v11  ;;  %v1709_v50 = vrot.slane %v1516_v45, %v5613_v11 }
 0x52e   : > { %v1717_v27 = vrot.slane %v1501_v2, %v5613_v11  ;;  %v1842_v36 = vmul.f32 %v5016_v15, %v1701_v63  ;;  %v3250_v6 = vrot.slane %v7011_v46, %v5613_v11  ;;  %v1519_v7 = vcombine.high %v1515_v28, %v1515_v28 }
 0x52f   : > { %v1713_v58 = vrot.slane %v1518_v55, %v5613_v11  ;;  %v1721_v30 = vrot.slane %v1515_v28, %v5613_v11  ;;  %v1725_v4 = vrot.slane %v1517_v44, %v5613_v11  ;;  %v1843_v25 = vmul.f32 %v5016_v15, %v1705_v39  ;;  %v7033_v44 = vpop.permute.xlu1 %2769 }
 0x530   : > { %v1844_v48 = vmul.f32 %v5016_v15, %v1709_v50  ;;  %v1846_v29 = vmul.f32 %v5016_v15, %v1717_v27  ;;  %v1922_v40 = vmul.f32 1.442695, %v1842_v36  ;;  %v1729_v13 = vrot.slane %v1519_v7, %v5613_v11 }
 0x531   : > { %v1845_v1 = vmul.f32 %v5016_v15, %v1713_v58  ;;  %v1847_v37 = vmul.f32 %v5016_v15, %v1721_v30  ;;  %v1848_v51 = vmul.f32 %v5016_v15, %v1725_v4  ;;  %v1924_v2 = vmul.f32 1.442695, %v1843_v25  ;;  %v7049_v25 = vpop.permute.xlu0 %3809 }
 0x532   : > { %4983 = vpow2.f32 %v1922_v40  ;;  %v1926_v21 = vmul.f32 1.442695, %v1844_v48  ;;  %v1930_v45 = vmul.f32 1.442695, %v1846_v29  ;;  %v1849_v63 = vmul.f32 %v5016_v15, %v1729_v13 }
 0x533   : > { %v1928_v55 = vmul.f32 1.442695, %v1845_v1  ;;  %v1932_v28 = vmul.f32 1.442695, %v1847_v37  ;;  %v1934_v61 = vmul.f32 1.442695, %v1848_v51  ;;  %4985 = vpow2.f32 %v1924_v2  ;;  %v7055_v37 = vpop.permute.xlu1 %3813 }
 0x534   : > { %v3391_v39 = vmul.f32 %v3250_v6, %v6938_v19  ;;  %v1557_v50 = vrot.slane %v1535_v43, %v6206_v8  ;;  %v1564_v27 = vrot.slane %v1536_v18, %v6206_v8  ;;  %4987 = vpow2.f32 %v1926_v21 }
 0x535   : > { %v1936_v36 = vmul.f32 1.442695, %v1849_v63  ;;  %v1565_v7 = vcombine.high %v7000_v49, %v7000_v49  ;;  %v1566_v58 = vcombine.high %v7014_v57, %v7014_v57  ;;  %4989 = vpow2.f32 %v1928_v55 }
 0x536   : > { %3439 = vst.msk [vmem:[#allocation3 + $0x100] sm:$0xff] %vm1954_vm3, %v3391_v39  ;;  %v1567_v30 = vcombine.high %v1557_v50, %v1557_v50  ;;  %v1568_v4 = vcombine.high %v1564_v27, %v1564_v27  ;;  %v1733_v19 = vrot.slane %v7000_v49, %v5613_v11  ;;  %4991 = vpow2.f32 %v1930_v45 }
 0x537   : > { %v1737_v43 = vrot.slane %v1557_v50, %v5613_v11  ;;  %v1741_v18 = vrot.slane %v1565_v7, %v5613_v11  ;;  %v1749_v6 = vrot.slane %v7014_v57, %v5613_v11  ;;  %4993 = vpow2.f32 %v1932_v28 }
 0x538   : > { %v1745_v48 = vrot.slane %v1567_v30, %v5613_v11  ;;  %v1753_v29 = vrot.slane %v1564_v27, %v5613_v11  ;;  %v1757_v40 = vrot.slane %v1566_v58, %v5613_v11  ;;  %4995 = vpow2.f32 %v1934_v61  ;;  %v7065_v30 = vpop.permute.xlu0 %3817 }
 0x539   : > { %v1761_v49 = vrot.slane %v1568_v4, %v5613_v11  ;;  %v1850_v13 = vmul.f32 %v5016_v15, %v1733_v19  ;;  %v1851_v1 = vmul.f32 %v5016_v15, %v1737_v43  ;;  %4997 = vpow2.f32 %v1936_v36 }
 0x53a   : > { %v1852_v51 = vmul.f32 %v5016_v15, %v1741_v18  ;;  %v1853_v2 = vmul.f32 %v5016_v15, %v1745_v48  ;;  %v1854_v57 = vmul.f32 %v5016_v15, %v1749_v6  ;;  %v1855_v21 = vmul.f32 %v5016_v15, %v1753_v29  ;;  %v7077_v48 = vpop.permute.xlu1 %3821 }
 0x53b   : > { %v1856_v45 = vmul.f32 %v5016_v15, %v1757_v40  ;;  %v1857_v63 = vmul.f32 %v5016_v15, %v1761_v49  ;;  %v1938_v55 = vmul.f32 1.442695, %v1850_v13  ;;  %v1940_v39 = vmul.f32 1.442695, %v1851_v1 }
 0x53c   : > { %v4984_v28 = vpop.eup %4983  ;;  %v1942_v50 = vmul.f32 1.442695, %v1852_v51  ;;  %v1944_v27 = vmul.f32 1.442695, %v1853_v2  ;;  %v3066_v61 = vcombine.high %v7011_v46, %v7011_v46  ;;  %v1946_v7 = vmul.f32 1.442695, %v1854_v57 }
 0x53d   : > { %1987 = vst.msk [vmem:[#allocation2 + $0x100] sm:$0xff] %vm1954_vm3, %v4984_v28  ;;  %4999 = vpow2.f32 %v1938_v55  ;;  %v1948_v58 = vmul.f32 1.442695, %v1855_v21  ;;  %v7063_v36 = vsel %vm993_vm2, %v6442_v20, %v7006_v38  ;;  %v4986_v15 = vpop.eup %4985  ;;  %v1950_v4 = vmul.f32 1.442695, %v1856_v45  ;;  %v7093_v28 = vpop.permute.xlu0 %3825 }
 0x53e   : > { %5001 = vpow2.f32 %v1940_v39  ;;  %v3258_v19 = vrot.slane %v3066_v61, %v5613_v11  ;;  %v3036_v46 = vcombine.high %v6996_v41, %v6996_v41  ;;  %v4988_v43 = vpop.eup %4987  ;;  %1988 = vst.msk [vmem:[#allocation2 + $0x108] sm:$0xff] %vm1954_vm3, %v4986_v15  ;;  %v1952_v18 = vmul.f32 1.442695, %v1857_v63 }
 0x53f   : > { %5003 = vpow2.f32 %v1942_v50  ;;  %v7660_v20 = vcombine.high %v6977_v42, %v6977_v42  ;;  %v3077_v6 = vrot.slane %v6986_v23, %v6206_v8  ;;  %v4990_v29 = vpop.eup %4989  ;;  %1989 = vst.msk [vmem:[#allocation2 + $0x110] sm:$0xff] %vm1954_vm3, %v4988_v43  ;;  %v3070_v49 = vcombine.high %v6986_v23, %v6986_v23 }
 0x540   : > { %5005 = vpow2.f32 %v1944_v27  ;;  %v3393_v41 = vmul.f32 %v3258_v19, %v6944_v24  ;;  %v3058_v40 = vrot.slane %v3036_v46, %v6206_v8  ;;  %v4992_v13 = vpop.eup %4991  ;;  %1990 = vst.msk [vmem:[#allocation2 + $0x118] sm:$0xff] %vm1954_vm3, %v4990_v29  ;;  %v7103_v19 = vpop.permute.xlu1 %3829 }
 0x541   : > { %v3035_v38 = vrot.slane %v7660_v20, %v6206_v8  ;;  %5007 = vpow2.f32 %v1946_v7  ;;  %v3093_v51 = vrot.slane %v3077_v6, %v6206_v8  ;;  %v4994_v2 = vpop.eup %4993  ;;  %1991 = vst.msk [vmem:[#allocation2 + $0x120] sm:$0xff] %vm1954_vm3, %v4992_v13  ;;  %v3085_v21 = vcombine.high %v3077_v6, %v3077_v6 }
 0x542   : > { %5009 = vpow2.f32 %v1948_v58  ;;  %3441 = vst.msk [vmem:[#allocation3 + $0x110] sm:$0xff] %vm1954_vm3, %v3393_v41  ;;  %v3254_v24 = vrot.slane %v3058_v40, %v5613_v11  ;;  %v3068_v57 = vcombine.high %v3058_v40, %v3058_v40  ;;  %v4996_v23 = vpop.eup %4995  ;;  %1992 = vst.msk [vmem:[#allocation2 + $0x128] sm:$0xff] %vm1954_vm3, %v4994_v2  ;;  %v3084_v29 = vrot.slane %v3070_v49, %v6206_v8 }
 0x543   : > { %v3051_v42 = vrot.slane %v3035_v38, %v6206_v8  ;;  %v3037_v1 = vcombine.high %v3035_v38, %v3035_v38  ;;  %5011 = vpow2.f32 %v1950_v4  ;;  %v4998_v39 = vpop.eup %4997  ;;  %1993 = vst.msk [vmem:[#allocation2 + $0x130] sm:$0xff] %vm1954_vm3, %v4996_v23  ;;  %v3282_v61 = vrot.slane %v3093_v51, %v5613_v11 }
 0x544   : > { %5013 = vpow2.f32 %v1952_v18  ;;  %v3392_v50 = vmul.f32 %v3254_v24, %v6949_v26  ;;  %v3262_v27 = vrot.slane %v3068_v57, %v5613_v11  ;;  %1994 = vst.msk [vmem:[#allocation2 + $0x138] sm:$0xff] %vm1954_vm3, %v4998_v39  ;;  %v3115_v43 = vcombine.high %v3093_v51, %v3093_v51  ;;  %v3834_v51 = vpop.permute.xlu0 %3833 }
 0x545   : > { %v3266_v45 = vrot.slane %v3051_v42, %v5613_v11  ;;  %v3067_v63 = vcombine.high %v3051_v42, %v3051_v42  ;;  %v3065_v55 = vrot.slane %v3037_v1, %v6206_v8  ;;  %v3399_v26 = vmul.f32 %v3282_v61, %v6974_v47 }
 0x546   : > { %3440 = vst.msk [vmem:[#allocation3 + $0x108] sm:$0xff] %vm1954_vm3, %v3392_v50  ;;  %v3394_v46 = vmul.f32 %v3262_v27, %v6958_v59  ;;  %v3107_v18 = vrot.slane %v3085_v21, %v6206_v8  ;;  %v3290_v59 = vrot.slane %v3115_v43, %v5613_v11  ;;  %v3100_v13 = vrot.slane %v3084_v29, %v6206_v8 }
 0x547   : > { %v3395_v7 = vmul.f32 %v3266_v45, %v6954_v0  ;;  %v3274_v58 = vrot.slane %v3067_v63, %v5613_v11  ;;  %v3270_v15 = vrot.slane %v3065_v55, %v5613_v11  ;;  %v3069_v4 = vcombine.high %v3065_v55, %v3065_v55  ;;  %v5000_v20 = vpop.eup %4999  ;;  %3447 = vst.msk [vmem:[#allocation3 + $0x140] sm:$0xff] %vm1954_vm3, %v3399_v26 }
 0x548   : > { %v5002_v41 = vpop.eup %5001  ;;  %1995 = vst.msk [vmem:[#allocation2 + $0x140] sm:$0xff] %vm1954_vm3, %v5000_v20  ;;  %3442 = vst.msk [vmem:[#allocation3 + $0x118] sm:$0xff] %vm1954_vm3, %v3394_v46  ;;  %v3286_v47 = vrot.slane %v3107_v18, %v5613_v11  ;;  %v3117_v40 = vcombine.high %v3107_v18, %v3107_v18  ;;  %v2814_v42 = vsel %vm993_vm2, %v6425_v22, %v6983_v54 }
 0x549   : > { %3443 = vst.msk [vmem:[#allocation3 + $0x120] sm:$0xff] %vm1954_vm3, %v3395_v7  ;;  %v3397_v0 = vmul.f32 %v3274_v58, %v6962_v31  ;;  %v3396_v38 = vmul.f32 %v3270_v15, %v6966_v34  ;;  %v3278_v6 = vrot.slane %v3069_v4, %v5613_v11  ;;  %v3879_v31 = vsel %vm993_vm2, %v6506_v10, %v7049_v25  ;;  %v5004_v34 = vpop.eup %5003 }
 0x54a   : > { %1996 = vst.msk [vmem:[#allocation2 + $0x148] sm:$0xff] %vm1954_vm3, %v5002_v41  ;;  %v3086_v1 = vcombine.high %v3084_v29, %v3084_v29  ;;  %3927 = vst.msk [vmem:[#allocation4 + $0x140] sm:$0xff] %vm1954_vm3, %v3879_v31  ;;  %v5006_v10 = vpop.eup %5005  ;;  %v3401_v25 = vmul.f32 %v3290_v59, %v6981_v33  ;;  %v3400_v2 = vmul.f32 %v3286_v47, %v6990_v16  ;;  %v3838_v16 = vpop.permute.xlu1 %3837 }
 0x54b   : > { %3445 = vst.msk [vmem:[#allocation3 + $0x130] sm:$0xff] %vm1954_vm3, %v3397_v0  ;;  %3444 = vst.msk [vmem:[#allocation3 + $0x128] sm:$0xff] %vm1954_vm3, %v3396_v38  ;;  %v3398_v49 = vmul.f32 %v3278_v6, %v6970_v5  ;;  %v3294_v24 = vrot.slane %v3117_v40, %v5613_v11  ;;  %v3881_v5 = vsel %vm993_vm2, %v6512_v35, %v7065_v30  ;;  %v5008_v57 = vpop.eup %5007 }
 0x54c   : > { %1997 = vst.msk [vmem:[#allocation2 + $0x150] sm:$0xff] %vm1954_vm3, %v5004_v34  ;;  %1998 = vst.msk [vmem:[#allocation2 + $0x158] sm:$0xff] %vm1954_vm3, %v5006_v10  ;;  %v3298_v22 = vrot.slane %v3100_v13, %v5613_v11  ;;  %v3116_v54 = vcombine.high %v3100_v13, %v3100_v13  ;;  %v3114_v21 = vrot.slane %v3086_v1, %v6206_v8  ;;  %v5010_v23 = vpop.eup %5009 }
 0x54d   : > { %3446 = vst.msk [vmem:[#allocation3 + $0x138] sm:$0xff] %vm1954_vm3, %v3398_v49  ;;  %3929 = vst.msk [vmem:[#allocation4 + $0x150] sm:$0xff] %vm1954_vm3, %v3881_v5  ;;  %v3880_v33 = vsel %vm993_vm2, %v6504_v62, %v7055_v37  ;;  %v3402_v35 = vmul.f32 %v3294_v24, %v2814_v42  ;;  %v3883_v8 = vsel %vm993_vm2, %v6517_v56, %v7093_v28  ;;  %v5012_v37 = vpop.eup %5011 }
 0x54e   : > { %1999 = vst.msk [vmem:[#allocation2 + $0x160] sm:$0xff] %vm1954_vm3, %v5008_v57  ;;  %3449 = vst.msk [vmem:[#allocation3 + $0x150] sm:$0xff] %vm1954_vm3, %v3401_v25  ;;  %v3882_v30 = vsel %vm993_vm2, %v6510_v60, %v7077_v48  ;;  %v3885_v62 = vsel %vm993_vm2, %v6523_v52, %v3834_v51  ;;  %v3403_v45 = vmul.f32 %v3298_v22, %v7063_v36  ;;  %v5014_v60 = vpop.eup %5013 }
 0x54f   : > { %3448 = vst.msk [vmem:[#allocation3 + $0x148] sm:$0xff] %vm1954_vm3, %v3400_v2  ;;  %3928 = vst.msk [vmem:[#allocation4 + $0x148] sm:$0xff] %vm1954_vm3, %v3880_v33  ;;  %v3306_v63 = vrot.slane %v3116_v54, %v5613_v11  ;;  %v3302_v55 = vrot.slane %v3114_v21, %v5613_v11  ;;  %v3118_v39 = vcombine.high %v3114_v21, %v3114_v21 }
 0x550   : > { %2000 = vst.msk [vmem:[#allocation2 + $0x168] sm:$0xff] %vm1954_vm3, %v5010_v23  ;;  %3931 = vst.msk [vmem:[#allocation4 + $0x160] sm:$0xff] %vm1954_vm3, %v3883_v8  ;;  %v2817_v56 = vsel %vm993_vm2, %v6453_v17, %v7031_v53  ;;  %v2816_v52 = vsel %vm993_vm2, %v6440_v32, %v7018_v3  ;;  %v3884_v36 = vsel %vm993_vm2, %v6515_v14, %v7103_v19  ;;  %v7189_v14 = vmov 0.0  }
 0x551   : > { %3930 = vst.msk [vmem:[#allocation4 + $0x158] sm:$0xff] %vm1954_vm3, %v3882_v30  ;;  %3933 = vst.msk [vmem:[#allocation4 + $0x170] sm:$0xff] %vm1954_vm3, %v3885_v62  ;;  %v3886_v48 = vsel %vm993_vm2, %v6521_v12, %v3838_v16  ;;  %v3405_v28 = vmul.f32 %v3306_v63, %v2817_v56  ;;  %v3404_v50 = vmul.f32 %v3302_v55, %v2816_v52 }
 0x552   : > { %2001 = vst.msk [vmem:[#allocation2 + $0x170] sm:$0xff] %vm1954_vm3, %v5012_v37  ;;  %3450 = vst.msk [vmem:[#allocation3 + $0x158] sm:$0xff] %vm1954_vm3, %v3402_v35  ;;  %v3310_v27 = vrot.slane %v3118_v39, %v5613_v11  ;;  %v2818_v32 = vsel %vm993_vm2, %v6451_v9, %v7033_v44 }
 0x553   : > { %2002 = vst.msk [vmem:[#allocation2 + $0x178] sm:$0xff] %vm1954_vm3, %v5014_v60  ;;  %3451 = vst.msk [vmem:[#allocation3 + $0x160] sm:$0xff] %vm1954_vm3, %v3403_v45 }
 0x554   : > { %3932 = vst.msk [vmem:[#allocation4 + $0x168] sm:$0xff] %vm1954_vm3, %v3884_v36  ;;  %3934 = vst.msk [vmem:[#allocation4 + $0x178] sm:$0xff] %vm1954_vm3, %v3886_v48  ;;  %v3406_v17 = vmul.f32 %v3310_v27, %v2818_v32 }
 0x555   : > { %3453 = vst.msk [vmem:[#allocation3 + $0x170] sm:$0xff] %vm1954_vm3, %v3405_v28  ;;  %3452 = vst.msk [vmem:[#allocation3 + $0x168] sm:$0xff] %vm1954_vm3, %v3404_v50 }
 0x556   : > { %3454 = vst.msk [vmem:[#allocation3 + $0x178] sm:$0xff] %vm1954_vm3, %v3406_v17 }
 0x557 LB: >> { %s4645_s20 = sshll.u32 %s5051_s19, 6  ;;  %vm4086_vm4 = vcmask 1040384   ;;  %vm4088_vm5 = vcmask 1041408   ;;  %vm4090_vm6 = vcmask 1042432   ;;  %vm4092_vm7 = vcmask 1043456   ;;  %s4572_s25 = sshll.u32 %s5051_s19, 3  ;;  %s5051_s19 = sphi %s7191_s19, %s3940_s19   ;;  %v5047_v14 = vphi %v7189_v14, %v4075_v14  }
 0x558   : >> { %s7198_s22 = scalar_lea.vmem [#allocation2], %s4645_s20  ;;  %s7201_s23 = scalar_lea.vmem [#allocation3], %s4645_s20  ;;  %vm4094_vm8 = vcmask 1044480   ;;  %vm4096_vm9 = vcmask 1045504   ;;  %vm4098_vm10 = vcmask 1046528  }
 0x559   : >> { %s7204_s24 = scalar_lea.vmem [#allocation4], %s4645_s20  ;;  %s4100_s26 = scalar_lea.vmem [#allocation5], %s4572_s25 }
 0x55a   : >> { %v3945_v11 = vld [vmem:[%s7198_s22] sm:$0xff]  ;;  %v4576_v53 = vld [vmem:[%s7198_s22 + $0x8] sm:$0xff]  ;;  %v4585_v4 = vld [vmem:[%s7198_s22 + $0x10] sm:$0xff]  ;;  %s5057_s27 = smov 96   ;;  %s4109_s28 = ssub.s32 40, %s4572_s25 }
 0x55b   : >> { %v3946_v12 = vmul.f32 %v5047_v14, %v3945_v11  ;;  %v3951_v3 = vld [vmem:[%s7204_s24] sm:$0xff]  ;;  %v4582_v15 = vld [vmem:[%s7204_s24 + $0x8] sm:$0xff]  ;;  %v4591_v0 = vld [vmem:[%s7204_s24 + $0x10] sm:$0xff]  ;;  %s4114_s30 = scalar_lea.vmem [#allocation6], %s4109_s28  ;;  %s3940_s19 = sadd.s32 1, %s5051_s19  }
 0x55c   : >> { %v4594_v38 = vld [vmem:[%s7198_s22 + $0x18] sm:$0xff]  ;;  %v4603_v13 = vld [vmem:[%s7198_s22 + $0x20] sm:$0xff]  ;;  %v4612_v54 = vld [vmem:[%s7198_s22 + $0x28] sm:$0xff]  ;;  %p3937_p4 = scmp.ge.s32.totalorder %s3940_s19, 6  }
 0x55d   : >> { %v3948_v9 = vld [vmem:[%s7201_s23] sm:$0xff]  ;;  %v4579_v61 = vld [vmem:[%s7201_s23 + $0x8] sm:$0xff]  ;;  %v4588_v43 = vld [vmem:[%s7201_s23 + $0x10] sm:$0xff]  ;;  %s5058_s17 = smov (%p3937_p4), 96  }
 0x55e   : >> { %v3949_v44 = vadd.f32 %v3948_v9, %v3946_v12  ;;  %v4597_v47 = vld [vmem:[%s7201_s23 + $0x18] sm:$0xff]  ;;  %v4606_v2 = vld [vmem:[%s7201_s23 + $0x20] sm:$0xff]  ;;  %v4615_v30 = vld [vmem:[%s7201_s23 + $0x28] sm:$0xff] }
 0x55f   : >> { %v4600_v49 = vld [vmem:[%s7204_s24 + $0x18] sm:$0xff]  ;;  %v4609_v22 = vld [vmem:[%s7204_s24 + $0x20] sm:$0xff]  ;;  %v4618_v63 = vld [vmem:[%s7204_s24 + $0x28] sm:$0xff] }
 0x560   : >> { %v3952_v7 = vmul.f32 %v3951_v3, %v3949_v44  ;;  %v3964_v58 = vmul.f32 %v4576_v53, %v3949_v44  ;;  %v4621_v55 = vld [vmem:[%s7198_s22 + $0x30] sm:$0xff]  ;;  %v4630_v9 = vld [vmem:[%s7198_s22 + $0x38] sm:$0xff] }
 0x561   : >> { %v4624_v50 = vld [vmem:[%s7201_s23 + $0x30] sm:$0xff] }
 0x562   : >> { %v3953_v19 = vsel %vm1954_vm3, %v3952_v7, 0.0  ;;  %v3967_v46 = vadd.f32 %v4579_v61, %v3964_v58  ;;  %v4627_v11 = vld [vmem:[%s7204_s24 + $0x30] sm:$0xff] }
 0x563   : >> { %v3954_v26 = vrot.slane %v3953_v19, 4 }
 0x564   : >> { %v3970_v18 = vmul.f32 %v4582_v15, %v3967_v46  ;;  %v3982_v20 = vmul.f32 %v4585_v4, %v3967_v46  ;;  %v4633_v15 = vld [vmem:[%s7201_s23 + $0x38] sm:$0xff] }
 0x565   : >> { %v3955_v41 = vadd.f32 %v3954_v26, %v3953_v19 }
 0x566   : >> { %v3971_v6 = vsel %vm1954_vm3, %v3970_v18, 0.0  ;;  %v3985_v29 = vadd.f32 %v4588_v43, %v3982_v20  ;;  %v4636_v18 = vld [vmem:[%s7204_s24 + $0x38] sm:$0xff] }
 0x567   : >> { %v3972_v59 = vrot.slane %v3971_v6, 4  ;;  %v3956_v51 = vrot.slane %v3955_v41, 2 }
 0x568   : >> { %v3988_v40 = vmul.f32 %v4591_v0, %v3985_v29  ;;  %v4000_v31 = vmul.f32 %v4594_v38, %v3985_v29 }
 0x569   : >> { %v3973_v34 = vadd.f32 %v3972_v59, %v3971_v6  ;;  %v3957_v16 = vadd.f32 %v3956_v51, %v3955_v41 }
 0x56a   : >> { %v3989_v42 = vsel %vm1954_vm3, %v3988_v40, 0.0  ;;  %v4003_v1 = vadd.f32 %v4597_v47, %v4000_v31 }
 0x56b   : >> { %v3974_v10 = vrot.slane %v3973_v34, 2  ;;  %v3990_v25 = vrot.slane %v3989_v42, 4  ;;  %v3958_v52 = vrot.slane %v3957_v16, 1 }
 0x56c   : >> { %v4006_v24 = vmul.f32 %v4600_v49, %v4003_v1  ;;  %v4018_v5 = vmul.f32 %v4603_v13, %v4003_v1 }
 0x56d   : >> { %v3991_v57 = vadd.f32 %v3990_v25, %v3989_v42  ;;  %v3975_v23 = vadd.f32 %v3974_v10, %v3973_v34  ;;  %v3959_v44 = vadd.f32 %v3958_v52, %v3957_v16 }
 0x56e   : >> { %v4007_v21 = vsel %vm1954_vm3, %v4006_v24, 0.0  ;;  %v4021_v33 = vadd.f32 %v4606_v2, %v4018_v5 }
 0x56f   : >> { %v3992_v35 = vrot.slane %v3991_v57, 2  ;;  %v4008_v8 = vrot.slane %v4007_v21, 4  ;;  %v3976_v36 = vrot.slane %v3975_v23, 1 }
 0x570   : >> { %v4024_v62 = vmul.f32 %v4609_v22, %v4021_v33  ;;  %v4036_v37 = vmul.f32 %v4612_v54, %v4021_v33 }
 0x571   : >> { %v4009_v45 = vadd.f32 %v4008_v8, %v4007_v21  ;;  %v3993_v39 = vadd.f32 %v3992_v35, %v3991_v57  ;;  %v3977_v61 = vadd.f32 %v3976_v36, %v3975_v23  ;;  %v4637_v36 = vld [vmem:[%s7371_s10] ss:$0 sm:$0xff] (%p3937_p4) }
 0x572   : >> { %v4025_v60 = vsel %vm1954_vm3, %v4024_v62, 0.0  ;;  %v4039_v56 = vadd.f32 %v4615_v30, %v4036_v37 }
 0x573   : >> { %v4010_v48 = vrot.slane %v4009_v45, 2  ;;  %v4026_v28 = vrot.slane %v4025_v60, 4  ;;  %v3994_v12 = vrot.slane %v3993_v39, 1  ;;  %v4087_v20 = vsel %vm4086_vm4, %v3959_v44, %v3977_v61 }
 0x574   : >> { %v4042_v27 = vmul.f32 %v4618_v63, %v4039_v56  ;;  %v4054_v32 = vmul.f32 %v4621_v55, %v4039_v56 }
 0x575   : >> { %v4011_v17 = vadd.f32 %v4010_v48, %v4009_v45  ;;  %v4027_v14 = vadd.f32 %v4026_v28, %v4025_v60  ;;  %v3995_v0 = vadd.f32 %v3994_v12, %v3993_v39  ;;  %v7661_v48 = vmov (%p3937_p4), 0.0   ;;  %v7664_v12 = vld [vmem:[#allocation20_spill] sm:$0xff] (%p3937_p4) }
 0x576   : >> { %v4043_v3 = vsel %vm1954_vm3, %v4042_v27, 0.0  ;;  %v4057_v53 = vadd.f32 %v4624_v50, %v4054_v32  ;;  %4750 = vmatprep.subr.bf16.mxu0 (%p3937_p4), %v7661_v48  ;;  %4754 = vmatprep.mubr.msk.bf16.mxu0 (%p3937_p4), %vm5054_vm1, %v7661_v48  ;;  %v7662_v50 = vld [vmem:[#allocation19_spill] sm:$0xff] (%p3937_p4) }
 0x577   : >> { %v4028_v7 = vrot.slane %v4027_v14, 2  ;;  %v4044_v58 = vrot.slane %v4043_v3, 4  ;;  %v4012_v46 = vrot.slane %v4011_v17, 1  ;;  %v4089_v47 = vsel %vm4088_vm5, %v4087_v20, %v3995_v0 }
 0x578   : >> { %v4060_v4 = vmul.f32 %v4627_v11, %v4057_v53  ;;  %v4072_v19 = vmul.f32 %v4630_v9, %v4057_v53  ;;  %v4141_v27 = vmul.f32 (%p3937_p4), %v4637_v36, %v7662_v50 }
 0x579   : >> { %v4029_v26 = vadd.f32 %v4028_v7, %v4027_v14  ;;  %v4045_v43 = vadd.f32 %v4044_v58, %v4043_v3  ;;  %v4013_v40 = vadd.f32 %v4012_v46, %v4011_v17  ;;  %v4142_v3 = vmul.f32 (%p3937_p4), %v4637_v36, %v7664_v12  ;;  %v7665_v58 = vld [vmem:[#allocation21_spill] sm:$0xff] (%p3937_p4)  ;;  %v4292_v12 = vld [vmem:[%s7374_s13 + $0x8] sm:$0xff] (%p3937_p4) }
 0x57a   : >> { %v4061_v38 = vsel %vm1954_vm3, %v4060_v4, 0.0  ;;  %v4075_v14 = vadd.f32 %v4633_v15, %v4072_v19   ;;  %v4144_v15 = vmul.f32 (%p3937_p4), %v4637_v36, %v7665_v58 }
 0x57b   : >> { %v4046_v6 = vrot.slane %v4045_v43, 2  ;;  %v4062_v29 = vrot.slane %v4061_v38, 4  ;;  %v4030_v41 = vrot.slane %v4029_v26, 1  ;;  %v4091_v51 = vsel %vm4090_vm6, %v4089_v47, %v4013_v40 }
 0x57c   : >> { %v4078_v59 = vmul.f32 %v4636_v18, %v4075_v14  ;;  %v7663_v14 = vld [vmem:[#allocation22_spill] sm:$0xff] (%p3937_p4)  ;;  %v7666_v18 = vld [vmem:[#allocation24_spill] sm:$0xff] (%p3937_p4) }
 0x57d   : >> { %v4047_v31 = vadd.f32 %v4046_v6, %v4045_v43  ;;  %v4063_v34 = vadd.f32 %v4062_v29, %v4061_v38  ;;  %v4031_v10 = vadd.f32 %v4030_v41, %v4029_v26  ;;  %v4143_v11 = vmul.f32 (%p3937_p4), %v4637_v36, %v7663_v14  ;;  %v7667_v41 = vld [vmem:[#allocation23_spill] sm:$0xff] (%p3937_p4)  ;;  %v7671_v14 = vld [vmem:[#allocation14_spill] sm:$0xff] (%p3937_p4) }
 0x57e   : >> { %v4079_v49 = vsel %vm1954_vm3, %v4078_v59, 0.0  ;;  %v4145_v20 = vmul.f32 (%p3937_p4), %v4637_v36, %v7666_v18  ;;  %v4146_v59 = vmul.f32 (%p3937_p4), %v4637_v36, %v7667_v41 }
 0x57f   : >> { %v4048_v13 = vrot.slane %v4047_v31, 1  ;;  %v4064_v42 = vrot.slane %v4063_v34, 2  ;;  %v4080_v1 = vrot.slane %v4079_v49, 4  ;;  %v4093_v24 = vsel %vm4092_vm7, %v4091_v51, %v4031_v10 }
 0x581   : >> { %v4065_v25 = vadd.f32 %v4064_v42, %v4063_v34  ;;  %v4081_v2 = vadd.f32 %v4080_v1, %v4079_v49  ;;  %v4049_v5 = vadd.f32 %v4048_v13, %v4047_v31 }
 0x583   : >> { %v4066_v57 = vrot.slane %v4065_v25, 1  ;;  %v4082_v22 = vrot.slane %v4081_v2, 2  ;;  %v4095_v21 = vsel %vm4094_vm8, %v4093_v24, %v4049_v5 }
 0x585   : >> { %v4083_v54 = vadd.f32 %v4082_v22, %v4081_v2  ;;  %v4067_v33 = vadd.f32 %v4066_v57, %v4065_v25 }
 0x587   : >> { %v4084_v16 = vrot.slane %v4083_v54, 1  ;;  %v4097_v23 = vsel %vm4096_vm9, %v4095_v21, %v4067_v33 }
 0x589   : >> { %v4085_v35 = vadd.f32 %v4084_v16, %v4083_v54 }
 0x58b   : >> { %v4099_v8 = vsel %vm4098_vm10, %v4097_v23, %v4085_v35  ;;  %v4102_v30 = vsel %vm4086_vm4, %v4085_v35, %v4067_v33 }
 0x58c   : >> { %4101 = vst.msk [vmem:[%s4100_s26] sm:$0xff] %vm993_vm2, %v4099_v8  ;;  %v4103_v62 = vsel %vm4088_vm5, %v4102_v30, %v4049_v5 }
 0x58d   : >> { %v4104_v37 = vsel %vm4090_vm6, %v4103_v62, %v4031_v10 }
 0x58e   : >> { %v4105_v45 = vsel %vm4092_vm7, %v4104_v37, %v4013_v40 }
 0x58f   : >> { %v4106_v63 = vsel %vm4094_vm8, %v4105_v45, %v3995_v0 }
 0x590   : >> { %v4107_v55 = vsel %vm4096_vm9, %v4106_v63, %v3977_v61 }
 0x591   : >> { %v4108_v39 = vsel %vm4098_vm10, %v4107_v55, %v3959_v44 }
 0x592   : >> { %4111 = vrot.lane.b32.xlu0 %v4108_v39, %s5057_s27 }
 0x593   : > { %v4116_v56 = vld [vmem:[#allocation5] sm:$0xff] (%p3937_p4)  ;;  %v4118_v32 = vld [vmem:[#allocation5 + $0x10] sm:$0xff] (%p3937_p4)  ;;  %v4117_v9 = vld [vmem:[#allocation5 + $0x8] sm:$0xff] (%p3937_p4) }
 0x594   : > { %v4119_v61 = vld [vmem:[#allocation5 + $0x18] sm:$0xff] (%p3937_p4)  ;;  %v4120_v26 = vld [vmem:[#allocation5 + $0x20] sm:$0xff] (%p3937_p4)  ;;  %v4121_v0 = vld [vmem:[#allocation5 + $0x28] sm:$0xff] (%p3937_p4) }
 0x5ff   : > { %3939 = sbr.rel (!%p3937_p4) target bundleno = 1367 (0x557), region = 143 }
 0x604   : >> { %v4112_v60 = vpop.permute.xlu0 %4111 }
 0x605   : >> { %4115 = vst.msk [vmem:[%s4114_s30] sm:$0xff] %vm993_vm2, %v4112_v60 }
 0x60c   : > { %v4122_v52 = vld [vmem:[#allocation6] sm:$0xff]  ;;  %v4124_v17 = vld [vmem:[#allocation6 + $0x10] sm:$0xff]  ;;  %v4123_v44 = vld [vmem:[#allocation6 + $0x8] sm:$0xff] }
 0x60d   : > { %v4128_v28 = vadd.f32 %v4122_v52, %v4116_v56  ;;  %v4130_v53 = vadd.f32 %v4124_v17, %v4118_v32  ;;  %v4125_v7 = vld [vmem:[#allocation6 + $0x18] sm:$0xff]  ;;  %v4129_v19 = vadd.f32 %v4123_v44, %v4117_v9  ;;  %v4126_v43 = vld [vmem:[#allocation6 + $0x20] sm:$0xff]  ;;  %v4127_v29 = vld [vmem:[#allocation6 + $0x28] sm:$0xff] }
 0x60e   : > { %v4131_v46 = vadd.f32 %v4125_v7, %v4119_v61  ;;  %v4132_v6 = vadd.f32 %v4126_v43, %v4120_v26  ;;  %v4133_v34 = vadd.f32 %v4127_v29, %v4121_v0  ;;  %v7669_v32 = vld [vmem:[#allocation13_spill] sm:$0xff]  ;;  %v4291_v9 = vld [vmem:[%s7374_s13] sm:$0xff]  ;;  %v4294_v44 = vld [vmem:[%s7374_s13 + $0x18] sm:$0xff] }
 0x60f   : > { %v4147_v4 = vadd.f32 %v4141_v27, %v4128_v28  ;;  %v4149_v38 = vadd.f32 %v4143_v11, %v4130_v53  ;;  %v4148_v40 = vadd.f32 %v4142_v3, %v4129_v19  ;;  %v7668_v27 = vld [vmem:[#allocation18_spill] sm:$0xff]  ;;  %v7670_v17 = vld [vmem:[#allocation17_spill] sm:$0xff]  ;;  %v7672_v11 = vld [vmem:[#allocation15_spill] sm:$0xff]  ;;  %v4295_v3 = vpack.c.bf16 %v4292_v12, %v4291_v9 }
 0x610   : > { %v4150_v31 = vadd.f32 %v4144_v15, %v4131_v46  ;;  %v4151_v42 = vadd.f32 %v4145_v20, %v4132_v6  ;;  %v4152_v51 = vadd.f32 %v4146_v59, %v4133_v34  ;;  %v4293_v53 = vld [vmem:[%s7374_s13 + $0x10] sm:$0xff]  ;;  %v7673_v46 = vld [vmem:[#allocation16_spill] sm:$0xff]  ;;  %v4638_v34 = vld [vmem:[%s7372_s11] ss:$0 sm:$0xff] }
 0x611   : > { %v4155_v47 = vsel %vm993_vm2, %v4147_v4, 0.0  ;;  %v4161_v49 = vsel %vm993_vm2, %v4149_v38, 0.0  ;;  %v4158_v13 = vsel %vm993_vm2, %v4148_v40, 0.0  ;;  %4751 = vmatpush3.bf16.msra.mxu0 %v4295_v3  ;;  %v4296_v61 = vpack.c.bf16 %v4294_v44, %v4293_v53 }
 0x612   : > { %4156 = vadd.xlane.f32.xlu0 %v4155_v47  ;;  %4162 = vadd.xlane.f32.xlu1 %v4161_v49  ;;  %v4164_v1 = vsel %vm993_vm2, %v4150_v31, 0.0  ;;  %v4167_v10 = vsel %vm993_vm2, %v4151_v42, 0.0  ;;  %v4170_v25 = vsel %vm993_vm2, %v4152_v51, 0.0 }
 0x613   : > { %4752 = vmatprep.subr.bf16.mxu0 %v7661_v48 }
 0x615   : > { %4753 = vmatpush3.bf16.msra.mxu0 %v4296_v61 }
 0x616   : > { %4159 = vadd.xlane.f32.xlu0 %v4158_v13  ;;  %4165 = vadd.xlane.f32.xlu1 %v4164_v1 }
 0x61a   : > { %4168 = vadd.xlane.f32.xlu0 %v4167_v10  ;;  %4171 = vadd.xlane.f32.xlu1 %v4170_v25 }
 0x69f   : > { %v4157_v2 = vpop.xlane.xlu0 %4156  ;;  %v4163_v5 = vpop.xlane.xlu1 %4162 }
 0x6a0   : > { %v4174_v24 = vmul.f32 0.03125, %v4157_v2  ;;  %v4176_v57 = vmul.f32 0.03125, %v4163_v5 }
 0x6a2   : > { %v7272_v22 = vsub.f32 %v4147_v4, %v4174_v24  ;;  %v7274_v54 = vsub.f32 %v4149_v38, %v4176_v57 }
 0x6a3   : > { %v4160_v21 = vpop.xlane.xlu0 %4159  ;;  %v4166_v16 = vpop.xlane.xlu1 %4165 }
 0x6a4   : > { %v4175_v33 = vmul.f32 0.03125, %v4160_v21  ;;  %v4186_v23 = vmul.f32 %v7272_v22, %v7272_v22  ;;  %v4177_v35 = vmul.f32 0.03125, %v4166_v16  ;;  %v4188_v8 = vmul.f32 %v7274_v54, %v7274_v54 }
 0x6a6   : > { %v7280_v30 = vsub.f32 %v4148_v40, %v4175_v33  ;;  %v4192_v62 = vsel %vm993_vm2, %v4186_v23, 0.0  ;;  %v7283_v37 = vsub.f32 %v4150_v31, %v4177_v35  ;;  %v4198_v55 = vsel %vm993_vm2, %v4188_v8, 0.0 }
 0x6a7   : > { %4193 = vadd.xlane.f32.xlu0 %v4192_v62  ;;  %v4169_v45 = vpop.xlane.xlu0 %4168  ;;  %v4172_v7 = vpop.xlane.xlu1 %4171 }
 0x6a8   : > { %v4178_v63 = vmul.f32 0.03125, %v4169_v45  ;;  %v4187_v39 = vmul.f32 %v7280_v30, %v7280_v30  ;;  %v4189_v60 = vmul.f32 %v7283_v37, %v7283_v37  ;;  %v4179_v58 = vmul.f32 0.03125, %v4172_v7 }
 0x6aa   : > { %v7290_v56 = vsub.f32 %v4151_v42, %v4178_v63  ;;  %v4195_v52 = vsel %vm993_vm2, %v4187_v39, 0.0  ;;  %v4201_v36 = vsel %vm993_vm2, %v4189_v60, 0.0  ;;  %v7315_v15 = vsub.f32 %v4152_v51, %v4179_v58  ;;  %v4639_v51 = vld [vmem:[%s7373_s12] ss:$0 sm:$0xff] }
 0x6ab   : > { %4199 = vadd.xlane.f32.xlu0 %v4198_v55  ;;  %4196 = vadd.xlane.f32.xlu1 %v4195_v52 }
 0x6ac   : > { %v4190_v28 = vmul.f32 %v7290_v56, %v7290_v56  ;;  %v4191_v4 = vmul.f32 %v7315_v15, %v7315_v15 }
 0x6ae   : > { %v4204_v50 = vsel %vm993_vm2, %v4190_v28, 0.0  ;;  %v4207_v19 = vsel %vm993_vm2, %v4191_v4, 0.0 }
 0x6af   : > { %4202 = vadd.xlane.f32.xlu1 %v4201_v36  ;;  %4205 = vadd.xlane.f32.xlu0 %v4204_v50 }
 0x6c0   : > { %4266 = vrot.lane.b32.xlu1 %v7668_v27, %s5058_s17 }
 0x6c4   : > { %4268 = vrot.lane.b32.xlu1 %v7669_v32, %s5058_s17 }
 0x6c5   : > { %4264 = vrot.lane.b32.xlu0 %v7670_v17, %s5058_s17 }
 0x6c8   : > { %4270 = vrot.lane.b32.xlu1 %v7671_v14, %s5058_s17 }
 0x6c9   : > { %4272 = vrot.lane.b32.xlu0 %v7672_v11, %s5058_s17 }
 0x6ec   : > { %4208 = vadd.xlane.f32.xlu1 %v4207_v19 }
 0x6fd   : > { %4274 = vrot.lane.b32.xlu1 %v7673_v46, %s5058_s17 }
 0x734   : > { %v4194_v26 = vpop.xlane.xlu0 %4193 }
 0x735   : > { %v4210_v43 = vmul.f32 0.03125, %v4194_v26 }
 0x737   : > { %v4216_v18 = vadd.f32 1e-05, %v4210_v43 }
 0x738   : > { %v4197_v20 = vpop.xlane.xlu1 %4196  ;;  %v4200_v0 = vpop.xlane.xlu0 %4199 }
 0x739   : > { %5017 = vrsqrt.f32 %v4216_v18  ;;  %v4211_v38 = vmul.f32 0.03125, %v4197_v20  ;;  %v4212_v6 = vmul.f32 0.03125, %v4200_v0  ;;  %v7676_v0 = vld [vmem:[#allocation7_spill] sm:$0xff] }
 0x73b   : > { %v4217_v29 = vadd.f32 1e-05, %v4211_v38  ;;  %v4218_v41 = vadd.f32 1e-05, %v4212_v6 }
 0x73c   : > { %v4203_v59 = vpop.xlane.xlu1 %4202  ;;  %v4206_v1 = vpop.xlane.xlu0 %4205 }
 0x73d   : > { %5019 = vrsqrt.f32 %v4217_v29  ;;  %v4213_v47 = vmul.f32 0.03125, %v4203_v59 }
 0x73e   : > { %5021 = vrsqrt.f32 %v4218_v41  ;;  %v7677_v41 = vld [vmem:[#allocation9_spill] sm:$0xff] }
 0x73f   : > { %v4219_v40 = vadd.f32 1e-05, %v4213_v47 }
 0x740   : > { %v4267_v10 = vpop.permute.xlu1 %4266  ;;  %v4265_v33 = vpop.permute.xlu0 %4264 }
 0x741   : > { %5023 = vrsqrt.f32 %v4219_v40 }
 0x743   : > { %v5018_v31 = vpop.eup %5017 }
 0x744   : > { %v4228_v49 = vmul.f32 %v5018_v31, %v7272_v22  ;;  %v4269_v23 = vpop.permute.xlu1 %4268  ;;  %v4273_v53 = vpop.permute.xlu0 %4272  ;;  %v7678_v31 = vld [vmem:[#allocation8_spill] sm:$0xff] }
 0x746   : > { %v4240_v13 = vmul.f32 %v4638_v34, %v4228_v49 }
 0x747   : > { %v5020_v42 = vpop.eup %5019 }
 0x748   : > { %v5022_v25 = vpop.eup %5021  ;;  %v4229_v2 = vmul.f32 %v5020_v42, %v7280_v30  ;;  %v4252_v57 = vadd.f32 %v4639_v51, %v4240_v13  ;;  %v4271_v30 = vpop.permute.xlu1 %4270  ;;  %v7679_v42 = vld [vmem:[#allocation10_spill] sm:$0xff] }
 0x749   : > { %v4230_v5 = vmul.f32 %v5022_v25, %v7274_v54 }
 0x74a   : > { %v4241_v24 = vmul.f32 %v4638_v34, %v4229_v2  ;;  %v4282_v45 = vmul.f32 %v4265_v33, %v4252_v57 }
 0x74b   : > { %v5024_v21 = vpop.eup %5023  ;;  %v4242_v8 = vmul.f32 %v4638_v34, %v4230_v5 }
 0x74c   : > { %v4253_v16 = vadd.f32 %v4639_v51, %v4241_v24  ;;  %v4231_v22 = vmul.f32 %v5024_v21, %v7283_v37  ;;  %v4214_v37 = vmul.f32 0.03125, %v4206_v1 }
 0x74d   : > { %v4254_v39 = vadd.f32 %v4639_v51, %v4242_v8 }
 0x74e   : > { %v4283_v35 = vmul.f32 %v4267_v10, %v4253_v16  ;;  %v4243_v62 = vmul.f32 %v4638_v34, %v4231_v22  ;;  %v4220_v36 = vadd.f32 1e-05, %v4214_v37 }
 0x74f   : > { %v4284_v60 = vmul.f32 %v4269_v23, %v4254_v39 }
 0x750   : > { %v4255_v63 = vadd.f32 %v4639_v51, %v4243_v62  ;;  %v4288_v55 = vpack.c.bf16 %v4283_v35, %v4282_v45  ;;  %5025 = vrsqrt.f32 %v4220_v36 }
 0x752   : > { %4755 = vmatmul.mubr.msk.bf16.vlgmr.msra.gmra.mrb[16].mxu0 %vm993_vm2, %v4288_v55  ;;  %v4285_v54 = vmul.f32 %v4271_v30, %v4255_v63 }
 0x753   : > { %4758 = vmatprep.mubr.msk.bf16.mxu0 %vm5054_vm1, %v7661_v48 }
 0x754   : > { %v4289_v52 = vpack.c.bf16 %v4285_v54, %v4284_v60 }
 0x75a   : > { %4759 = vmatmul.mubr.msk.bf16.gmra.mrb[20].mxu0 %vm993_vm2, %v4289_v52  ;;  %v5026_v32 = vpop.eup %5025 }
 0x75b   : > { %4762 = vmatprep.mubr.msk.bf16.mxu0 %vm5054_vm1, %v7661_v48  ;;  %v4232_v17 = vmul.f32 %v5026_v32, %v7290_v56  ;;  %v7674_v56 = vld [vmem:[#allocation11_spill] sm:$0xff] }
 0x75d   : > { %v4244_v14 = vmul.f32 %v4638_v34, %v4232_v17 }
 0x75f   : > { %v4256_v12 = vadd.f32 %v4639_v51, %v4244_v14 }
 0x761   : > { %v4286_v61 = vmul.f32 %v4273_v53, %v4256_v12 }
 0x779   : > { %v4209_v28 = vpop.xlane.xlu1 %4208 }
 0x77a   : > { %v4215_v50 = vmul.f32 0.03125, %v4209_v28 }
 0x77c   : > { %v4221_v27 = vadd.f32 1e-05, %v4215_v50 }
 0x77d   : > { %v4275_v48 = vpop.permute.xlu1 %4274 }
 0x77e   : > { %5027 = vrsqrt.f32 %v4221_v27 }
 0x788   : > { %v5028_v11 = vpop.eup %5027 }
 0x789   : > { %v4233_v9 = vmul.f32 %v5028_v11, %v7315_v15  ;;  %v7675_v15 = vld [vmem:[#allocation12_spill] sm:$0xff] }
 0x78b   : > { %v4245_v3 = vmul.f32 %v4638_v34, %v4233_v9 }
 0x78d   : > { %v4257_v44 = vadd.f32 %v4639_v51, %v4245_v3 }
 0x78f   : > { %v4287_v7 = vmul.f32 %v4275_v48, %v4257_v44 }
 0x791   : > { %v4290_v58 = vpack.c.bf16 %v4287_v7, %v4286_v61 }
 0x793   : > { %4763 = vmatmul.mubr.msk.bf16.gmra.mrb[24].mxu0 %vm993_vm2, %v4290_v58 }
 0x825   : > { %v4340_v4 = vpop.f32.mrb[16].mxu0 }
 0x826   : > { %v4363_v19 = vadd.f32 %v4340_v4, %v7674_v56  ;;  %v4756_v46 = vpop.f32.mrb[17].mxu0 }
 0x827   : > { %v4343_v26 = vpop.f32.mrb[18].mxu0 }
 0x828   : > { %4369 = vst.msk [vmem:[%s5150_s21] sm:$0xff] %vm497_vm0, %v4363_v19  ;;  %v4364_v43 = vadd.f32 %v4343_v26, %v7675_v15  ;;  %v4757_v18 = vpop.f32.mrb[19].mxu0 }
 0x82a   : > { %4370 = vst.msk [vmem:[%s5150_s21 + $0x8] sm:$0xff] %vm497_vm0, %v4364_v43 }
 0x82d   : > { %v4348_v20 = vpop.f32.mrb[20].mxu0 }
 0x82e   : > { %v4365_v38 = vadd.f32 %v4348_v20, %v7676_v0  ;;  %v4760_v6 = vpop.f32.mrb[21].mxu0 }
 0x82f   : > { %v4351_v29 = vpop.f32.mrb[22].mxu0 }
 0x830   : > { %4371 = vst.msk [vmem:[%s5150_s21 + $0x10] sm:$0xff] %vm497_vm0, %v4365_v38  ;;  %v4366_v59 = vadd.f32 %v4351_v29, %v7677_v41  ;;  %v4761_v47 = vpop.f32.mrb[23].mxu0 }
 0x832   : > { %4372 = vst.msk [vmem:[%s5150_s21 + $0x18] sm:$0xff] %vm497_vm0, %v4366_v59 }
 0x866   : > { %v4356_v40 = vpop.f32.mrb[24].mxu0 }
 0x867   : > { %v4367_v34 = vadd.f32 %v4356_v40, %v7678_v31  ;;  %v4764_v49 = vpop.f32.mrb[25].mxu0 }
 0x868   : > { %v4359_v13 = vpop.f32.mrb[26].mxu0 }
 0x869   : > { %4373 = vst.msk [vmem:[%s5150_s21 + $0x20] sm:$0xff] %vm497_vm0, %v4367_v34  ;;  %v4368_v1 = vadd.f32 %v4359_v13, %v7679_v42  ;;  %v4765_v51 = vpop.f32.mrb[27].mxu0 }
 0x86b   : > { %4374 = vst.msk [vmem:[%s5150_s21 + $0x28] sm:$0xff] %vm497_vm0, %v4368_v1 }
 0x86c PF: > { %s24_s29 = sadd.s32 1, %s5043_s29  }
 0x86d   : > { %p21_p5 = scmp.ge.s32.totalorder %s24_s29, 4  }
 0x86f   :  { %23 = sbr.rel (!%p21_p5) target bundleno = 1 (0x1), region = 154 }

</bundles_post_ra>
